<compile_context>
chip_gen: v5e
topology: v5e:2x2
jax: 0.10.0
libtpu: 0.0.40
codegen_flags: <defaults>
</compile_context>

<pallas_src>
import functools
import math

import jax
import jax.numpy as jnp
from jax import lax
from jax.experimental import pallas as pl
from jax.experimental.pallas import tpu as pltpu

# ----------------------------- configuration --------------------------------
BINS = (1, 2, 3, 6)
CLASSES = 4
ZOOM = 8
BASE_NUM = 2
# ResNet-50 widths scaled by 1/16 (fea_dim 2048->128, reduction 512->32,
# PPM out 4096->256).  cls / main_dim kept at 128 so the prototype kernels
# stay lane-dense (real model uses 512).
C_L0A, C_L0B, C_L0C = 4, 4, 8
C_L1, C_L2, C_L3, C_L4 = 16, 32, 64, 128
FEA_DIM = C_L4
RED_DIM = FEA_DIM // len(BINS)
CLS_DIM = 128
MAIN_DIM = CLS_DIM
BN_EPS = 1e-5
VMEM_LIMIT = 32 * 1024 * 1024        # safe scoped-VMEM budget on v5e/v6e/v7x


def _round_up(v, m):
    return (v + m - 1) // m * m


# ======================= Pallas kernel 1: tiled matmul ========================
def _mm_affine_kernel(x_ref, w_ref, s_ref, b_ref, o_ref, acc_ref, *, relu):
    @pl.when(pl.program_id(2) == 0)
    def _():
        acc_ref[...] = jnp.zeros_like(acc_ref)

    acc_ref[...] += jnp.dot(x_ref[...], w_ref[...],
                            preferred_element_type=jnp.float32)

    @pl.when(pl.program_id(2) == pl.num_programs(2) - 1)
    def _():
        y = acc_ref[...] * s_ref[...] + b_ref[...]
        if relu:
            y = jnp.maximum(y, 0.0)
        o_ref[...] = y


def pallas_matmul_affine(x2d, w2d, scale, bias, relu, tm=256, tn=256, tk=512):
    """y = [relu]((x @ w) * scale + bias).  bf16 operands, f32 accumulation."""
    m, k = x2d.shape
    n = w2d.shape[1]
    tm = min(tm, _round_up(m, 8))
    tn = min(tn, _round_up(n, 128))
    tk = min(tk, _round_up(k, 128))
    mp, kp, np_ = _round_up(m, tm), _round_up(k, tk), _round_up(n, tn)
    xp = jnp.pad(x2d.astype(jnp.float32),
                 ((0, mp - m), (0, kp - k))).astype(jnp.bfloat16)
    wp = jnp.pad(w2d.astype(jnp.float32),
                 ((0, kp - k), (0, np_ - n))).astype(jnp.bfloat16)
    sp = jnp.pad(scale.reshape(1, n).astype(jnp.float32), ((0, 0), (0, np_ - n)))
    bp = jnp.pad(bias.reshape(1, n).astype(jnp.float32), ((0, 0), (0, np_ - n)))
    kern = functools.partial(_mm_affine_kernel, relu=relu)
    out = pl.pallas_call(
        kern,
        out_shape=jax.ShapeDtypeStruct((mp, np_), jnp.float32),
        grid_spec=pltpu.PrefetchScalarGridSpec(
            num_scalar_prefetch=0,
            grid=(mp // tm, np_ // tn, kp // tk),
            in_specs=[
                pl.BlockSpec((tm, tk), lambda i, j, l: (i, l)),
                pl.BlockSpec((tk, tn), lambda i, j, l: (l, j)),
                pl.BlockSpec((1, tn), lambda i, j, l: (0, j)),
                pl.BlockSpec((1, tn), lambda i, j, l: (0, j)),
            ],
            out_specs=pl.BlockSpec((tm, tn), lambda i, j, l: (i, j)),
            scratch_shapes=[pltpu.VMEM((tm, tn), jnp.float32)]),
        compiler_params=pltpu.CompilerParams(
            dimension_semantics=("parallel", "parallel", "arbitrary"),
            vmem_limit_bytes=VMEM_LIMIT),
    )(xp, wp, sp, bp)
    return out[:m, :n]


# ============== Pallas kernel 2: 3x3 conv via in-kernel tap accum =============
def _conv3x3_kernel(x_ref, w_ref, s_ref, b_ref, o_ref, *, taps, relu):
    # x_ref: (1, hp*wp, cin) flattened padded image (bf16)
    # w_ref: (kh*kw, cin, cout) (bf16); taps[t] = static flat offset of tap t
    # o_ref: (1, L, cout) with L = (ho-1)*wp + wo (garbage cols cropped outside)
    nl = o_ref.shape[1]
    acc = jnp.zeros((nl, o_ref.shape[2]), jnp.float32)
    for t, off in enumerate(taps):
        win = x_ref[0, off:off + nl, :]
        acc = acc + jnp.dot(win, w_ref[t], preferred_element_type=jnp.float32)
    y = acc * s_ref[...] + b_ref[...]
    if relu:
        y = jnp.maximum(y, 0.0)
    o_ref[0] = y


def pallas_conv3x3_bn_relu(x, w, scale, bias, padding=1, dilation=1, relu=True):
    """Stride-1 KxK conv as tap accumulation (no HBM im2col), fused BN+ReLU.
    x: NHWC float32, w: (kh, kw, cin, cout)."""
    n, h, wdt, cin = x.shape
    kh, kw, _, cout = w.shape
    hp, wp = h + 2 * padding, wdt + 2 * padding
    ho = hp - dilation * (kh - 1)
    wo = wp - dilation * (kw - 1)
    nl = (ho - 1) * wp + wo                          # rows computed per image
    xp = jnp.pad(x, ((0, 0), (padding, padding), (padding, padding), (0, 0)))
    xp = xp.reshape(n, hp * wp, cin).astype(jnp.bfloat16)
    wr = w.reshape(kh * kw, cin, cout).astype(jnp.bfloat16)
    taps = tuple(ki * dilation * wp + kj * dilation
                 for ki in range(kh) for kj in range(kw))
    kern = functools.partial(_conv3x3_kernel, taps=taps, relu=relu)
    out = pl.pallas_call(
        kern,
        out_shape=jax.ShapeDtypeStruct((n, nl, cout), jnp.float32),
        grid=(n,),
        in_specs=[
            pl.BlockSpec((1, hp * wp, cin), lambda i: (i, 0, 0)),
            pl.BlockSpec((kh * kw, cin, cout), lambda i: (0, 0, 0)),
            pl.BlockSpec((1, cout), lambda i: (0, 0)),
            pl.BlockSpec((1, cout), lambda i: (0, 0)),
        ],
        out_specs=pl.BlockSpec((1, nl, cout), lambda i: (i, 0, 0)),
        compiler_params=pltpu.CompilerParams(
            dimension_semantics=("parallel",),
            vmem_limit_bytes=VMEM_LIMIT),
    )(xp, wr,
      scale.reshape(1, cout).astype(jnp.float32),
      bias.reshape(1, cout).astype(jnp.float32))
    # rows are laid out with stride wp; drop the (kw-1)*dilation garbage cols.
    out = jnp.pad(out, ((0, 0), (0, ho * wp - nl), (0, 0)))
    return out.reshape(n, ho, wp, cout)[:, :, :wo, :]


# ===================== Pallas kernel 3: fused PPM branches ====================
def _ppm_kernel(x_ref, w_ref, s_ref, b_ref, o_ref):
    y = jnp.dot(x_ref[0], w_ref[0], preferred_element_type=jnp.float32)
    y = y * s_ref[0] + b_ref[0]
    o_ref[0] = jnp.maximum(y, 0.0)


def pallas_ppm(pooled_stack, w_stack, s_stack, b_stack):
    # pooled_stack: (nbins, R, FEA) bf16, w_stack: (nbins, FEA, RED) bf16
    nb, r, fea = pooled_stack.shape
    red = w_stack.shape[-1]
    return pl.pallas_call(
        _ppm_kernel,
        out_shape=jax.ShapeDtypeStruct((nb, r, red), jnp.float32),
        grid=(nb,),
        in_specs=[
            pl.BlockSpec((1, r, fea), lambda i: (i, 0, 0)),
            pl.BlockSpec((1, fea, red), lambda i: (i, 0, 0)),
            pl.BlockSpec((1, 1, red), lambda i: (i, 0, 0)),
            pl.BlockSpec((1, 1, red), lambda i: (i, 0, 0)),
        ],
        out_specs=pl.BlockSpec((1, r, red), lambda i: (i, 0, 0)),
        compiler_params=pltpu.CompilerParams(
            dimension_semantics=("parallel",),
            vmem_limit_bytes=VMEM_LIMIT),
    )(pooled_stack, w_stack, s_stack, b_stack)


# ====== Pallas kernel 4: fused post_refine_proto_v2 + merge + get_pred =======
def _proto_pred_kernel(x_ref, mp_ref, gp_ref, o_ref, *, base_num):
    x = x_ref[0]                                   # (HW, C) f32
    p = mp_ref[...]                                # (K, C) main_proto
    gp = gp_ref[...]                               # (K, C) gened_proto
    k = p.shape[0]

    def l2n(v):                                    # eps'd row-wise L2 normalize
        ss = jnp.sum(v * v, axis=-1, keepdims=True)
        return v * lax.rsqrt(jnp.maximum(ss, 1e-24))

    xn = l2n(x)
    pn = l2n(p)
    xn16 = xn.astype(jnp.bfloat16)

    # get_pred: 10 * proto_n @ x_n^T                       (K, HW)
    pred = 10.0 * lax.dot_general(pn.astype(jnp.bfloat16), xn16,
                                  (((1,), (1,)), ((), ())),
                                  preferred_element_type=jnp.float32)
    # softmax over HW, pred_proto = soft @ x               (K, C)
    pred = pred - jnp.max(pred, axis=-1, keepdims=True)
    e = jnp.exp(pred)
    soft = e * pl.reciprocal(jnp.sum(e, axis=-1, keepdims=True), approx=True)
    pred_proto = jnp.dot(soft.astype(jnp.bfloat16), x.astype(jnp.bfloat16),
                         preferred_element_type=jnp.float32)
    # cosine weight, convex blend with main_proto
    wgt = jnp.sum(l2n(pred_proto) * pn, axis=-1, keepdims=True)
    wgt = wgt * (wgt > 0).astype(jnp.float32)
    refine = wgt * pred_proto + (1.0 - wgt) * p
    # merge with gened_proto:  [:base_num] += gp ;  [base_num:] = gp
    is_base = lax.broadcasted_iota(jnp.int32, (k, 1), 0) < base_num
    refine = jnp.where(is_base, refine + gp, gp)
    # final pred = 10 * refine_n @ x_n^T                   (K, HW)
    out = 10.0 * lax.dot_general(l2n(refine).astype(jnp.bfloat16), xn16,
                                 (((1,), (1,)), ((), ())),
                                 preferred_element_type=jnp.float32)
    o_ref[0] = out


def pallas_proto_pred(xf, main_proto, gened_proto, base_num):
    # xf: (B, HW, C) f32  ->  pred (B, K, HW)
    # TODO(synk): at real resolutions pad HW to a multiple of 128 (mask the
    #             padded columns with -inf before softmax) for lane-dense
    #             output stores; trivial at this toy HW=25.
    b, hw, c = xf.shape
    k = main_proto.shape[0]
    kern = functools.partial(_proto_pred_kernel, base_num=base_num)
    return pl.pallas_call(
        kern,
        out_shape=jax.ShapeDtypeStruct((b, k, hw), jnp.float32),
        grid=(b,),
        in_specs=[
            pl.BlockSpec((1, hw, c), lambda i: (i, 0, 0)),
            pl.BlockSpec((k, c), lambda i: (0, 0)),
            pl.BlockSpec((k, c), lambda i: (0, 0)),
        ],
        out_specs=pl.BlockSpec((1, k, hw), lambda i: (i, 0, 0)),
        compiler_params=pltpu.CompilerParams(
            dimension_semantics=("parallel",),
            vmem_limit_bytes=VMEM_LIMIT),
    )(xf.astype(jnp.float32), main_proto.astype(jnp.float32),
      gened_proto.astype(jnp.float32))


# ----------------------------- JAX glue ---------------------------------------
def conv_bn_relu_xla(x, w, scale, bias, stride=1, padding=1, dilation=1,
                     relu=True):
    # small-channel convs: XLA conv (lane occupancy too low for Pallas/MXU)
    y = lax.conv_general_dilated(
        x, w, window_strides=(stride, stride),
        padding=((padding, padding), (padding, padding)),
        rhs_dilation=(dilation, dilation),
        dimension_numbers=("NHWC", "HWIO", "NHWC"))
    y = y * scale + bias
    return jnp.maximum(y, 0.0) if relu else y


def maxpool_3x3_s2(x):
    return lax.reduce_window(
        x, -jnp.inf, lax.max,
        window_dimensions=(1, 3, 3, 1), window_strides=(1, 2, 2, 1),
        padding=((0, 0), (1, 1), (1, 1), (0, 0)))


def adaptive_avg_pool(x, out_size):
    # PyTorch AdaptiveAvgPool2d semantics.  x: NHWC
    n, h, w, c = x.shape
    rows = []
    for i in range(out_size):
        h0 = (i * h) // out_size
        h1 = -((-(i + 1) * h) // out_size)
        cols = []
        for j in range(out_size):
            w0 = (j * w) // out_size
            w1 = -((-(j + 1) * w) // out_size)
            cols.append(jnp.mean(x[:, h0:h1, w0:w1, :], axis=(1, 2)))
        rows.append(jnp.stack(cols, axis=1))
    return jnp.stack(rows, axis=1)  # (N, out, out, C)


def resize_bilinear_ac(x, oh, ow):
    # bilinear, align_corners=True.  x: NHWC
    n, h, w, c = x.shape

    def coords(out, size):
        s = jnp.arange(out, dtype=jnp.float32) * (
            (size - 1) / (out - 1) if out > 1 else 0.0)
        lo = jnp.clip(jnp.floor(s).astype(jnp.int32), 0, size - 1)
        hi = jnp.clip(lo + 1, 0, size - 1)
        return s - lo.astype(jnp.float32), lo, hi

    fh, h0, h1 = coords(oh, h)
    fw, w0, w1 = coords(ow, w)
    fw_ = fw[None, None, :, None]
    fh_ = fh[None, :, None, None]
    top = x[:, h0][:, :, w0] * (1 - fw_) + x[:, h0][:, :, w1] * fw_
    bot = x[:, h1][:, :, w0] * (1 - fw_) + x[:, h1][:, :, w1] * fw_
    return top * (1 - fh_) + bot * fh_


# ----------------------------- parameters -------------------------------------
def _conv_bn(key, kh, kw, cin, cout):
    k1, k2, k3, k4, k5 = jax.random.split(key, 5)
    w = jax.random.normal(k1, (kh, kw, cin, cout), jnp.float32) / math.sqrt(
        kh * kw * cin)
    gamma = 1.0 + 0.1 * jax.random.normal(k2, (cout,), jnp.float32)
    beta = 0.1 * jax.random.normal(k3, (cout,), jnp.float32)
    mean = 0.1 * jax.random.normal(k4, (cout,), jnp.float32)
    var = 1.0 + 0.1 * jnp.abs(jax.random.normal(k5, (cout,), jnp.float32))
    scale = gamma / jnp.sqrt(var + BN_EPS)
    bias = beta - mean * scale
    return {"w": w, "scale": scale, "bias": bias}


def init_params(key):
    ks = jax.random.split(key, 20)
    p = {}
    p["l0c1"] = _conv_bn(ks[0], 3, 3, 3, C_L0A)
    p["l0c2"] = _conv_bn(ks[1], 3, 3, C_L0A, C_L0B)
    p["l0c3"] = _conv_bn(ks[2], 3, 3, C_L0B, C_L0C)
    p["l1"] = _conv_bn(ks[3], 3, 3, C_L0C, C_L1)
    p["l2"] = _conv_bn(ks[4], 3, 3, C_L1, C_L2)
    p["l3"] = _conv_bn(ks[5], 3, 3, C_L2, C_L3)     # dilation 2
    p["l4"] = _conv_bn(ks[6], 3, 3, C_L3, C_L4)     # dilation 4
    for bi in range(len(BINS)):
        p[f"ppm{bi}"] = _conv_bn(ks[7 + bi], 1, 1, FEA_DIM, RED_DIM)
    p["cls1"] = _conv_bn(ks[11], 3, 3, 2 * FEA_DIM, CLS_DIM)
    p["cls2_w"] = jax.random.normal(
        ks[12], (CLS_DIM, CLS_DIM), jnp.float32) / math.sqrt(CLS_DIM)
    p["cls2_b"] = 0.1 * jax.random.normal(ks[13], (CLS_DIM,), jnp.float32)
    p["main_proto"] = jax.random.normal(ks[14], (CLASSES, MAIN_DIM), jnp.float32)
    return p


# ----------------------------- forward (eval_model path) ----------------------
def pspnet_forward(params, x_nchw, gened_proto, base_num=BASE_NUM):
    p = params
    x = jnp.transpose(x_nchw, (0, 2, 3, 1)).astype(jnp.float32)  # -> NHWC
    _, H, W, _ = x.shape
    h_out = (H - 1) // 8 * ZOOM + 1
    w_out = (W - 1) // 8 * ZOOM + 1

    def cbr(xx, name, **kw):
        pp = p[name]
        return conv_bn_relu_xla(xx, pp["w"], pp["scale"], pp["bias"], **kw)

    # ---- backbone surrogate (stride/dilation schedule of dilated ResNet-50)
    x = cbr(x, "l0c1", stride=2, padding=1)
    x = cbr(x, "l0c2", stride=1, padding=1)
    x = cbr(x, "l0c3", stride=1, padding=1)
    x = maxpool_3x3_s2(x)
    x = cbr(x, "l1", stride=1, padding=1)
    x = cbr(x, "l2", stride=2, padding=1)
    x_tmp = pallas_conv3x3_bn_relu(x, p["l3"]["w"], p["l3"]["scale"],
                                   p["l3"]["bias"], padding=2, dilation=2)
    x = pallas_conv3x3_bn_relu(x_tmp, p["l4"]["w"], p["l4"]["scale"],
                               p["l4"]["bias"], padding=4, dilation=4)
    bsz, hf, wf, _ = x.shape

    # ---- PPM: four pool->1x1conv->BN->ReLU branches fused into one pallas_call
    max_rows = bsz * max(b * b for b in BINS)
    pooled_stack = jnp.zeros((len(BINS), max_rows, FEA_DIM), jnp.float32)
    for bi, bn in enumerate(BINS):
        pooled = adaptive_avg_pool(x, bn).reshape(bsz * bn * bn, FEA_DIM)
        pooled_stack = pooled_stack.at[bi, :bsz * bn * bn].set(pooled)
    w_stack = jnp.stack([p[f"ppm{bi}"]["w"].reshape(FEA_DIM, RED_DIM)
                         for bi in range(len(BINS))], 0)
    s_stack = jnp.stack([p[f"ppm{bi}"]["scale"].reshape(1, RED_DIM)
                         for bi in range(len(BINS))], 0)
    b_stack = jnp.stack([p[f"ppm{bi}"]["bias"].reshape(1, RED_DIM)
                         for bi in range(len(BINS))], 0)
    ppm_out = pallas_ppm(pooled_stack.astype(jnp.bfloat16),
                         w_stack.astype(jnp.bfloat16), s_stack, b_stack)
    feats = [x]
    for bi, bn in enumerate(BINS):
        y = ppm_out[bi, :bsz * bn * bn].reshape(bsz, bn, bn, RED_DIM)
        feats.append(resize_bilinear_ac(y, hf, wf))
    x = jnp.concatenate(feats, axis=-1)                      # (B, hf, wf, 2*FEA)

    # ---- cls head (Dropout2d = eval identity)
    x = pallas_conv3x3_bn_relu(x, p["cls1"]["w"], p["cls1"]["scale"],
                               p["cls1"]["bias"], padding=1, dilation=1)
    x2 = pallas_matmul_affine(x.reshape(bsz * hf * wf, CLS_DIM),
                              p["cls2_w"],
                              jnp.ones((CLS_DIM,), jnp.float32),
                              p["cls2_b"], relu=False)
    raw_x = x2.reshape(bsz, hf, wf, CLS_DIM)

    # ---- eval_model branch: fused post_refine_proto_v2 + proto merge + get_pred
    xf = raw_x.reshape(bsz, hf * wf, CLS_DIM)
    gp = gened_proto[0] if gened_proto.ndim == 3 else gened_proto
    pred = pallas_proto_pred(xf, p["main_proto"], gp, base_num)  # (B, K, HW)
    pred = pred.reshape(bsz, CLASSES, hf, wf)

    # ---- bilinear upsample to (h, w), align_corners=True
    out = resize_bilinear_ac(jnp.transpose(pred, (0, 2, 3, 1)), h_out, w_out)
    return jnp.transpose(out, (0, 3, 1, 2))                     # NCHW logits


# ----------------------------- main --------------------------------------------
if __name__ == "__main__":
    key = jax.random.PRNGKey(0)
    k_par, k_x, k_gp = jax.random.split(key, 3)
    params = init_params(k_par)

    # input: (B, 3, 33, 33) -> satisfies (H-1) % 8 == 0; feature map is 5x5.
    x = jax.random.normal(k_x, (2, 3, 33, 33), jnp.float32)
    gened_proto = jax.random.normal(k_gp, (1, CLASSES, MAIN_DIM), jnp.float32)

    fwd = jax.jit(lambda xx, gg: pspnet_forward(params, xx, gg))
    out = jax.block_until_ready(fwd(x, gened_proto))
    assert out.shape == (2, CLASSES, 33, 33), out.shape
    assert bool(jnp.all(jnp.isfinite(out)))
    print("KERNEL_OK")
</pallas_src>

<mosaic_0001>
module attributes {stable_mosaic.version = 11 : i64} {
  func.func @_conv3x3_kernel(%arg0: i32, %arg1: memref<1x81x32xbf16, #tpu.memory_space<vmem>>, %arg2: memref<9x32x64xbf16, #tpu.memory_space<vmem>>, %arg3: memref<1x64xf32, #tpu.memory_space<vmem>>, %arg4: memref<1x64xf32, #tpu.memory_space<vmem>>, %arg5: memref<1x41x64xf32, #tpu.memory_space<vmem>>) attributes {dimension_semantics = [#tpu.dimension_semantics<parallel>], iteration_bounds = array<i64: 2>, scalar_prefetch = 0 : i64, scratch_operands = 0 : i64, tpu.core_type = #tpu.core_type<tc>, window_params = [{transform_indices = @transform_0, window_bounds = array<i64: 1, 81, 32>}, {pipeline_mode = #tpu.pipeline_mode<synchronous>, transform_indices = @transform_1, window_bounds = array<i64: 9, 32, 64>}, {pipeline_mode = #tpu.pipeline_mode<synchronous>, transform_indices = @transform_2, window_bounds = array<i64: 1, 64>}, {pipeline_mode = #tpu.pipeline_mode<synchronous>, transform_indices = @transform_3, window_bounds = array<i64: 1, 64>}, {transform_indices = @transform_4, window_bounds = array<i64: 1, 41, 64>}]} {
    %cst = arith.constant 0.000000e+00 : f32
    %0 = vector.broadcast %cst : f32 to vector<41x64xf32>
    %c0 = arith.constant 0 : index
    %c0_0 = arith.constant 0 : index
    %c0_1 = arith.constant 0 : index
    %1 = vector.load %arg1[%c0, %c0_0, %c0_1] : memref<1x81x32xbf16, #tpu.memory_space<vmem>>, vector<1x41x32xbf16>
    %2 = vector.shape_cast %1 : vector<1x41x32xbf16> to vector<41x32xbf16>
    %c0_2 = arith.constant 0 : index
    %c0_3 = arith.constant 0 : index
    %c0_4 = arith.constant 0 : index
    %3 = vector.load %arg2[%c0_2, %c0_3, %c0_4] : memref<9x32x64xbf16, #tpu.memory_space<vmem>>, vector<1x32x64xbf16>
    %4 = vector.shape_cast %3 : vector<1x32x64xbf16> to vector<32x64xbf16>
    %cst_5 = arith.constant dense<0.000000e+00> : vector<41x64xf32>
    %5 = tpu.matmul %2, %4, %cst_5 {dimension_numbers = #tpu.dot_dimension_numbers<[1], [0], [0], [1], [0, 0, 1, 1], [], []>} : vector<41x32xbf16>, vector<32x64xbf16>, vector<41x64xf32> -> vector<41x64xf32>
    %6 = arith.addf %0, %5 : vector<41x64xf32>
    %c0_6 = arith.constant 0 : index
    %c2 = arith.constant 2 : index
    %c0_7 = arith.constant 0 : index
    %7 = vector.load %arg1[%c0_6, %c2, %c0_7] : memref<1x81x32xbf16, #tpu.memory_space<vmem>>, vector<1x41x32xbf16>
    %8 = vector.shape_cast %7 : vector<1x41x32xbf16> to vector<41x32xbf16>
    %c1 = arith.constant 1 : index
    %c0_8 = arith.constant 0 : index
    %c0_9 = arith.constant 0 : index
    %9 = vector.load %arg2[%c1, %c0_8, %c0_9] : memref<9x32x64xbf16, #tpu.memory_space<vmem>>, vector<1x32x64xbf16>
    %10 = vector.shape_cast %9 : vector<1x32x64xbf16> to vector<32x64xbf16>
    %cst_10 = arith.constant dense<0.000000e+00> : vector<41x64xf32>
    %11 = tpu.matmul %8, %10, %cst_10 {dimension_numbers = #tpu.dot_dimension_numbers<[1], [0], [0], [1], [0, 0, 1, 1], [], []>} : vector<41x32xbf16>, vector<32x64xbf16>, vector<41x64xf32> -> vector<41x64xf32>
    %12 = arith.addf %6, %11 : vector<41x64xf32>
    %c0_11 = arith.constant 0 : index
    %c4 = arith.constant 4 : index
    %c0_12 = arith.constant 0 : index
    %13 = vector.load %arg1[%c0_11, %c4, %c0_12] : memref<1x81x32xbf16, #tpu.memory_space<vmem>>, vector<1x41x32xbf16>
    %14 = vector.shape_cast %13 : vector<1x41x32xbf16> to vector<41x32xbf16>
    %c2_13 = arith.constant 2 : index
    %c0_14 = arith.constant 0 : index
    %c0_15 = arith.constant 0 : index
    %15 = vector.load %arg2[%c2_13, %c0_14, %c0_15] : memref<9x32x64xbf16, #tpu.memory_space<vmem>>, vector<1x32x64xbf16>
    %16 = vector.shape_cast %15 : vector<1x32x64xbf16> to vector<32x64xbf16>
    %cst_16 = arith.constant dense<0.000000e+00> : vector<41x64xf32>
    %17 = tpu.matmul %14, %16, %cst_16 {dimension_numbers = #tpu.dot_dimension_numbers<[1], [0], [0], [1], [0, 0, 1, 1], [], []>} : vector<41x32xbf16>, vector<32x64xbf16>, vector<41x64xf32> -> vector<41x64xf32>
    %18 = arith.addf %12, %17 : vector<41x64xf32>
    %c0_17 = arith.constant 0 : index
    %c18 = arith.constant 18 : index
    %c0_18 = arith.constant 0 : index
    %19 = vector.load %arg1[%c0_17, %c18, %c0_18] : memref<1x81x32xbf16, #tpu.memory_space<vmem>>, vector<1x41x32xbf16>
    %20 = vector.shape_cast %19 : vector<1x41x32xbf16> to vector<41x32xbf16>
    %c3 = arith.constant 3 : index
    %c0_19 = arith.constant 0 : index
    %c0_20 = arith.constant 0 : index
    %21 = vector.load %arg2[%c3, %c0_19, %c0_20] : memref<9x32x64xbf16, #tpu.memory_space<vmem>>, vector<1x32x64xbf16>
    %22 = vector.shape_cast %21 : vector<1x32x64xbf16> to vector<32x64xbf16>
    %cst_21 = arith.constant dense<0.000000e+00> : vector<41x64xf32>
    %23 = tpu.matmul %20, %22, %cst_21 {dimension_numbers = #tpu.dot_dimension_numbers<[1], [0], [0], [1], [0, 0, 1, 1], [], []>} : vector<41x32xbf16>, vector<32x64xbf16>, vector<41x64xf32> -> vector<41x64xf32>
    %24 = arith.addf %18, %23 : vector<41x64xf32>
    %c0_22 = arith.constant 0 : index
    %c20 = arith.constant 20 : index
    %c0_23 = arith.constant 0 : index
    %25 = vector.load %arg1[%c0_22, %c20, %c0_23] : memref<1x81x32xbf16, #tpu.memory_space<vmem>>, vector<1x41x32xbf16>
    %26 = vector.shape_cast %25 : vector<1x41x32xbf16> to vector<41x32xbf16>
    %c4_24 = arith.constant 4 : index
    %c0_25 = arith.constant 0 : index
    %c0_26 = arith.constant 0 : index
    %27 = vector.load %arg2[%c4_24, %c0_25, %c0_26] : memref<9x32x64xbf16, #tpu.memory_space<vmem>>, vector<1x32x64xbf16>
    %28 = vector.shape_cast %27 : vector<1x32x64xbf16> to vector<32x64xbf16>
    %cst_27 = arith.constant dense<0.000000e+00> : vector<41x64xf32>
    %29 = tpu.matmul %26, %28, %cst_27 {dimension_numbers = #tpu.dot_dimension_numbers<[1], [0], [0], [1], [0, 0, 1, 1], [], []>} : vector<41x32xbf16>, vector<32x64xbf16>, vector<41x64xf32> -> vector<41x64xf32>
    %30 = arith.addf %24, %29 : vector<41x64xf32>
    %c0_28 = arith.constant 0 : index
    %c22 = arith.constant 22 : index
    %c0_29 = arith.constant 0 : index
    %31 = vector.load %arg1[%c0_28, %c22, %c0_29] : memref<1x81x32xbf16, #tpu.memory_space<vmem>>, vector<1x41x32xbf16>
    %32 = vector.shape_cast %31 : vector<1x41x32xbf16> to vector<41x32xbf16>
    %c5 = arith.constant 5 : index
    %c0_30 = arith.constant 0 : index
    %c0_31 = arith.constant 0 : index
    %33 = vector.load %arg2[%c5, %c0_30, %c0_31] : memref<9x32x64xbf16, #tpu.memory_space<vmem>>, vector<1x32x64xbf16>
    %34 = vector.shape_cast %33 : vector<1x32x64xbf16> to vector<32x64xbf16>
    %cst_32 = arith.constant dense<0.000000e+00> : vector<41x64xf32>
    %35 = tpu.matmul %32, %34, %cst_32 {dimension_numbers = #tpu.dot_dimension_numbers<[1], [0], [0], [1], [0, 0, 1, 1], [], []>} : vector<41x32xbf16>, vector<32x64xbf16>, vector<41x64xf32> -> vector<41x64xf32>
    %36 = arith.addf %30, %35 : vector<41x64xf32>
    %c0_33 = arith.constant 0 : index
    %c36 = arith.constant 36 : index
    %c0_34 = arith.constant 0 : index
    %37 = vector.load %arg1[%c0_33, %c36, %c0_34] : memref<1x81x32xbf16, #tpu.memory_space<vmem>>, vector<1x41x32xbf16>
    %38 = vector.shape_cast %37 : vector<1x41x32xbf16> to vector<41x32xbf16>
    %c6 = arith.constant 6 : index
    %c0_35 = arith.constant 0 : index
    %c0_36 = arith.constant 0 : index
    %39 = vector.load %arg2[%c6, %c0_35, %c0_36] : memref<9x32x64xbf16, #tpu.memory_space<vmem>>, vector<1x32x64xbf16>
    %40 = vector.shape_cast %39 : vector<1x32x64xbf16> to vector<32x64xbf16>
    %cst_37 = arith.constant dense<0.000000e+00> : vector<41x64xf32>
    %41 = tpu.matmul %38, %40, %cst_37 {dimension_numbers = #tpu.dot_dimension_numbers<[1], [0], [0], [1], [0, 0, 1, 1], [], []>} : vector<41x32xbf16>, vector<32x64xbf16>, vector<41x64xf32> -> vector<41x64xf32>
    %42 = arith.addf %36, %41 : vector<41x64xf32>
    %c0_38 = arith.constant 0 : index
    %c38 = arith.constant 38 : index
    %c0_39 = arith.constant 0 : index
    %43 = vector.load %arg1[%c0_38, %c38, %c0_39] : memref<1x81x32xbf16, #tpu.memory_space<vmem>>, vector<1x41x32xbf16>
    %44 = vector.shape_cast %43 : vector<1x41x32xbf16> to vector<41x32xbf16>
    %c7 = arith.constant 7 : index
    %c0_40 = arith.constant 0 : index
    %c0_41 = arith.constant 0 : index
    %45 = vector.load %arg2[%c7, %c0_40, %c0_41] : memref<9x32x64xbf16, #tpu.memory_space<vmem>>, vector<1x32x64xbf16>
    %46 = vector.shape_cast %45 : vector<1x32x64xbf16> to vector<32x64xbf16>
    %cst_42 = arith.constant dense<0.000000e+00> : vector<41x64xf32>
    %47 = tpu.matmul %44, %46, %cst_42 {dimension_numbers = #tpu.dot_dimension_numbers<[1], [0], [0], [1], [0, 0, 1, 1], [], []>} : vector<41x32xbf16>, vector<32x64xbf16>, vector<41x64xf32> -> vector<41x64xf32>
    %48 = arith.addf %42, %47 : vector<41x64xf32>
    %c0_43 = arith.constant 0 : index
    %c40 = arith.constant 40 : index
    %c0_44 = arith.constant 0 : index
    %49 = vector.load %arg1[%c0_43, %c40, %c0_44] : memref<1x81x32xbf16, #tpu.memory_space<vmem>>, vector<1x41x32xbf16>
    %50 = vector.shape_cast %49 : vector<1x41x32xbf16> to vector<41x32xbf16>
    %c8 = arith.constant 8 : index
    %c0_45 = arith.constant 0 : index
    %c0_46 = arith.constant 0 : index
    %51 = vector.load %arg2[%c8, %c0_45, %c0_46] : memref<9x32x64xbf16, #tpu.memory_space<vmem>>, vector<1x32x64xbf16>
    %52 = vector.shape_cast %51 : vector<1x32x64xbf16> to vector<32x64xbf16>
    %cst_47 = arith.constant dense<0.000000e+00> : vector<41x64xf32>
    %53 = tpu.matmul %50, %52, %cst_47 {dimension_numbers = #tpu.dot_dimension_numbers<[1], [0], [0], [1], [0, 0, 1, 1], [], []>} : vector<41x32xbf16>, vector<32x64xbf16>, vector<41x64xf32> -> vector<41x64xf32>
    %54 = arith.addf %48, %53 : vector<41x64xf32>
    %c0_48 = arith.constant 0 : index
    %c0_49 = arith.constant 0 : index
    %55 = vector.load %arg3[%c0_48, %c0_49] : memref<1x64xf32, #tpu.memory_space<vmem>>, vector<1x64xf32>
    %56 = vector.broadcast %55 : vector<1x64xf32> to vector<41x64xf32>
    %57 = arith.mulf %54, %56 : vector<41x64xf32>
    %c0_50 = arith.constant 0 : index
    %c0_51 = arith.constant 0 : index
    %58 = vector.load %arg4[%c0_50, %c0_51] : memref<1x64xf32, #tpu.memory_space<vmem>>, vector<1x64xf32>
    %59 = vector.broadcast %58 : vector<1x64xf32> to vector<41x64xf32>
    %60 = arith.addf %57, %59 : vector<41x64xf32>
    %cst_52 = arith.constant 0.000000e+00 : f32
    %61 = vector.broadcast %cst_52 : f32 to vector<41x64xf32>
    %62 = arith.maximumf %60, %61 : vector<41x64xf32>
    %c0_53 = arith.constant 0 : index
    %c0_54 = arith.constant 0 : index
    %c0_55 = arith.constant 0 : index
    %63 = vector.load %arg5[%c0_53, %c0_54, %c0_55] : memref<1x41x64xf32, #tpu.memory_space<vmem>>, vector<1x41x64xf32>
    %64 = vector.shape_cast %63 : vector<1x41x64xf32> to vector<41x64xf32>
    %65 = vector.shape_cast %62 : vector<41x64xf32> to vector<1x41x64xf32>
    tpu.vector_store %arg5[%c0_53, %c0_54, %c0_55], %65 {strides = array<i32>} : memref<1x41x64xf32, #tpu.memory_space<vmem>>, vector<1x41x64xf32>,
    return
  }
  func.func @transform_0(%arg0: i32) -> (i32, i32, i32) {
    %c0_i32 = arith.constant 0 : i32
    %c0_i32_0 = arith.constant 0 : i32
    %c0_i32_1 = arith.constant 0 : i32
    return %arg0, %c0_i32, %c0_i32_0 : i32, i32, i32
  }
  func.func @transform_1(%arg0: i32) -> (i32, i32, i32) {
    %c0_i32 = arith.constant 0 : i32
    %c0_i32_0 = arith.constant 0 : i32
    %c0_i32_1 = arith.constant 0 : i32
    %c0_i32_2 = arith.constant 0 : i32
    return %c0_i32, %c0_i32_0, %c0_i32_1 : i32, i32, i32
  }
  func.func @transform_2(%arg0: i32) -> (i32, i32) {
    %c0_i32 = arith.constant 0 : i32
    %c0_i32_0 = arith.constant 0 : i32
    %c0_i32_1 = arith.constant 0 : i32
    return %c0_i32, %c0_i32_0 : i32, i32
  }
  func.func @transform_3(%arg0: i32) -> (i32, i32) {
    %c0_i32 = arith.constant 0 : i32
    %c0_i32_0 = arith.constant 0 : i32
    %c0_i32_1 = arith.constant 0 : i32
    return %c0_i32, %c0_i32_0 : i32, i32
  }
  func.func @transform_4(%arg0: i32) -> (i32, i32, i32) {
    %c0_i32 = arith.constant 0 : i32
    %c0_i32_0 = arith.constant 0 : i32
    %c0_i32_1 = arith.constant 0 : i32
    return %arg0, %c0_i32, %c0_i32_0 : i32, i32, i32
  }
}

module attributes {stable_mosaic.version = 11 : i64} {
  func.func @_conv3x3_kernel(%arg0: i32, %arg1: memref<1x169x64xbf16, #tpu.memory_space<vmem>>, %arg2: memref<9x64x128xbf16, #tpu.memory_space<vmem>>, %arg3: memref<1x128xf32, #tpu.memory_space<vmem>>, %arg4: memref<1x128xf32, #tpu.memory_space<vmem>>, %arg5: memref<1x57x128xf32, #tpu.memory_space<vmem>>) attributes {dimension_semantics = [#tpu.dimension_semantics<parallel>], iteration_bounds = array<i64: 2>, scalar_prefetch = 0 : i64, scratch_operands = 0 : i64, tpu.core_type = #tpu.core_type<tc>, window_params = [{transform_indices = @transform_0, window_bounds = array<i64: 1, 169, 64>}, {pipeline_mode = #tpu.pipeline_mode<synchronous>, transform_indices = @transform_1, window_bounds = array<i64: 9, 64, 128>}, {pipeline_mode = #tpu.pipeline_mode<synchronous>, transform_indices = @transform_2, window_bounds = array<i64: 1, 128>}, {pipeline_mode = #tpu.pipeline_mode<synchronous>, transform_indices = @transform_3, window_bounds = array<i64: 1, 128>}, {transform_indices = @transform_4, window_bounds = array<i64: 1, 57, 128>}]} {
    %cst = arith.constant 0.000000e+00 : f32
    %0 = vector.broadcast %cst : f32 to vector<57x128xf32>
    %c0 = arith.constant 0 : index
    %c0_0 = arith.constant 0 : index
    %c0_1 = arith.constant 0 : index
    %1 = vector.load %arg1[%c0, %c0_0, %c0_1] : memref<1x169x64xbf16, #tpu.memory_space<vmem>>, vector<1x57x64xbf16>
    %2 = vector.shape_cast %1 : vector<1x57x64xbf16> to vector<57x64xbf16>
    %c0_2 = arith.constant 0 : index
    %c0_3 = arith.constant 0 : index
    %c0_4 = arith.constant 0 : index
    %3 = vector.load %arg2[%c0_2, %c0_3, %c0_4] : memref<9x64x128xbf16, #tpu.memory_space<vmem>>, vector<1x64x128xbf16>
    %4 = vector.shape_cast %3 : vector<1x64x128xbf16> to vector<64x128xbf16>
    %cst_5 = arith.constant dense<0.000000e+00> : vector<57x128xf32>
    %5 = tpu.matmul %2, %4, %cst_5 {dimension_numbers = #tpu.dot_dimension_numbers<[1], [0], [0], [1], [0, 0, 1, 1], [], []>} : vector<57x64xbf16>, vector<64x128xbf16>, vector<57x128xf32> -> vector<57x128xf32>
    %6 = arith.addf %0, %5 : vector<57x128xf32>
    %c0_6 = arith.constant 0 : index
    %c4 = arith.constant 4 : index
    %c0_7 = arith.constant 0 : index
    %7 = vector.load %arg1[%c0_6, %c4, %c0_7] : memref<1x169x64xbf16, #tpu.memory_space<vmem>>, vector<1x57x64xbf16>
    %8 = vector.shape_cast %7 : vector<1x57x64xbf16> to vector<57x64xbf16>
    %c1 = arith.constant 1 : index
    %c0_8 = arith.constant 0 : index
    %c0_9 = arith.constant 0 : index
    %9 = vector.load %arg2[%c1, %c0_8, %c0_9] : memref<9x64x128xbf16, #tpu.memory_space<vmem>>, vector<1x64x128xbf16>
    %10 = vector.shape_cast %9 : vector<1x64x128xbf16> to vector<64x128xbf16>
    %cst_10 = arith.constant dense<0.000000e+00> : vector<57x128xf32>
    %11 = tpu.matmul %8, %10, %cst_10 {dimension_numbers = #tpu.dot_dimension_numbers<[1], [0], [0], [1], [0, 0, 1, 1], [], []>} : vector<57x64xbf16>, vector<64x128xbf16>, vector<57x128xf32> -> vector<57x128xf32>
    %12 = arith.addf %6, %11 : vector<57x128xf32>
    %c0_11 = arith.constant 0 : index
    %c8 = arith.constant 8 : index
    %c0_12 = arith.constant 0 : index
    %13 = vector.load %arg1[%c0_11, %c8, %c0_12] : memref<1x169x64xbf16, #tpu.memory_space<vmem>>, vector<1x57x64xbf16>
    %14 = vector.shape_cast %13 : vector<1x57x64xbf16> to vector<57x64xbf16>
    %c2 = arith.constant 2 : index
    %c0_13 = arith.constant 0 : index
    %c0_14 = arith.constant 0 : index
    %15 = vector.load %arg2[%c2, %c0_13, %c0_14] : memref<9x64x128xbf16, #tpu.memory_space<vmem>>, vector<1x64x128xbf16>
    %16 = vector.shape_cast %15 : vector<1x64x128xbf16> to vector<64x128xbf16>
    %cst_15 = arith.constant dense<0.000000e+00> : vector<57x128xf32>
    %17 = tpu.matmul %14, %16, %cst_15 {dimension_numbers = #tpu.dot_dimension_numbers<[1], [0], [0], [1], [0, 0, 1, 1], [], []>} : vector<57x64xbf16>, vector<64x128xbf16>, vector<57x128xf32> -> vector<57x128xf32>
    %18 = arith.addf %12, %17 : vector<57x128xf32>
    %c0_16 = arith.constant 0 : index
    %c52 = arith.constant 52 : index
    %c0_17 = arith.constant 0 : index
    %19 = vector.load %arg1[%c0_16, %c52, %c0_17] : memref<1x169x64xbf16, #tpu.memory_space<vmem>>, vector<1x57x64xbf16>
    %20 = vector.shape_cast %19 : vector<1x57x64xbf16> to vector<57x64xbf16>
    %c3 = arith.constant 3 : index
    %c0_18 = arith.constant 0 : index
    %c0_19 = arith.constant 0 : index
    %21 = vector.load %arg2[%c3, %c0_18, %c0_19] : memref<9x64x128xbf16, #tpu.memory_space<vmem>>, vector<1x64x128xbf16>
    %22 = vector.shape_cast %21 : vector<1x64x128xbf16> to vector<64x128xbf16>
    %cst_20 = arith.constant dense<0.000000e+00> : vector<57x128xf32>
    %23 = tpu.matmul %20, %22, %cst_20 {dimension_numbers = #tpu.dot_dimension_numbers<[1], [0], [0], [1], [0, 0, 1, 1], [], []>} : vector<57x64xbf16>, vector<64x128xbf16>, vector<57x128xf32> -> vector<57x128xf32>
    %24 = arith.addf %18, %23 : vector<57x128xf32>
    %c0_21 = arith.constant 0 : index
    %c56 = arith.constant 56 : index
    %c0_22 = arith.constant 0 : index
    %25 = vector.load %arg1[%c0_21, %c56, %c0_22] : memref<1x169x64xbf16, #tpu.memory_space<vmem>>, vector<1x57x64xbf16>
    %26 = vector.shape_cast %25 : vector<1x57x64xbf16> to vector<57x64xbf16>
    %c4_23 = arith.constant 4 : index
    %c0_24 = arith.constant 0 : index
    %c0_25 = arith.constant 0 : index
    %27 = vector.load %arg2[%c4_23, %c0_24, %c0_25] : memref<9x64x128xbf16, #tpu.memory_space<vmem>>, vector<1x64x128xbf16>
    %28 = vector.shape_cast %27 : vector<1x64x128xbf16> to vector<64x128xbf16>
    %cst_26 = arith.constant dense<0.000000e+00> : vector<57x128xf32>
    %29 = tpu.matmul %26, %28, %cst_26 {dimension_numbers = #tpu.dot_dimension_numbers<[1], [0], [0], [1], [0, 0, 1, 1], [], []>} : vector<57x64xbf16>, vector<64x128xbf16>, vector<57x128xf32> -> vector<57x128xf32>
    %30 = arith.addf %24, %29 : vector<57x128xf32>
    %c0_27 = arith.constant 0 : index
    %c60 = arith.constant 60 : index
    %c0_28 = arith.constant 0 : index
    %31 = vector.load %arg1[%c0_27, %c60, %c0_28] : memref<1x169x64xbf16, #tpu.memory_space<vmem>>, vector<1x57x64xbf16>
    %32 = vector.shape_cast %31 : vector<1x57x64xbf16> to vector<57x64xbf16>
    %c5 = arith.constant 5 : index
    %c0_29 = arith.constant 0 : index
    %c0_30 = arith.constant 0 : index
    %33 = vector.load %arg2[%c5, %c0_29, %c0_30] : memref<9x64x128xbf16, #tpu.memory_space<vmem>>, vector<1x64x128xbf16>
    %34 = vector.shape_cast %33 : vector<1x64x128xbf16> to vector<64x128xbf16>
    %cst_31 = arith.constant dense<0.000000e+00> : vector<57x128xf32>
    %35 = tpu.matmul %32, %34, %cst_31 {dimension_numbers = #tpu.dot_dimension_numbers<[1], [0], [0], [1], [0, 0, 1, 1], [], []>} : vector<57x64xbf16>, vector<64x128xbf16>, vector<57x128xf32> -> vector<57x128xf32>
    %36 = arith.addf %30, %35 : vector<57x128xf32>
    %c0_32 = arith.constant 0 : index
    %c104 = arith.constant 104 : index
    %c0_33 = arith.constant 0 : index
    %37 = vector.load %arg1[%c0_32, %c104, %c0_33] : memref<1x169x64xbf16, #tpu.memory_space<vmem>>, vector<1x57x64xbf16>
    %38 = vector.shape_cast %37 : vector<1x57x64xbf16> to vector<57x64xbf16>
    %c6 = arith.constant 6 : index
    %c0_34 = arith.constant 0 : index
    %c0_35 = arith.constant 0 : index
    %39 = vector.load %arg2[%c6, %c0_34, %c0_35] : memref<9x64x128xbf16, #tpu.memory_space<vmem>>, vector<1x64x128xbf16>
    %40 = vector.shape_cast %39 : vector<1x64x128xbf16> to vector<64x128xbf16>
    %cst_36 = arith.constant dense<0.000000e+00> : vector<57x128xf32>
    %41 = tpu.matmul %38, %40, %cst_36 {dimension_numbers = #tpu.dot_dimension_numbers<[1], [0], [0], [1], [0, 0, 1, 1], [], []>} : vector<57x64xbf16>, vector<64x128xbf16>, vector<57x128xf32> -> vector<57x128xf32>
    %42 = arith.addf %36, %41 : vector<57x128xf32>
    %c0_37 = arith.constant 0 : index
    %c108 = arith.constant 108 : index
    %c0_38 = arith.constant 0 : index
    %43 = vector.load %arg1[%c0_37, %c108, %c0_38] : memref<1x169x64xbf16, #tpu.memory_space<vmem>>, vector<1x57x64xbf16>
    %44 = vector.shape_cast %43 : vector<1x57x64xbf16> to vector<57x64xbf16>
    %c7 = arith.constant 7 : index
    %c0_39 = arith.constant 0 : index
    %c0_40 = arith.constant 0 : index
    %45 = vector.load %arg2[%c7, %c0_39, %c0_40] : memref<9x64x128xbf16, #tpu.memory_space<vmem>>, vector<1x64x128xbf16>
    %46 = vector.shape_cast %45 : vector<1x64x128xbf16> to vector<64x128xbf16>
    %cst_41 = arith.constant dense<0.000000e+00> : vector<57x128xf32>
    %47 = tpu.matmul %44, %46, %cst_41 {dimension_numbers = #tpu.dot_dimension_numbers<[1], [0], [0], [1], [0, 0, 1, 1], [], []>} : vector<57x64xbf16>, vector<64x128xbf16>, vector<57x128xf32> -> vector<57x128xf32>
    %48 = arith.addf %42, %47 : vector<57x128xf32>
    %c0_42 = arith.constant 0 : index
    %c112 = arith.constant 112 : index
    %c0_43 = arith.constant 0 : index
    %49 = vector.load %arg1[%c0_42, %c112, %c0_43] : memref<1x169x64xbf16, #tpu.memory_space<vmem>>, vector<1x57x64xbf16>
    %50 = vector.shape_cast %49 : vector<1x57x64xbf16> to vector<57x64xbf16>
    %c8_44 = arith.constant 8 : index
    %c0_45 = arith.constant 0 : index
    %c0_46 = arith.constant 0 : index
    %51 = vector.load %arg2[%c8_44, %c0_45, %c0_46] : memref<9x64x128xbf16, #tpu.memory_space<vmem>>, vector<1x64x128xbf16>
    %52 = vector.shape_cast %51 : vector<1x64x128xbf16> to vector<64x128xbf16>
    %cst_47 = arith.constant dense<0.000000e+00> : vector<57x128xf32>
    %53 = tpu.matmul %50, %52, %cst_47 {dimension_numbers = #tpu.dot_dimension_numbers<[1], [0], [0], [1], [0, 0, 1, 1], [], []>} : vector<57x64xbf16>, vector<64x128xbf16>, vector<57x128xf32> -> vector<57x128xf32>
    %54 = arith.addf %48, %53 : vector<57x128xf32>
    %c0_48 = arith.constant 0 : index
    %c0_49 = arith.constant 0 : index
    %55 = vector.load %arg3[%c0_48, %c0_49] : memref<1x128xf32, #tpu.memory_space<vmem>>, vector<1x128xf32>
    %56 = vector.broadcast %55 : vector<1x128xf32> to vector<57x128xf32>
    %57 = arith.mulf %54, %56 : vector<57x128xf32>
    %c0_50 = arith.constant 0 : index
    %c0_51 = arith.constant 0 : index
    %58 = vector.load %arg4[%c0_50, %c0_51] : memref<1x128xf32, #tpu.memory_space<vmem>>, vector<1x128xf32>
    %59 = vector.broadcast %58 : vector<1x128xf32> to vector<57x128xf32>
    %60 = arith.addf %57, %59 : vector<57x128xf32>
    %cst_52 = arith.constant 0.000000e+00 : f32
    %61 = vector.broadcast %cst_52 : f32 to vector<57x128xf32>
    %62 = arith.maximumf %60, %61 : vector<57x128xf32>
    %c0_53 = arith.constant 0 : index
    %c0_54 = arith.constant 0 : index
    %c0_55 = arith.constant 0 : index
    %63 = vector.load %arg5[%c0_53, %c0_54, %c0_55] : memref<1x57x128xf32, #tpu.memory_space<vmem>>, vector<1x57x128xf32>
    %64 = vector.shape_cast %63 : vector<1x57x128xf32> to vector<57x128xf32>
    %65 = vector.shape_cast %62 : vector<57x128xf32> to vector<1x57x128xf32>
    tpu.vector_store %arg5[%c0_53, %c0_54, %c0_55], %65 {strides = array<i32>} : memref<1x57x128xf32, #tpu.memory_space<vmem>>, vector<1x57x128xf32>,
    return
  }
  func.func @transform_0(%arg0: i32) -> (i32, i32, i32) {
    %c0_i32 = arith.constant 0 : i32
    %c0_i32_0 = arith.constant 0 : i32
    %c0_i32_1 = arith.constant 0 : i32
    return %arg0, %c0_i32, %c0_i32_0 : i32, i32, i32
  }
  func.func @transform_1(%arg0: i32) -> (i32, i32, i32) {
    %c0_i32 = arith.constant 0 : i32
    %c0_i32_0 = arith.constant 0 : i32
    %c0_i32_1 = arith.constant 0 : i32
    %c0_i32_2 = arith.constant 0 : i32
    return %c0_i32, %c0_i32_0, %c0_i32_1 : i32, i32, i32
  }
  func.func @transform_2(%arg0: i32) -> (i32, i32) {
    %c0_i32 = arith.constant 0 : i32
    %c0_i32_0 = arith.constant 0 : i32
    %c0_i32_1 = arith.constant 0 : i32
    return %c0_i32, %c0_i32_0 : i32, i32
  }
  func.func @transform_3(%arg0: i32) -> (i32, i32) {
    %c0_i32 = arith.constant 0 : i32
    %c0_i32_0 = arith.constant 0 : i32
    %c0_i32_1 = arith.constant 0 : i32
    return %c0_i32, %c0_i32_0 : i32, i32
  }
  func.func @transform_4(%arg0: i32) -> (i32, i32, i32) {
    %c0_i32 = arith.constant 0 : i32
    %c0_i32_0 = arith.constant 0 : i32
    %c0_i32_1 = arith.constant 0 : i32
    return %arg0, %c0_i32, %c0_i32_0 : i32, i32, i32
  }
}

module attributes {stable_mosaic.version = 11 : i64} {
  func.func @_ppm_kernel(%arg0: i32, %arg1: memref<1x72x128xbf16, #tpu.memory_space<vmem>>, %arg2: memref<1x128x32xbf16, #tpu.memory_space<vmem>>, %arg3: memref<1x1x32xf32, #tpu.memory_space<vmem>>, %arg4: memref<1x1x32xf32, #tpu.memory_space<vmem>>, %arg5: memref<1x72x32xf32, #tpu.memory_space<vmem>>) attributes {dimension_semantics = [#tpu.dimension_semantics<parallel>], iteration_bounds = array<i64: 4>, scalar_prefetch = 0 : i64, scratch_operands = 0 : i64, tpu.core_type = #tpu.core_type<tc>, window_params = [{transform_indices = @transform_0, window_bounds = array<i64: 1, 72, 128>}, {transform_indices = @transform_1, window_bounds = array<i64: 1, 128, 32>}, {transform_indices = @transform_2, window_bounds = array<i64: 1, 1, 32>}, {transform_indices = @transform_3, window_bounds = array<i64: 1, 1, 32>}, {transform_indices = @transform_4, window_bounds = array<i64: 1, 72, 32>}]} {
    %c0 = arith.constant 0 : index
    %c0_0 = arith.constant 0 : index
    %c0_1 = arith.constant 0 : index
    %0 = vector.load %arg1[%c0, %c0_0, %c0_1] : memref<1x72x128xbf16, #tpu.memory_space<vmem>>, vector<1x72x128xbf16>
    %1 = vector.shape_cast %0 : vector<1x72x128xbf16> to vector<72x128xbf16>
    %c0_2 = arith.constant 0 : index
    %c0_3 = arith.constant 0 : index
    %c0_4 = arith.constant 0 : index
    %2 = vector.load %arg2[%c0_2, %c0_3, %c0_4] : memref<1x128x32xbf16, #tpu.memory_space<vmem>>, vector<1x128x32xbf16>
    %3 = vector.shape_cast %2 : vector<1x128x32xbf16> to vector<128x32xbf16>
    %cst = arith.constant dense<0.000000e+00> : vector<72x32xf32>
    %4 = tpu.matmul %1, %3, %cst {dimension_numbers = #tpu.dot_dimension_numbers<[1], [0], [0], [1], [0, 0, 1, 1], [], []>} : vector<72x128xbf16>, vector<128x32xbf16>, vector<72x32xf32> -> vector<72x32xf32>
    %c0_5 = arith.constant 0 : index
    %c0_6 = arith.constant 0 : index
    %c0_7 = arith.constant 0 : index
    %5 = vector.load %arg3[%c0_5, %c0_6, %c0_7] : memref<1x1x32xf32, #tpu.memory_space<vmem>>, vector<1x1x32xf32>
    %6 = vector.shape_cast %5 : vector<1x1x32xf32> to vector<1x32xf32>
    %7 = vector.broadcast %6 : vector<1x32xf32> to vector<72x32xf32>
    %8 = arith.mulf %4, %7 : vector<72x32xf32>
    %c0_8 = arith.constant 0 : index
    %c0_9 = arith.constant 0 : index
    %c0_10 = arith.constant 0 : index
    %9 = vector.load %arg4[%c0_8, %c0_9, %c0_10] : memref<1x1x32xf32, #tpu.memory_space<vmem>>, vector<1x1x32xf32>
    %10 = vector.shape_cast %9 : vector<1x1x32xf32> to vector<1x32xf32>
    %11 = vector.broadcast %10 : vector<1x32xf32> to vector<72x32xf32>
    %12 = arith.addf %8, %11 : vector<72x32xf32>
    %cst_11 = arith.constant 0.000000e+00 : f32
    %13 = vector.broadcast %cst_11 : f32 to vector<72x32xf32>
    %14 = arith.maximumf %12, %13 : vector<72x32xf32>
    %c0_12 = arith.constant 0 : index
    %c0_13 = arith.constant 0 : index
    %c0_14 = arith.constant 0 : index
    %15 = vector.load %arg5[%c0_12, %c0_13, %c0_14] : memref<1x72x32xf32, #tpu.memory_space<vmem>>, vector<1x72x32xf32>
    %16 = vector.shape_cast %15 : vector<1x72x32xf32> to vector<72x32xf32>
    %17 = vector.shape_cast %14 : vector<72x32xf32> to vector<1x72x32xf32>
    tpu.vector_store %arg5[%c0_12, %c0_13, %c0_14], %17 {strides = array<i32>} : memref<1x72x32xf32, #tpu.memory_space<vmem>>, vector<1x72x32xf32>,
    return
  }
  func.func @transform_0(%arg0: i32) -> (i32, i32, i32) {
    %c0_i32 = arith.constant 0 : i32
    %c0_i32_0 = arith.constant 0 : i32
    %c0_i32_1 = arith.constant 0 : i32
    return %arg0, %c0_i32, %c0_i32_0 : i32, i32, i32
  }
  func.func @transform_1(%arg0: i32) -> (i32, i32, i32) {
    %c0_i32 = arith.constant 0 : i32
    %c0_i32_0 = arith.constant 0 : i32
    %c0_i32_1 = arith.constant 0 : i32
    return %arg0, %c0_i32, %c0_i32_0 : i32, i32, i32
  }
  func.func @transform_2(%arg0: i32) -> (i32, i32, i32) {
    %c0_i32 = arith.constant 0 : i32
    %c0_i32_0 = arith.constant 0 : i32
    %c0_i32_1 = arith.constant 0 : i32
    return %arg0, %c0_i32, %c0_i32_0 : i32, i32, i32
  }
  func.func @transform_3(%arg0: i32) -> (i32, i32, i32) {
    %c0_i32 = arith.constant 0 : i32
    %c0_i32_0 = arith.constant 0 : i32
    %c0_i32_1 = arith.constant 0 : i32
    return %arg0, %c0_i32, %c0_i32_0 : i32, i32, i32
  }
  func.func @transform_4(%arg0: i32) -> (i32, i32, i32) {
    %c0_i32 = arith.constant 0 : i32
    %c0_i32_0 = arith.constant 0 : i32
    %c0_i32_1 = arith.constant 0 : i32
    return %arg0, %c0_i32, %c0_i32_0 : i32, i32, i32
  }
}

module attributes {stable_mosaic.version = 11 : i64} {
  func.func @_conv3x3_kernel(%arg0: i32, %arg1: memref<1x49x256xbf16, #tpu.memory_space<vmem>>, %arg2: memref<9x256x128xbf16, #tpu.memory_space<vmem>>, %arg3: memref<1x128xf32, #tpu.memory_space<vmem>>, %arg4: memref<1x128xf32, #tpu.memory_space<vmem>>, %arg5: memref<1x33x128xf32, #tpu.memory_space<vmem>>) attributes {dimension_semantics = [#tpu.dimension_semantics<parallel>], iteration_bounds = array<i64: 2>, scalar_prefetch = 0 : i64, scratch_operands = 0 : i64, tpu.core_type = #tpu.core_type<tc>, window_params = [{transform_indices = @transform_0, window_bounds = array<i64: 1, 49, 256>}, {pipeline_mode = #tpu.pipeline_mode<synchronous>, transform_indices = @transform_1, window_bounds = array<i64: 9, 256, 128>}, {pipeline_mode = #tpu.pipeline_mode<synchronous>, transform_indices = @transform_2, window_bounds = array<i64: 1, 128>}, {pipeline_mode = #tpu.pipeline_mode<synchronous>, transform_indices = @transform_3, window_bounds = array<i64: 1, 128>}, {transform_indices = @transform_4, window_bounds = array<i64: 1, 33, 128>}]} {
    %cst = arith.constant 0.000000e+00 : f32
    %0 = vector.broadcast %cst : f32 to vector<33x128xf32>
    %c0 = arith.constant 0 : index
    %c0_0 = arith.constant 0 : index
    %c0_1 = arith.constant 0 : index
    %1 = vector.load %arg1[%c0, %c0_0, %c0_1] : memref<1x49x256xbf16, #tpu.memory_space<vmem>>, vector<1x33x256xbf16>
    %2 = vector.shape_cast %1 : vector<1x33x256xbf16> to vector<33x256xbf16>
    %c0_2 = arith.constant 0 : index
    %c0_3 = arith.constant 0 : index
    %c0_4 = arith.constant 0 : index
    %3 = vector.load %arg2[%c0_2, %c0_3, %c0_4] : memref<9x256x128xbf16, #tpu.memory_space<vmem>>, vector<1x256x128xbf16>
    %4 = vector.shape_cast %3 : vector<1x256x128xbf16> to vector<256x128xbf16>
    %cst_5 = arith.constant dense<0.000000e+00> : vector<33x128xf32>
    %5 = tpu.matmul %2, %4, %cst_5 {dimension_numbers = #tpu.dot_dimension_numbers<[1], [0], [0], [1], [0, 0, 1, 1], [], []>} : vector<33x256xbf16>, vector<256x128xbf16>, vector<33x128xf32> -> vector<33x128xf32>
    %6 = arith.addf %0, %5 : vector<33x128xf32>
    %c0_6 = arith.constant 0 : index
    %c1 = arith.constant 1 : index
    %c0_7 = arith.constant 0 : index
    %7 = vector.load %arg1[%c0_6, %c1, %c0_7] : memref<1x49x256xbf16, #tpu.memory_space<vmem>>, vector<1x33x256xbf16>
    %8 = vector.shape_cast %7 : vector<1x33x256xbf16> to vector<33x256xbf16>
    %c1_8 = arith.constant 1 : index
    %c0_9 = arith.constant 0 : index
    %c0_10 = arith.constant 0 : index
    %9 = vector.load %arg2[%c1_8, %c0_9, %c0_10] : memref<9x256x128xbf16, #tpu.memory_space<vmem>>, vector<1x256x128xbf16>
    %10 = vector.shape_cast %9 : vector<1x256x128xbf16> to vector<256x128xbf16>
    %cst_11 = arith.constant dense<0.000000e+00> : vector<33x128xf32>
    %11 = tpu.matmul %8, %10, %cst_11 {dimension_numbers = #tpu.dot_dimension_numbers<[1], [0], [0], [1], [0, 0, 1, 1], [], []>} : vector<33x256xbf16>, vector<256x128xbf16>, vector<33x128xf32> -> vector<33x128xf32>
    %12 = arith.addf %6, %11 : vector<33x128xf32>
    %c0_12 = arith.constant 0 : index
    %c2 = arith.constant 2 : index
    %c0_13 = arith.constant 0 : index
    %13 = vector.load %arg1[%c0_12, %c2, %c0_13] : memref<1x49x256xbf16, #tpu.memory_space<vmem>>, vector<1x33x256xbf16>
    %14 = vector.shape_cast %13 : vector<1x33x256xbf16> to vector<33x256xbf16>
    %c2_14 = arith.constant 2 : index
    %c0_15 = arith.constant 0 : index
    %c0_16 = arith.constant 0 : index
    %15 = vector.load %arg2[%c2_14, %c0_15, %c0_16] : memref<9x256x128xbf16, #tpu.memory_space<vmem>>, vector<1x256x128xbf16>
    %16 = vector.shape_cast %15 : vector<1x256x128xbf16> to vector<256x128xbf16>
    %cst_17 = arith.constant dense<0.000000e+00> : vector<33x128xf32>
    %17 = tpu.matmul %14, %16, %cst_17 {dimension_numbers = #tpu.dot_dimension_numbers<[1], [0], [0], [1], [0, 0, 1, 1], [], []>} : vector<33x256xbf16>, vector<256x128xbf16>, vector<33x128xf32> -> vector<33x128xf32>
    %18 = arith.addf %12, %17 : vector<33x128xf32>
    %c0_18 = arith.constant 0 : index
    %c7 = arith.constant 7 : index
    %c0_19 = arith.constant 0 : index
    %19 = vector.load %arg1[%c0_18, %c7, %c0_19] : memref<1x49x256xbf16, #tpu.memory_space<vmem>>, vector<1x33x256xbf16>
    %20 = vector.shape_cast %19 : vector<1x33x256xbf16> to vector<33x256xbf16>
    %c3 = arith.constant 3 : index
    %c0_20 = arith.constant 0 : index
    %c0_21 = arith.constant 0 : index
    %21 = vector.load %arg2[%c3, %c0_20, %c0_21] : memref<9x256x128xbf16, #tpu.memory_space<vmem>>, vector<1x256x128xbf16>
    %22 = vector.shape_cast %21 : vector<1x256x128xbf16> to vector<256x128xbf16>
    %cst_22 = arith.constant dense<0.000000e+00> : vector<33x128xf32>
    %23 = tpu.matmul %20, %22, %cst_22 {dimension_numbers = #tpu.dot_dimension_numbers<[1], [0], [0], [1], [0, 0, 1, 1], [], []>} : vector<33x256xbf16>, vector<256x128xbf16>, vector<33x128xf32> -> vector<33x128xf32>
    %24 = arith.addf %18, %23 : vector<33x128xf32>
    %c0_23 = arith.constant 0 : index
    %c8 = arith.constant 8 : index
    %c0_24 = arith.constant 0 : index
    %25 = vector.load %arg1[%c0_23, %c8, %c0_24] : memref<1x49x256xbf16, #tpu.memory_space<vmem>>, vector<1x33x256xbf16>
    %26 = vector.shape_cast %25 : vector<1x33x256xbf16> to vector<33x256xbf16>
    %c4 = arith.constant 4 : index
    %c0_25 = arith.constant 0 : index
    %c0_26 = arith.constant 0 : index
    %27 = vector.load %arg2[%c4, %c0_25, %c0_26] : memref<9x256x128xbf16, #tpu.memory_space<vmem>>, vector<1x256x128xbf16>
    %28 = vector.shape_cast %27 : vector<1x256x128xbf16> to vector<256x128xbf16>
    %cst_27 = arith.constant dense<0.000000e+00> : vector<33x128xf32>
    %29 = tpu.matmul %26, %28, %cst_27 {dimension_numbers = #tpu.dot_dimension_numbers<[1], [0], [0], [1], [0, 0, 1, 1], [], []>} : vector<33x256xbf16>, vector<256x128xbf16>, vector<33x128xf32> -> vector<33x128xf32>
    %30 = arith.addf %24, %29 : vector<33x128xf32>
    %c0_28 = arith.constant 0 : index
    %c9 = arith.constant 9 : index
    %c0_29 = arith.constant 0 : index
    %31 = vector.load %arg1[%c0_28, %c9, %c0_29] : memref<1x49x256xbf16, #tpu.memory_space<vmem>>, vector<1x33x256xbf16>
    %32 = vector.shape_cast %31 : vector<1x33x256xbf16> to vector<33x256xbf16>
    %c5 = arith.constant 5 : index
    %c0_30 = arith.constant 0 : index
    %c0_31 = arith.constant 0 : index
    %33 = vector.load %arg2[%c5, %c0_30, %c0_31] : memref<9x256x128xbf16, #tpu.memory_space<vmem>>, vector<1x256x128xbf16>
    %34 = vector.shape_cast %33 : vector<1x256x128xbf16> to vector<256x128xbf16>
    %cst_32 = arith.constant dense<0.000000e+00> : vector<33x128xf32>
    %35 = tpu.matmul %32, %34, %cst_32 {dimension_numbers = #tpu.dot_dimension_numbers<[1], [0], [0], [1], [0, 0, 1, 1], [], []>} : vector<33x256xbf16>, vector<256x128xbf16>, vector<33x128xf32> -> vector<33x128xf32>
    %36 = arith.addf %30, %35 : vector<33x128xf32>
    %c0_33 = arith.constant 0 : index
    %c14 = arith.constant 14 : index
    %c0_34 = arith.constant 0 : index
    %37 = vector.load %arg1[%c0_33, %c14, %c0_34] : memref<1x49x256xbf16, #tpu.memory_space<vmem>>, vector<1x33x256xbf16>
    %38 = vector.shape_cast %37 : vector<1x33x256xbf16> to vector<33x256xbf16>
    %c6 = arith.constant 6 : index
    %c0_35 = arith.constant 0 : index
    %c0_36 = arith.constant 0 : index
    %39 = vector.load %arg2[%c6, %c0_35, %c0_36] : memref<9x256x128xbf16, #tpu.memory_space<vmem>>, vector<1x256x128xbf16>
    %40 = vector.shape_cast %39 : vector<1x256x128xbf16> to vector<256x128xbf16>
    %cst_37 = arith.constant dense<0.000000e+00> : vector<33x128xf32>
    %41 = tpu.matmul %38, %40, %cst_37 {dimension_numbers = #tpu.dot_dimension_numbers<[1], [0], [0], [1], [0, 0, 1, 1], [], []>} : vector<33x256xbf16>, vector<256x128xbf16>, vector<33x128xf32> -> vector<33x128xf32>
    %42 = arith.addf %36, %41 : vector<33x128xf32>
    %c0_38 = arith.constant 0 : index
    %c15 = arith.constant 15 : index
    %c0_39 = arith.constant 0 : index
    %43 = vector.load %arg1[%c0_38, %c15, %c0_39] : memref<1x49x256xbf16, #tpu.memory_space<vmem>>, vector<1x33x256xbf16>
    %44 = vector.shape_cast %43 : vector<1x33x256xbf16> to vector<33x256xbf16>
    %c7_40 = arith.constant 7 : index
    %c0_41 = arith.constant 0 : index
    %c0_42 = arith.constant 0 : index
    %45 = vector.load %arg2[%c7_40, %c0_41, %c0_42] : memref<9x256x128xbf16, #tpu.memory_space<vmem>>, vector<1x256x128xbf16>
    %46 = vector.shape_cast %45 : vector<1x256x128xbf16> to vector<256x128xbf16>
    %cst_43 = arith.constant dense<0.000000e+00> : vector<33x128xf32>
    %47 = tpu.matmul %44, %46, %cst_43 {dimension_numbers = #tpu.dot_dimension_numbers<[1], [0], [0], [1], [0, 0, 1, 1], [], []>} : vector<33x256xbf16>, vector<256x128xbf16>, vector<33x128xf32> -> vector<33x128xf32>
    %48 = arith.addf %42, %47 : vector<33x128xf32>
    %c0_44 = arith.constant 0 : index
    %c16 = arith.constant 16 : index
    %c0_45 = arith.constant 0 : index
    %49 = vector.load %arg1[%c0_44, %c16, %c0_45] : memref<1x49x256xbf16, #tpu.memory_space<vmem>>, vector<1x33x256xbf16>
    %50 = vector.shape_cast %49 : vector<1x33x256xbf16> to vector<33x256xbf16>
    %c8_46 = arith.constant 8 : index
    %c0_47 = arith.constant 0 : index
    %c0_48 = arith.constant 0 : index
    %51 = vector.load %arg2[%c8_46, %c0_47, %c0_48] : memref<9x256x128xbf16, #tpu.memory_space<vmem>>, vector<1x256x128xbf16>
    %52 = vector.shape_cast %51 : vector<1x256x128xbf16> to vector<256x128xbf16>
    %cst_49 = arith.constant dense<0.000000e+00> : vector<33x128xf32>
    %53 = tpu.matmul %50, %52, %cst_49 {dimension_numbers = #tpu.dot_dimension_numbers<[1], [0], [0], [1], [0, 0, 1, 1], [], []>} : vector<33x256xbf16>, vector<256x128xbf16>, vector<33x128xf32> -> vector<33x128xf32>
    %54 = arith.addf %48, %53 : vector<33x128xf32>
    %c0_50 = arith.constant 0 : index
    %c0_51 = arith.constant 0 : index
    %55 = vector.load %arg3[%c0_50, %c0_51] : memref<1x128xf32, #tpu.memory_space<vmem>>, vector<1x128xf32>
    %56 = vector.broadcast %55 : vector<1x128xf32> to vector<33x128xf32>
    %57 = arith.mulf %54, %56 : vector<33x128xf32>
    %c0_52 = arith.constant 0 : index
    %c0_53 = arith.constant 0 : index
    %58 = vector.load %arg4[%c0_52, %c0_53] : memref<1x128xf32, #tpu.memory_space<vmem>>, vector<1x128xf32>
    %59 = vector.broadcast %58 : vector<1x128xf32> to vector<33x128xf32>
    %60 = arith.addf %57, %59 : vector<33x128xf32>
    %cst_54 = arith.constant 0.000000e+00 : f32
    %61 = vector.broadcast %cst_54 : f32 to vector<33x128xf32>
    %62 = arith.maximumf %60, %61 : vector<33x128xf32>
    %c0_55 = arith.constant 0 : index
    %c0_56 = arith.constant 0 : index
    %c0_57 = arith.constant 0 : index
    %63 = vector.load %arg5[%c0_55, %c0_56, %c0_57] : memref<1x33x128xf32, #tpu.memory_space<vmem>>, vector<1x33x128xf32>
    %64 = vector.shape_cast %63 : vector<1x33x128xf32> to vector<33x128xf32>
    %65 = vector.shape_cast %62 : vector<33x128xf32> to vector<1x33x128xf32>
    tpu.vector_store %arg5[%c0_55, %c0_56, %c0_57], %65 {strides = array<i32>} : memref<1x33x128xf32, #tpu.memory_space<vmem>>, vector<1x33x128xf32>,
    return
  }
  func.func @transform_0(%arg0: i32) -> (i32, i32, i32) {
    %c0_i32 = arith.constant 0 : i32
    %c0_i32_0 = arith.constant 0 : i32
    %c0_i32_1 = arith.constant 0 : i32
    return %arg0, %c0_i32, %c0_i32_0 : i32, i32, i32
  }
  func.func @transform_1(%arg0: i32) -> (i32, i32, i32) {
    %c0_i32 = arith.constant 0 : i32
    %c0_i32_0 = arith.constant 0 : i32
    %c0_i32_1 = arith.constant 0 : i32
    %c0_i32_2 = arith.constant 0 : i32
    return %c0_i32, %c0_i32_0, %c0_i32_1 : i32, i32, i32
  }
  func.func @transform_2(%arg0: i32) -> (i32, i32) {
    %c0_i32 = arith.constant 0 : i32
    %c0_i32_0 = arith.constant 0 : i32
    %c0_i32_1 = arith.constant 0 : i32
    return %c0_i32, %c0_i32_0 : i32, i32
  }
  func.func @transform_3(%arg0: i32) -> (i32, i32) {
    %c0_i32 = arith.constant 0 : i32
    %c0_i32_0 = arith.constant 0 : i32
    %c0_i32_1 = arith.constant 0 : i32
    return %c0_i32, %c0_i32_0 : i32, i32
  }
  func.func @transform_4(%arg0: i32) -> (i32, i32, i32) {
    %c0_i32 = arith.constant 0 : i32
    %c0_i32_0 = arith.constant 0 : i32
    %c0_i32_1 = arith.constant 0 : i32
    return %arg0, %c0_i32, %c0_i32_0 : i32, i32, i32
  }
}

module attributes {stable_mosaic.version = 11 : i64} {
  func.func @_proto_pred_kernel(%arg0: i32, %arg1: memref<1x25x128xf32, #tpu.memory_space<vmem>>, %arg2: memref<4x128xf32, #tpu.memory_space<vmem>>, %arg3: memref<4x128xf32, #tpu.memory_space<vmem>>, %arg4: memref<1x4x25xf32, #tpu.memory_space<vmem>>) attributes {dimension_semantics = [#tpu.dimension_semantics<parallel>], iteration_bounds = array<i64: 2>, scalar_prefetch = 0 : i64, scratch_operands = 0 : i64, tpu.core_type = #tpu.core_type<tc>, window_params = [{transform_indices = @transform_0, window_bounds = array<i64: 1, 25, 128>}, {pipeline_mode = #tpu.pipeline_mode<synchronous>, transform_indices = @transform_1, window_bounds = array<i64: 4, 128>}, {pipeline_mode = #tpu.pipeline_mode<synchronous>, transform_indices = @transform_2, window_bounds = array<i64: 4, 128>}, {transform_indices = @transform_3, window_bounds = array<i64: 1, 4, 25>}]} {
    %c0 = arith.constant 0 : index
    %c0_0 = arith.constant 0 : index
    %c0_1 = arith.constant 0 : index
    %0 = vector.load %arg1[%c0, %c0_0, %c0_1] : memref<1x25x128xf32, #tpu.memory_space<vmem>>, vector<1x25x128xf32>
    %1 = vector.shape_cast %0 : vector<1x25x128xf32> to vector<25x128xf32>
    %c0_2 = arith.constant 0 : index
    %c0_3 = arith.constant 0 : index
    %2 = vector.load %arg2[%c0_2, %c0_3] : memref<4x128xf32, #tpu.memory_space<vmem>>, vector<4x128xf32>
    %c0_4 = arith.constant 0 : index
    %c0_5 = arith.constant 0 : index
    %3 = vector.load %arg3[%c0_4, %c0_5] : memref<4x128xf32, #tpu.memory_space<vmem>>, vector<4x128xf32>
    %4 = arith.mulf %1, %1 : vector<25x128xf32>
    %cst = arith.constant dense<0.000000e+00> : vector<25xf32>
    %5 = vector.multi_reduction <add>, %4, %cst [1] : vector<25x128xf32> to vector<25xf32>
    %6 = vector.shape_cast %5 : vector<25xf32> to vector<25x1xf32>
    %cst_6 = arith.constant 1.000000e-24 : f32
    %7 = vector.broadcast %cst_6 : f32 to vector<25x1xf32>
    %8 = arith.maximumf %6, %7 : vector<25x1xf32>
    %9 = math.rsqrt %8 : vector<25x1xf32>
    %10 = vector.broadcast %9 : vector<25x1xf32> to vector<25x128xf32>
    %11 = arith.mulf %1, %10 : vector<25x128xf32>
    %12 = arith.mulf %2, %2 : vector<4x128xf32>
    %cst_7 = arith.constant dense<0.000000e+00> : vector<4xf32>
    %13 = vector.multi_reduction <add>, %12, %cst_7 [1] : vector<4x128xf32> to vector<4xf32>
    %14 = vector.shape_cast %13 : vector<4xf32> to vector<4x1xf32>
    %cst_8 = arith.constant 1.000000e-24 : f32
    %15 = vector.broadcast %cst_8 : f32 to vector<4x1xf32>
    %16 = arith.maximumf %14, %15 : vector<4x1xf32>
    %17 = math.rsqrt %16 : vector<4x1xf32>
    %18 = vector.broadcast %17 : vector<4x1xf32> to vector<4x128xf32>
    %19 = arith.mulf %2, %18 : vector<4x128xf32>
    %20 = arith.truncf %11 : vector<25x128xf32> to vector<25x128xbf16>
    %21 = arith.truncf %19 : vector<4x128xf32> to vector<4x128xbf16>
    %cst_9 = arith.constant dense<0.000000e+00> : vector<4x25xf32>
    %22 = tpu.matmul %21, %20, %cst_9 {dimension_numbers = #tpu.dot_dimension_numbers<[1], [1], [0], [0], [0, 0, 1, 0], [], []>} : vector<4x128xbf16>, vector<25x128xbf16>, vector<4x25xf32> -> vector<4x25xf32>
    %cst_10 = arith.constant 1.000000e+01 : f32
    %23 = vector.broadcast %cst_10 : f32 to vector<4x25xf32>
    %24 = arith.mulf %23, %22 : vector<4x25xf32>
    %cst_11 = arith.constant dense<0xFF800000> : vector<4xf32>
    %25 = vector.multi_reduction <maximumf>, %24, %cst_11 [1] : vector<4x25xf32> to vector<4xf32>
    %26 = vector.shape_cast %25 : vector<4xf32> to vector<4x1xf32>
    %27 = vector.broadcast %26 : vector<4x1xf32> to vector<4x25xf32>
    %28 = arith.subf %24, %27 : vector<4x25xf32>
    %29 = math.exp %28 : vector<4x25xf32>
    %cst_12 = arith.constant dense<0.000000e+00> : vector<4xf32>
    %30 = vector.multi_reduction <add>, %29, %cst_12 [1] : vector<4x25xf32> to vector<4xf32>
    %31 = vector.shape_cast %30 : vector<4xf32> to vector<4x1xf32>
    %32 = tpu.reciprocal %31 {approx = true} : vector<4x1xf32> -> vector<4x1xf32>
    %33 = vector.broadcast %32 : vector<4x1xf32> to vector<4x25xf32>
    %34 = arith.mulf %29, %33 : vector<4x25xf32>
    %35 = arith.truncf %34 : vector<4x25xf32> to vector<4x25xbf16>
    %36 = arith.truncf %1 : vector<25x128xf32> to vector<25x128xbf16>
    %cst_13 = arith.constant dense<0.000000e+00> : vector<4x128xf32>
    %37 = tpu.matmul %35, %36, %cst_13 {dimension_numbers = #tpu.dot_dimension_numbers<[1], [0], [0], [1], [0, 0, 1, 1], [], []>} : vector<4x25xbf16>, vector<25x128xbf16>, vector<4x128xf32> -> vector<4x128xf32>
    %38 = arith.mulf %37, %37 : vector<4x128xf32>
    %cst_14 = arith.constant dense<0.000000e+00> : vector<4xf32>
    %39 = vector.multi_reduction <add>, %38, %cst_14 [1] : vector<4x128xf32> to vector<4xf32>
    %40 = vector.shape_cast %39 : vector<4xf32> to vector<4x1xf32>
    %cst_15 = arith.constant 1.000000e-24 : f32
    %41 = vector.broadcast %cst_15 : f32 to vector<4x1xf32>
    %42 = arith.maximumf %40, %41 : vector<4x1xf32>
    %43 = math.rsqrt %42 : vector<4x1xf32>
    %44 = vector.broadcast %43 : vector<4x1xf32> to vector<4x128xf32>
    %45 = arith.mulf %37, %44 : vector<4x128xf32>
    %46 = arith.mulf %45, %19 : vector<4x128xf32>
    %cst_16 = arith.constant dense<0.000000e+00> : vector<4xf32>
    %47 = vector.multi_reduction <add>, %46, %cst_16 [1] : vector<4x128xf32> to vector<4xf32>
    %48 = vector.shape_cast %47 : vector<4xf32> to vector<4x1xf32>
    %cst_17 = arith.constant 0.000000e+00 : f32
    %49 = vector.broadcast %cst_17 : f32 to vector<4x1xf32>
    %50 = arith.cmpf ogt, %48, %49 : vector<4x1xf32>
    %51 = arith.extui %50 : vector<4x1xi1> to vector<4x1xi32>
    %52 = arith.sitofp %51 : vector<4x1xi32> to vector<4x1xf32>
    %53 = arith.mulf %48, %52 : vector<4x1xf32>
    %54 = vector.broadcast %53 : vector<4x1xf32> to vector<4x128xf32>
    %55 = arith.mulf %54, %37 : vector<4x128xf32>
    %cst_18 = arith.constant 1.000000e+00 : f32
    %56 = vector.broadcast %cst_18 : f32 to vector<4x1xf32>
    %57 = arith.subf %56, %53 : vector<4x1xf32>
    %58 = vector.broadcast %57 : vector<4x1xf32> to vector<4x128xf32>
    %59 = arith.mulf %58, %2 : vector<4x128xf32>
    %60 = arith.addf %55, %59 : vector<4x128xf32>
    %61 = tpu.iota {dimensions = array<i32: 0>} : vector<4x1xi32>
    %c2_i32 = arith.constant 2 : i32
    %62 = vector.broadcast %c2_i32 : i32 to vector<4x1xi32>
    %63 = arith.cmpi slt, %61, %62 : vector<4x1xi32>
    %64 = arith.addf %60, %3 : vector<4x128xf32>
    %65 = vector.shape_cast %63 : vector<4x1xi1> to vector<4x1xi1>
    %66 = vector.broadcast %65 : vector<4x1xi1> to vector<4x128xi1>
    %67 = arith.select %66, %64, %3 : vector<4x128xi1>, vector<4x128xf32>
    %68 = arith.mulf %67, %67 : vector<4x128xf32>
    %cst_19 = arith.constant dense<0.000000e+00> : vector<4xf32>
    %69 = vector.multi_reduction <add>, %68, %cst_19 [1] : vector<4x128xf32> to vector<4xf32>
    %70 = vector.shape_cast %69 : vector<4xf32> to vector<4x1xf32>
    %cst_20 = arith.constant 1.000000e-24 : f32
    %71 = vector.broadcast %cst_20 : f32 to vector<4x1xf32>
    %72 = arith.maximumf %70, %71 : vector<4x1xf32>
    %73 = math.rsqrt %72 : vector<4x1xf32>
    %74 = vector.broadcast %73 : vector<4x1xf32> to vector<4x128xf32>
    %75 = arith.mulf %67, %74 : vector<4x128xf32>
    %76 = arith.truncf %75 : vector<4x128xf32> to vector<4x128xbf16>
    %cst_21 = arith.constant dense<0.000000e+00> : vector<4x25xf32>
    %77 = tpu.matmul %76, %20, %cst_21 {dimension_numbers = #tpu.dot_dimension_numbers<[1], [1], [0], [0], [0, 0, 1, 0], [], []>} : vector<4x128xbf16>, vector<25x128xbf16>, vector<4x25xf32> -> vector<4x25xf32>
    %cst_22 = arith.constant 1.000000e+01 : f32
    %78 = vector.broadcast %cst_22 : f32 to vector<4x25xf32>
    %79 = arith.mulf %78, %77 : vector<4x25xf32>
    %c0_23 = arith.constant 0 : index
    %c0_24 = arith.constant 0 : index
    %c0_25 = arith.constant 0 : index
    %80 = vector.load %arg4[%c0_23, %c0_24, %c0_25] : memref<1x4x25xf32, #tpu.memory_space<vmem>>, vector<1x4x25xf32>
    %81 = vector.shape_cast %80 : vector<1x4x25xf32> to vector<4x25xf32>
    %82 = vector.shape_cast %79 : vector<4x25xf32> to vector<1x4x25xf32>
    tpu.vector_store %arg4[%c0_23, %c0_24, %c0_25], %82 {strides = array<i32>} : memref<1x4x25xf32, #tpu.memory_space<vmem>>, vector<1x4x25xf32>,
    return
  }
  func.func @transform_0(%arg0: i32) -> (i32, i32, i32) {
    %c0_i32 = arith.constant 0 : i32
    %c0_i32_0 = arith.constant 0 : i32
    %c0_i32_1 = arith.constant 0 : i32
    return %arg0, %c0_i32, %c0_i32_0 : i32, i32, i32
  }
  func.func @transform_1(%arg0: i32) -> (i32, i32) {
    %c0_i32 = arith.constant 0 : i32
    %c0_i32_0 = arith.constant 0 : i32
    %c0_i32_1 = arith.constant 0 : i32
    return %c0_i32, %c0_i32_0 : i32, i32
  }
  func.func @transform_2(%arg0: i32) -> (i32, i32) {
    %c0_i32 = arith.constant 0 : i32
    %c0_i32_0 = arith.constant 0 : i32
    %c0_i32_1 = arith.constant 0 : i32
    return %c0_i32, %c0_i32_0 : i32, i32
  }
  func.func @transform_3(%arg0: i32) -> (i32, i32, i32) {
    %c0_i32 = arith.constant 0 : i32
    %c0_i32_0 = arith.constant 0 : i32
    %c0_i32_1 = arith.constant 0 : i32
    return %arg0, %c0_i32, %c0_i32_0 : i32, i32, i32
  }
}

module attributes {stable_mosaic.version = 11 : i64} {
  func.func @_mm_affine_kernel(%arg0: i32, %arg1: i32, %arg2: i32, %arg3: memref<56x128xbf16, #tpu.memory_space<vmem>>, %arg4: memref<128x128xbf16, #tpu.memory_space<vmem>>, %arg5: memref<1x128xf32, #tpu.memory_space<vmem>>, %arg6: memref<1x128xf32, #tpu.memory_space<vmem>>, %arg7: memref<56x128xf32, #tpu.memory_space<vmem>>, %arg8: memref<56x128xf32, #tpu.memory_space<vmem>>) attributes {dimension_semantics = [#tpu.dimension_semantics<parallel>, #tpu.dimension_semantics<parallel>, #tpu.dimension_semantics<arbitrary>], iteration_bounds = array<i64: 1, 1, 1>, scalar_prefetch = 0 : i64, scratch_operands = 1 : i64, tpu.core_type = #tpu.core_type<tc>, window_params = [{transform_indices = @transform_0, window_bounds = array<i64: 56, 128>}, {transform_indices = @transform_1, window_bounds = array<i64: 128, 128>}, {transform_indices = @transform_2, window_bounds = array<i64: 1, 128>}, {transform_indices = @transform_3, window_bounds = array<i64: 1, 128>}, {transform_indices = @transform_4, window_bounds = array<i64: 56, 128>}]} {
    %c0_i32 = arith.constant 0 : i32
    %0 = arith.cmpi eq, %arg2, %c0_i32 : i32
    %1 = arith.extui %0 : i1 to i32
    %c0_i32_0 = arith.constant 0 : i32
    %2 = arith.cmpi ne, %1, %c0_i32_0 : i32
    scf.if %2 {
      %cst_10 = arith.constant 0.000000e+00 : f32
      %12 = vector.broadcast %cst_10 : f32 to vector<56x128xf32>
      %c0_11 = arith.constant 0 : index
      %c0_12 = arith.constant 0 : index
      %13 = vector.load %arg8[%c0_11, %c0_12] : memref<56x128xf32, #tpu.memory_space<vmem>>, vector<56x128xf32>
      tpu.vector_store %arg8[%c0_11, %c0_12], %12 {strides = array<i32>} : memref<56x128xf32, #tpu.memory_space<vmem>>, vector<56x128xf32>,
    } else {
    }
    %c0 = arith.constant 0 : index
    %c0_1 = arith.constant 0 : index
    %3 = vector.load %arg8[%c0, %c0_1] : memref<56x128xf32, #tpu.memory_space<vmem>>, vector<56x128xf32>
    %c0_2 = arith.constant 0 : index
    %c0_3 = arith.constant 0 : index
    %4 = vector.load %arg3[%c0_2, %c0_3] : memref<56x128xbf16, #tpu.memory_space<vmem>>, vector<56x128xbf16>
    %c0_4 = arith.constant 0 : index
    %c0_5 = arith.constant 0 : index
    %5 = vector.load %arg4[%c0_4, %c0_5] : memref<128x128xbf16, #tpu.memory_space<vmem>>, vector<128x128xbf16>
    %cst = arith.constant dense<0.000000e+00> : vector<56x128xf32>
    %6 = tpu.matmul %4, %5, %cst {dimension_numbers = #tpu.dot_dimension_numbers<[1], [0], [0], [1], [0, 0, 1, 1], [], []>} : vector<56x128xbf16>, vector<128x128xbf16>, vector<56x128xf32> -> vector<56x128xf32>
    %7 = arith.addf %3, %6 : vector<56x128xf32>
    %c0_6 = arith.constant 0 : index
    %c0_7 = arith.constant 0 : index
    %8 = vector.load %arg8[%c0_6, %c0_7] : memref<56x128xf32, #tpu.memory_space<vmem>>, vector<56x128xf32>
    tpu.vector_store %arg8[%c0_6, %c0_7], %7 {strides = array<i32>} : memref<56x128xf32, #tpu.memory_space<vmem>>, vector<56x128xf32>,
    %c0_i32_8 = arith.constant 0 : i32
    %9 = arith.cmpi eq, %arg2, %c0_i32_8 : i32
    %10 = arith.extui %9 : i1 to i32
    %c0_i32_9 = arith.constant 0 : i32
    %11 = arith.cmpi ne, %10, %c0_i32_9 : i32
    scf.if %11 {
      %c0_10 = arith.constant 0 : index
      %c0_11 = arith.constant 0 : index
      %12 = vector.load %arg8[%c0_10, %c0_11] : memref<56x128xf32, #tpu.memory_space<vmem>>, vector<56x128xf32>
      %c0_12 = arith.constant 0 : index
      %c0_13 = arith.constant 0 : index
      %13 = vector.load %arg5[%c0_12, %c0_13] : memref<1x128xf32, #tpu.memory_space<vmem>>, vector<1x128xf32>
      %14 = vector.broadcast %13 : vector<1x128xf32> to vector<56x128xf32>
      %15 = arith.mulf %12, %14 : vector<56x128xf32>
      %c0_14 = arith.constant 0 : index
      %c0_15 = arith.constant 0 : index
      %16 = vector.load %arg6[%c0_14, %c0_15] : memref<1x128xf32, #tpu.memory_space<vmem>>, vector<1x128xf32>
      %17 = vector.broadcast %16 : vector<1x128xf32> to vector<56x128xf32>
      %18 = arith.addf %15, %17 : vector<56x128xf32>
      %c0_16 = arith.constant 0 : index
      %c0_17 = arith.constant 0 : index
      %19 = vector.load %arg7[%c0_16, %c0_17] : memref<56x128xf32, #tpu.memory_space<vmem>>, vector<56x128xf32>
      tpu.vector_store %arg7[%c0_16, %c0_17], %18 {strides = array<i32>} : memref<56x128xf32, #tpu.memory_space<vmem>>, vector<56x128xf32>,
    } else {
    }
    return
  }
  func.func @transform_0(%arg0: i32, %arg1: i32, %arg2: i32) -> (i32, i32) {
    %c0_i32 = arith.constant 0 : i32
    return %arg0, %arg2 : i32, i32
  }
  func.func @transform_1(%arg0: i32, %arg1: i32, %arg2: i32) -> (i32, i32) {
    %c0_i32 = arith.constant 0 : i32
    return %arg2, %arg1 : i32, i32
  }
  func.func @transform_2(%arg0: i32, %arg1: i32, %arg2: i32) -> (i32, i32) {
    %c0_i32 = arith.constant 0 : i32
    %c0_i32_0 = arith.constant 0 : i32
    return %c0_i32, %arg1 : i32, i32
  }
  func.func @transform_3(%arg0: i32, %arg1: i32, %arg2: i32) -> (i32, i32) {
    %c0_i32 = arith.constant 0 : i32
    %c0_i32_0 = arith.constant 0 : i32
    return %c0_i32, %arg1 : i32, i32
  }
  func.func @transform_4(%arg0: i32, %arg1: i32, %arg2: i32) -> (i32, i32) {
    %c0_i32 = arith.constant 0 : i32
    return %arg0, %arg1 : i32, i32
  }
}

</mosaic_0001>

<bundles_post_ra>
// kernel: _lambda_.6
= control target key start
LH: loop header
LB: loop body
LE: loop exit
PB: predicated region body
PF: predicated region fallthrough
CT: control target
= control target key end

     0   :  { %s1188_s15 = smov 0   ;;  %s1426_s0 = inlined_call_operand.vmem [shape: bf16[2,81,32], index: 0, kind: input, shape index: {}]   ;;  %s1427_s1 = inlined_call_operand.vmem [shape: bf16[9,32,64], index: 1, kind: input, shape index: {}]   ;;  %s1428_s2 = inlined_call_operand.vmem [shape: f32[1,64], index: 2, kind: input, shape index: {}]   ;;  %s1429_s3 = inlined_call_operand.vmem [shape: f32[1,64], index: 3, kind: input, shape index: {}]   ;;  %s1430_s4 = inlined_call_operand.vmem [shape: f32[2,41,64], index: 4, kind: output, shape index: {}]  }
   0x1 LB: > { %s942_s16 = sadd.s32 4294967295, %s1161_s15   ;;  %p946_p0 = scmp.ge.s32.totalorder %s1161_s15, 1  ;;  %s1161_s15 = sphi %s1188_s15, %s14_s15  }
   0x2   : > { %p162_p1 = scmp.lt.s32.totalorder %s1161_s15, 3 }
   0x4   : > { %p163_p2 = pnand %p946_p0, %p162_p1 }
   0x5   : > { %p188_p3 = scmp.lt.s32.totalorder (!%p163_p2), %s942_s16, 1 }
   0x6   : > { %166 = sbr.rel (%p163_p2) target bundleno = 272 (0x110), region = 36 }
   0xb   : > { %v1110_v0 = vld [vmem:[%s1427_s1 + $0x18] sm:$0xff]  ;;  %v1109_v2 = vld [vmem:[%s1427_s1 + $0x10] sm:$0xff]  ;;  %s1432_s16 = smov (!%p188_p3, %s942_s16), 1  ;;  %v1112_v3 = vld [vmem:[%s1427_s1 + $0x28] sm:$0xff]  ;;  %vm249_vm0 = vcmask 261120   ;;  %vm231_vm1 = vcmask 1046528  }
   0xc   : > { %v1115_v1 = vld [vmem:[%s1427_s1 + $0x38] sm:$0xff]  ;;  %1135 = vmatpush.bf16.msra.mxu2 %v1110_v0  ;;  %1134 = vmatpush.bf16.msra.mxu1 %v1110_v0  ;;  %s1138_s25 = smul.u32 44, %s1432_s16  ;;  %v1108_v4 = vld [vmem:[%s1427_s1 + $0x8] sm:$0xff]  ;;  %v1114_v5 = vld [vmem:[%s1427_s1 + $0x30] sm:$0xff]  ;;  %vm347_vm2 = vcmask 1045504   ;;  %vm568_vm3 = vcmask 1044480  }
   0xd   : > { %265 = vmatpush.bf16.msra.mxu0 %v1110_v0  ;;  %462 = vmatpush.bf16.msra.mxu3 %v1115_v1  ;;  %v1117_v6 = vld [vmem:[%s1427_s1 + $0x48] sm:$0xff]  ;;  %v1124_v7 = vld [vmem:[%s1427_s1 + $0x78] sm:$0xff]  ;;  %v1111_v8 = vld [vmem:[%s1427_s1 + $0x20] sm:$0xff]  ;;  %s1139_s11 = smul.u32 48, %s1432_s16  ;;  %vm879_vm4 = vcmask 523264   ;;  %vm885_vm5 = vcmask 516096  }
   0xe   : > { %s1226_s10 = scalar_lea.vmem %s1426_s0, %s1138_s25  ;;  %v1107_v9 = vld [vmem:[%s1427_s1] sm:$0xff]  ;;  %v1122_v28 = vld [vmem:[%s1427_s1 + $0x68] sm:$0xff]  ;;  %v1119_v33 = vld [vmem:[%s1427_s1 + $0x58] sm:$0xff] }
   0xf   : > { %v1235_v10 = vld [vmem:[%s1226_s10 + $0x10] sm:$0xff]   ;;  %v1239_v12 = vld [vmem:[%s1226_s10 + $0x8] sm:$0xff]  ;;  %v1245_v15 = vld [vmem:[%s1226_s10] sm:$0xff]   ;;  %s1391_s14 = scalar_lea.vmem %s1430_s4, %s1139_s11 }
  0x10   : > { %1137 = vmatpush.bf16.msra.mxu2 %v1109_v2  ;;  %1136 = vmatpush.bf16.msra.mxu1 %v1109_v2  ;;  %v210_v11 = vld [vmem:[%s1226_s10 + $0x14] sm:$0x3]  ;;  %v1242_v13 = vunpack.c.l.b16 %v1235_v10  ;;  %v209_v16 = vld [vmem:[%s1226_s10] sm:$0xe]  ;;  %v404_v17 = vld [vmem:[%s1226_s10 + $0x8] sm:$0xe]  ;;  %v1133_v18 = vunpack.c.h.b16 %v1245_v15 }
  0x11   : > { %266 = vmatpush.bf16.msra.mxu0 %v1109_v2  ;;  %v227_v14 = vunpack.c.l.b16 %v210_v11  ;;  %463 = vmatpush.bf16.msra.mxu3 %v1114_v5  ;;  %v222_v19 = vunpack.c.l.b16 %v209_v16  ;;  %v405_v20 = vld [vmem:[%s1226_s10 + $0xc] sm:$0xf]  ;;  %v1252_v21 = vld [vmem:[%s1226_s10 + $0x10] sm:$0xff]  ;;  %v421_v22 = vunpack.c.l.b16 %v404_v17  ;;  %v1116_v23 = vld [vmem:[%s1427_s1 + $0x40] sm:$0xff]  ;;  %v233_v25 = vrot.slane %v1239_v12, 1 }
  0x12   : > { %v1259_v26 = vunpack.c.l.b16 %v405_v20  ;;  %v431_v31 = vrot.slane %v1252_v21, 1  ;;  %v334_v32 = vld [vmem:[%s1226_s10] sm:$0xc]  ;;  %v1129_v35 = vld [vmem:[%s1427_s1 + $0x88] sm:$0xff]  ;;  %v1279_v41 = vld [vmem:[%s1226_s10 + $0x18] sm:$0xff]   ;;  %v349_v54 = vrot.slane %v1239_v12, 2 }
  0x13   : > { %v230_v24 = vpack.c.b16 %v227_v14, %v1242_v13  ;;  %v228_v27 = vpack.c.b16 %v1133_v18, %v222_v19  ;;  %v486_v38 = vld [vmem:[%s1226_s10 + $0x8] sm:$0xc]  ;;  %v343_v40 = vunpack.c.l.b16 %v334_v32  ;;  %v409_v42 = vld [vmem:[%s1226_s10 + $0x1c] sm:$0x3]  ;;  %v1121_v44 = vld [vmem:[%s1427_s1 + $0x60] sm:$0xff]  ;;  %v425_v48 = vunpack.c.l.b16 %v1279_v41 }
  0x14   : > { %380 = vmatpush.bf16.msrb.mxu2 %v1112_v3  ;;  %316 = vmatpush.bf16.msrb.mxu1 %v1108_v4  ;;  %v427_v30 = vpack.c.b16 %v1259_v26, %v421_v22  ;;  %v495_v45 = vunpack.c.l.b16 %v486_v38  ;;  %v1123_v46 = vld [vmem:[%s1427_s1 + $0x70] sm:$0xff]  ;;  %v426_v49 = vunpack.c.l.b16 %v409_v42  ;;  %v500_v56 = vrot.slane %v1252_v21, 2  ;;  %v487_v62 = vld [vmem:[%s1226_s10 + $0x1c] sm:$0x7]  ;;  %v1128_v0 = vld [vmem:[%s1427_s1 + $0x80] sm:$0xff] }
  0x15   : > { %531 = vmatpush.bf16.msrb.mxu0 %v1117_v6  ;;  %752 = vmatpush.bf16.msrb.mxu3 %v1124_v7  ;;  %v235_v29 = vrot.slane %v230_v24, 1  ;;  %v232_v34 = vrot.slane %v228_v27, 1  ;;  %v1118_v47 = vld [vmem:[%s1427_s1 + $0x50] sm:$0xff]  ;;  %v345_v50 = vpack.c.b16 %v1133_v18, %v343_v40  ;;  %v496_v1 = vunpack.c.l.b16 %v487_v62  ;;  %v555_v22 = vld [vmem:[%s1226_s10 + $0x8] sm:$0x8]  ;;  %v629_v24 = vld [vmem:[%s1226_s10 + $0x20] sm:$0xff]  }
  0x16   : > { %v430_v37 = vrot.slane %v427_v30, 1  ;;  %v497_v51 = vpack.c.b16 %v1259_v26, %v495_v45  ;;  %v429_v52 = vpack.c.b16 %v426_v49, %v425_v48  ;;  %v335_v59 = vld [vmem:[%s1226_s10 + $0x14] sm:$0x7]  ;;  %v564_v27 = vunpack.c.l.b16 %v555_v22  ;;  %v1127_v45 = vld [vmem:[%s1226_s10 + $0x24] sm:$0x10] }
  0x17   : > { %967 = vmatmul.msk.bf16.vlgmr.msra.gmra.mxu2 %vm249_vm0, %v235_v29  ;;  %v236_v36 = vsel %vm231_vm1, %v233_v25, %v235_v29  ;;  %v234_v39 = vsel %vm231_vm1, %v232_v34, %v233_v25  ;;  %v348_v53 = vrot.slane %v345_v50, 2  ;;  %v344_v63 = vunpack.c.l.b16 %v335_v59  ;;  %v204_v14 = vld [vmem:[%s1226_s10 + $0x14] sm:$0x1]  ;;  %v1152_v25 = vld [vmem:[%s1226_s10 + $0x20] sm:$0xf]  }
  0x18   : > { %381 = vmatpush.bf16.msrb.mxu2 %v1111_v8  ;;  %317 = vmatpush.bf16.msrb.mxu1 %v1107_v9  ;;  %v432_v43 = vsel %vm231_vm1, %v430_v37, %v431_v31  ;;  %v499_v55 = vrot.slane %v497_v51, 2  ;;  %v433_v57 = vrot.slane %v429_v52, 1  ;;  %v498_v3 = vpack.c.b16 %v496_v1, %v425_v48  ;;  %v707_v8 = vld [vmem:[%s1226_s10 + $0x10] sm:$0x8]  ;;  %v1158_v37 = vld [vmem:[%s1226_s10 + $0x20] sm:$0x70] }
  0x19   : > { %532 = vmatpush.bf16.msrb.mxu0 %v1116_v23  ;;  %966 = vmatmul.msk.bf16.vlgmr.msra.gmra.mxu1 %vm249_vm0, %v236_v36  ;;  %v350_v58 = vsel %vm347_vm2, %v348_v53, %v349_v54  ;;  %v346_v2 = vpack.c.b16 %v344_v63, %v1242_v13  ;;  %v643_v9 = vunpack.c.h.b16 %v1235_v10  ;;  %v716_v11 = vunpack.c.l.b16 %v707_v8  ;;  %v1125_v36 = vld [vmem:[%s1226_s10 + $0x14] sm:$0xff] }
  0x1a   : > { %965 = vmatmul.msk.bf16.vlgmr.msra.gmra.mxu0 %vm249_vm0, %v234_v39  ;;  %1010 = vmatmul.msk.bf16.vlgmr.msra.gmra.mxu3 %vm249_vm0, %v432_v43  ;;  %v501_v60 = vsel %vm347_vm2, %v499_v55, %v500_v56  ;;  %v434_v61 = vsel %vm231_vm1, %v431_v31, %v433_v57  ;;  %v502_v5 = vrot.slane %v498_v3, 2  ;;  %v286_v17 = vunpack.c.l.b16 %v204_v14  ;;  %v1126_v43 = vld [vmem:[%s1226_s10 + $0x1c] sm:$0xff] }
  0x1b   : > { %753 = vmatpush.bf16.msrb.mxu3 %v1123_v46  ;;  %v351_v4 = vrot.slane %v346_v2, 2  ;;  %v718_v16 = vpack.c.b16 %v643_v9, %v716_v11  ;;  %v570_v32 = vrot.slane %v1252_v21, 3  ;;  %v1153_v21 = vor.u32 %v1158_v37, %v1152_v25 }
  0x1c   : > { %683 = vmatpush.bf16.msra.mxu2 %v1122_v28  ;;  %601 = vmatpush.bf16.msra.mxu1 %v1119_v33  ;;  %v503_v7 = vsel %vm347_vm2, %v500_v56, %v502_v5  ;;  %v288_v20 = vpack.c.b16 %v286_v17, %v1242_v13  ;;  %v566_v28 = vpack.c.b16 %v1259_v26, %v564_v27  ;;  %v723_v33 = vrot.slane %v629_v24, 3 }
  0x1d   : > { %829 = vmatpush.bf16.msra.mxu0 %v1129_v35  ;;  %v352_v6 = vsel %vm347_vm2, %v349_v54, %v351_v4  ;;  %v720_v18 = vrot.slane %v718_v16, 3  ;;  %v654_v26 = vrot.slane %v1153_v21, 2  ;;  %v572_v39 = vrot.slane %v1279_v41, 3 }
  0x1e   : > { %v569_v31 = vrot.slane %v566_v28, 3 }
  0x1f   : > { %v573_v42 = vsel %vm568_vm3, %v570_v32, %v572_v39 }
  0x20   : > { %684 = vmatpush.bf16.msra.mxu2 %v1121_v44  ;;  %602 = vmatpush.bf16.msra.mxu1 %v1118_v47  ;;  %v571_v35 = vsel %vm568_vm3, %v569_v31, %v570_v32  ;;  %v1091_v44 = vld [vmem:[%s1226_s10 + $0x24] sm:$0xf] }
  0x21   : > { %830 = vmatpush.bf16.msra.mxu0 %v1128_v0  ;;  %v1092_v46 = vor.u32 %v1127_v45, %v1091_v44 }
  0x27   : > { %991 = vmatmul.msk.bf16.vlgmr.msrb.gmra.mxu2 %vm249_vm0, %v350_v58 }
  0x29   : > { %976 = vmatmul.msk.bf16.vlgmr.msrb.gmra.mxu1 %vm249_vm0, %v1245_v15  ;;  %v1120_v15 = vld [vmem:[%s1226_s10 + $0x18] sm:$0xff] }
  0x2a   : > { %1025 = vmatmul.msk.bf16.vlgmr.msrb.gmra.mxu0 %vm249_vm0, %v501_v60  ;;  %1011 = vmatmul.msk.bf16.gmra.mxu3 %vm249_vm0, %v434_v61  ;;  %v721_v19 = vrot.slane %v1120_v15, 3  ;;  %v652_v30 = vrot.slane %v1120_v15, 2 }
  0x2c   : > { %v722_v23 = vsel %vm568_vm3, %v720_v18, %v721_v19  ;;  %v724_v38 = vsel %vm568_vm3, %v721_v19, %v723_v33  ;;  %v655_v40 = vsel %vm347_vm2, %v652_v30, %v654_v26 }
  0x37   : > { %992 = vmatmul.msk.bf16.gmra.mxu2 %vm249_vm0, %v352_v6 }
  0x39   : > { %977 = vmatmul.msk.bf16.gmra.mxu1 %vm249_vm0, %v1239_v12  ;;  %v625_v12 = vld [vmem:[%s1226_s10 + $0x10] sm:$0xc] }
  0x3a   : > { %1026 = vmatmul.msk.bf16.gmra.mxu0 %vm249_vm0, %v503_v7  ;;  %1012 = vmatmul.msk.bf16.gmra.mxu3 %vm249_vm0, %v433_v57  ;;  %v642_v10 = vunpack.c.l.b16 %v625_v12 }
  0x3c   : > { %v648_v13 = vpack.c.b16 %v643_v9, %v642_v10 }
  0x3e   : > { %v651_v29 = vrot.slane %v648_v13, 2 }
  0x40   : > { %v653_v34 = vsel %vm347_vm2, %v651_v29, %v652_v30  ;;  %v1378_v30 = vld [vmem:[%s1428_s2] ss:$0 sm:$0xff] }
  0x47   : > { %993 = vmatmul.msk.bf16.gmra.mxu2 %vm249_vm0, %v351_v4 }
  0x49   : > { %978 = vmatmul.msk.bf16.gmra.mxu1 %vm249_vm0, %v288_v20 }
  0x4a   : > { %1027 = vmatmul.msk.bf16.gmra.mxu0 %vm249_vm0, %v502_v5  ;;  %1074 = vmatmul.msk.bf16.vlgmr.msrb.gmra.mxu3 %vm249_vm0, %v722_v23 }
  0x57   : > { %1059 = vmatmul.msk.bf16.vlgmr.msra.gmra.mxu2 %vm249_vm0, %v653_v34 }
  0x59   : > { %1040 = vmatmul.msk.bf16.vlgmr.msra.gmra.mxu1 %vm249_vm0, %v571_v35  ;;  %v1383_v35 = vld [vmem:[%s1429_s3] ss:$0 sm:$0xff] }
  0x5a   : > { %1101 = vmatmul.msk.bf16.vlgmr.msra.gmra.mxu0 %vm249_vm0, %v1125_v36  ;;  %1075 = vmatmul.msk.bf16.gmra.mxu3 %vm249_vm0, %v724_v38 }
  0x67   : > { %1060 = vmatmul.msk.bf16.gmra.mxu2 %vm249_vm0, %v655_v40 }
  0x69   : > { %1041 = vmatmul.msk.bf16.gmra.mxu1 %vm249_vm0, %v573_v42 }
  0x6a   : > { %1102 = vmatmul.msk.bf16.gmra.mxu0 %vm249_vm0, %v1126_v43  ;;  %1076 = vmatmul.msk.bf16.gmra.mxu3 %vm249_vm0, %v723_v33 }
  0x77   : > { %1061 = vmatmul.msk.bf16.gmra.mxu2 %vm249_vm0, %v654_v26 }
  0x79   : > { %1042 = vmatmul.msk.bf16.gmra.mxu1 %vm249_vm0, %v572_v39 }
  0x7a   : > { %1103 = vmatmul.msk.bf16.gmra.mxu0 %vm249_vm0, %v1092_v46 }
  0x96   : > { %v273_v41 = vpop.f32.mrf.mxu1 }
  0x97   : > { %v268_v47 = vpop.f32.mrf.mxu0 }
  0x9a   : > { %v1357_v48 = vpop.f32.mrf.mxu2 }
  0x9d   : > { %v465_v50 = vpop.f32.mrf.mxu3 }
  0x9e   : > { %v275_v49 = vpop.f32.mrf.mxu1 }
  0x9f   : > { %v270_v51 = vpop.f32.mrf.mxu0 }
  0xa2   : > { %v1359_v52 = vpop.f32.mrf.mxu2 }
  0xa5   : > { %v467_v54 = vpop.f32.mrf.mxu3 }
  0xa6   : > { %v319_v53 = vpop.f32.mrf.mxu1 }
  0xa7   : > { %v534_v55 = vpop.f32.mrf.mxu0  ;;  %v320_v9 = vadd.f32 %v319_v53, %v268_v47 }
  0xaa   : > { %v383_v56 = vpop.f32.mrf.mxu2 }
  0xab   : > { %v398_v15 = vadd.f32 %v383_v56, %v320_v9 }
  0xad   : > { %v470_v58 = vpop.f32.mrf.mxu3  ;;  %v480_v18 = vadd.f32 %v465_v50, %v398_v15 }
  0xae   : > { %v321_v57 = vpop.f32.mrf.mxu1 }
  0xaf   : > { %v536_v59 = vpop.f32.mrf.mxu0  ;;  %v322_v19 = vadd.f32 %v321_v57, %v270_v51  ;;  %v549_v23 = vadd.f32 %v534_v55, %v480_v18 }
  0xb2   : > { %v385_v60 = vpop.f32.mrf.mxu2 }
  0xb3   : > { %v399_v22 = vadd.f32 %v385_v60, %v322_v19 }
  0xb5   : > { %v472_v62 = vpop.f32.mrf.mxu3  ;;  %v481_v25 = vadd.f32 %v467_v54, %v399_v22 }
  0xb6   : > { %v324_v61 = vpop.f32.mrf.mxu1 }
  0xb7   : > { %v539_v63 = vpop.f32.mrf.mxu0  ;;  %v325_v28 = vadd.f32 %v324_v61, %v273_v41  ;;  %v550_v36 = vadd.f32 %v536_v59, %v481_v25 }
  0xba   : > { %v388_v0 = vpop.f32.mrf.mxu2 }
  0xbb   : > { %v400_v33 = vadd.f32 %v388_v0, %v325_v28 }
  0xbd   : > { %v1363_v3 = vpop.f32.mrf.mxu3  ;;  %v482_v26 = vadd.f32 %v470_v58, %v400_v33 }
  0xbe   : > { %v326_v1 = vpop.f32.mrf.mxu1 }
  0xbf   : > { %v1361_v2 = vpop.f32.mrf.mxu0  ;;  %v327_v42 = vadd.f32 %v326_v1, %v275_v49  ;;  %v551_v50 = vadd.f32 %v539_v63, %v482_v26 }
  0xc2   : > { %v390_v4 = vpop.f32.mrf.mxu2 }
  0xc3   : > { %v401_v41 = vadd.f32 %v390_v4, %v327_v42 }
  0xc5   : > { %v1367_v7 = vpop.f32.mrf.mxu3  ;;  %v483_v56 = vadd.f32 %v472_v62, %v401_v41 }
  0xc6   : > { %v329_v5 = vpop.f32.mrf.mxu1 }
  0xc7   : > { %v1365_v6 = vpop.f32.mrf.mxu0  ;;  %v330_v49 = vadd.f32 %v329_v5, %v1357_v48  ;;  %v552_v63 = vadd.f32 %v1361_v2, %v483_v56 }
  0xca   : > { %v393_v8 = vpop.f32.mrf.mxu2 }
  0xcb   : > { %v402_v0 = vadd.f32 %v393_v8, %v330_v49 }
  0xcd   : > { %v755_v17 = vpop.f32.mrf.mxu3  ;;  %v484_v18 = vadd.f32 %v1363_v3, %v402_v0 }
  0xce   : > { %v1369_v11 = vpop.f32.mrf.mxu1 }
  0xcf   : > { %v1371_v14 = vpop.f32.mrf.mxu0  ;;  %v332_v8 = vadd.f32 %v1369_v11, %v1359_v52 }
  0xd2   : > { %v1373_v16 = vpop.f32.mrf.mxu2 }
  0xd3   : > { %v403_v2 = vadd.f32 %v1373_v16, %v332_v8 }
  0xd5   : > { %v757_v13 = vpop.f32.mrf.mxu3 }
  0xd6   : > { %v604_v20 = vpop.f32.mrf.mxu1 }
  0xd7   : > { %v832_v12 = vpop.f32.mrf.mxu0  ;;  %v619_v10 = vadd.f32 %v604_v20, %v549_v23  ;;  %v553_v23 = vadd.f32 %v1365_v6, %v484_v18 }
  0xda   : > { %v686_v24 = vpop.f32.mrf.mxu2 }
  0xdb   : > { %v701_v27 = vadd.f32 %v686_v24, %v619_v10 }
  0xdd   : > { %v770_v29 = vadd.f32 %v755_v17, %v701_v27  ;;  %v760_v46 = vpop.f32.mrf.mxu3  ;;  %v485_v27 = vadd.f32 %v1367_v7, %v403_v2 }
  0xde   : > { %v606_v31 = vpop.f32.mrf.mxu1 }
  0xdf   : > { %v834_v32 = vpop.f32.mrf.mxu0  ;;  %v847_v34 = vadd.f32 %v832_v12, %v770_v29  ;;  %v620_v38 = vadd.f32 %v606_v31, %v550_v36  ;;  %v554_v6 = vadd.f32 %v1371_v14, %v485_v27 }
  0xe1   : > { %v857_v37 = vmul.f32 %v1378_v30, %v847_v34 }
  0xe2   : > { %v688_v21 = vpop.f32.mrf.mxu2 }
  0xe3   : > { %v867_v39 = vadd.f32 %v1383_v35, %v857_v37  ;;  %v702_v40 = vadd.f32 %v688_v21, %v620_v38 }
  0xe5   : > { %v873_v43 = vmax.f32 %v867_v39, 0.0  ;;  %v771_v44 = vadd.f32 %v757_v13, %v702_v40  ;;  %v762_v4 = vpop.f32.mrf.mxu3 }
  0xe6   : > { %v609_v45 = vpop.f32.mrf.mxu1 }
  0xe7   : > { %880 = vst.msk [vmem:[%s1391_s14] sm:$0xff] %vm879_vm4, %v873_v43  ;;  %v848_v47 = vadd.f32 %v834_v32, %v771_v44  ;;  %v837_v51 = vpop.f32.mrf.mxu0  ;;  %v621_v54 = vadd.f32 %v609_v45, %v551_v50 }
  0xe9   : > { %v858_v53 = vmul.f32 %v1378_v30, %v848_v47 }
  0xea   : > { %v691_v55 = vpop.f32.mrf.mxu2 }
  0xeb   : > { %v868_v57 = vadd.f32 %v1383_v35, %v858_v53  ;;  %v703_v58 = vadd.f32 %v691_v55, %v621_v54 }
  0xed   : > { %v874_v59 = vmax.f32 %v868_v57, 0.0  ;;  %v772_v60 = vadd.f32 %v760_v46, %v703_v58  ;;  %v765_v24 = vpop.f32.mrf.mxu3 }
  0xee   : > { %v611_v61 = vpop.f32.mrf.mxu1 }
  0xef   : > { %881 = vst.msk [vmem:[%s1391_s14 + $0x8] sm:$0xff] %vm879_vm4, %v874_v59  ;;  %v849_v1 = vadd.f32 %v837_v51, %v772_v60  ;;  %v622_v15 = vadd.f32 %v611_v61, %v552_v63  ;;  %v839_v62 = vpop.f32.mrf.mxu0 }
  0xf1   : > { %v859_v9 = vmul.f32 %v1378_v30, %v849_v1 }
  0xf2   : > { %v693_v17 = vpop.f32.mrf.mxu2 }
  0xf3   : > { %v869_v48 = vadd.f32 %v1383_v35, %v859_v9  ;;  %v704_v5 = vadd.f32 %v693_v17, %v622_v15 }
  0xf5   : > { %v875_v19 = vmax.f32 %v869_v48, 0.0  ;;  %v773_v20 = vadd.f32 %v762_v4, %v704_v5  ;;  %v767_v37 = vpop.f32.mrf.mxu3 }
  0xf6   : > { %v614_v12 = vpop.f32.mrf.mxu1 }
  0xf7   : > { %882 = vst.msk [vmem:[%s1391_s14 + $0x10] sm:$0xff] %vm879_vm4, %v875_v19  ;;  %v850_v22 = vadd.f32 %v839_v62, %v773_v20  ;;  %v623_v3 = vadd.f32 %v614_v12, %v553_v23  ;;  %v842_v13 = vpop.f32.mrf.mxu0 }
  0xf9   : > { %v860_v10 = vmul.f32 %v1378_v30, %v850_v22 }
  0xfa   : > { %v696_v25 = vpop.f32.mrf.mxu2 }
  0xfb   : > { %v870_v52 = vadd.f32 %v1383_v35, %v860_v10  ;;  %v705_v11 = vadd.f32 %v696_v25, %v623_v3 }
  0xfd   : > { %v876_v28 = vmax.f32 %v870_v52, 0.0  ;;  %v774_v29 = vadd.f32 %v765_v24, %v705_v11 }
  0xfe   : > { %v616_v16 = vpop.f32.mrf.mxu1 }
  0xff   : > { %883 = vst.msk [vmem:[%s1391_s14 + $0x18] sm:$0xff] %vm879_vm4, %v876_v28  ;;  %v851_v31 = vadd.f32 %v842_v13, %v774_v29  ;;  %v624_v33 = vadd.f32 %v616_v16, %v554_v6  ;;  %v844_v26 = vpop.f32.mrf.mxu0 }
 0x101   : > { %v861_v32 = vmul.f32 %v1378_v30, %v851_v31 }
 0x102   : > { %v698_v34 = vpop.f32.mrf.mxu2 }
 0x103   : > { %v871_v7 = vadd.f32 %v1383_v35, %v861_v32  ;;  %v706_v36 = vadd.f32 %v698_v34, %v624_v33 }
 0x105   : > { %v877_v38 = vmax.f32 %v871_v7, 0.0  ;;  %v775_v21 = vadd.f32 %v767_v37, %v706_v36 }
 0x107   : > { %884 = vst.msk [vmem:[%s1391_s14 + $0x20] sm:$0xff] %vm879_vm4, %v877_v38  ;;  %v852_v39 = vadd.f32 %v844_v26, %v775_v21 }
 0x109   : > { %v862_v40 = vmul.f32 %v1378_v30, %v852_v39 }
 0x10b   : > { %v872_v42 = vadd.f32 %v1383_v35, %v862_v40 }
 0x10d   : > { %v878_v14 = vmax.f32 %v872_v42, 0.0 }
 0x10f   : > { %886 = vst.msk [vmem:[%s1391_s14 + $0x28] sm:$0x1] %vm885_vm5, %v878_v14 }
 0x110 PF: > { %s14_s15 = sadd.s32 1, %s1161_s15  }
 0x111   : > { %p11_p4 = scmp.ge.s32.totalorder %s14_s15, 4  }
 0x113   :  { %13 = sbr.rel (!%p11_p4) target bundleno = 1 (0x1), region = 74 }

// kernel: _lambda_.7
= control target key start
LH: loop header
LB: loop body
LE: loop exit
PB: predicated region body
PF: predicated region fallthrough
CT: control target
= control target key end

     0   :  { %s1681_s15 = smov 0   ;;  %s2031_s0 = inlined_call_operand.vmem [shape: bf16[2,169,64], index: 0, kind: input, shape index: {}]   ;;  %s2032_s1 = inlined_call_operand.vmem [shape: bf16[9,64,128], index: 1, kind: input, shape index: {}]   ;;  %s2033_s2 = inlined_call_operand.vmem [shape: f32[1,128], index: 2, kind: input, shape index: {}]   ;;  %s2034_s3 = inlined_call_operand.vmem [shape: f32[1,128], index: 3, kind: input, shape index: {}]   ;;  %s2035_s4 = inlined_call_operand.vmem [shape: f32[2,57,128], index: 4, kind: output, shape index: {}]  }
   0x1 LB: > { %s1237_s16 = sadd.s32 4294967295, %s1654_s15   ;;  %p1241_p0 = scmp.ge.s32.totalorder %s1654_s15, 1  ;;  %s1654_s15 = sphi %s1681_s15, %s14_s15  }
   0x2   : > { %p162_p1 = scmp.lt.s32.totalorder %s1654_s15, 3 }
   0x4   : > { %p163_p2 = pnand %p1241_p0, %p162_p1 }
   0x5   : > { %p188_p3 = scmp.lt.s32.totalorder (!%p163_p2), %s1237_s16, 1 }
   0x6   : > { %166 = sbr.rel (%p163_p2) target bundleno = 308 (0x134), region = 36 }
   0xb   : > { %v1573_v0 = vld [vmem:[%s2032_s1 + $0x38] sm:$0xff]  ;;  %v1572_v1 = vld [vmem:[%s2032_s1 + $0x30] sm:$0xff]  ;;  %s2037_s16 = smov (!%p188_p3, %s1237_s16), 1  ;;  %v1571_v2 = vld [vmem:[%s2032_s1 + $0x28] sm:$0xff]  ;;  %vm246_vm0 = vcmask 1045504   ;;  %vm278_vm1 = vcmask 523264  }
   0xc   : > { %1625 = vmatpush.bf16.msra.mxu1 %v1573_v0  ;;  %1626 = vmatpush.bf16.msra.mxu2 %v1573_v0  ;;  %s1637_s21 = smul.u32 88, %s2037_s16  ;;  %v1570_v12 = vld [vmem:[%s2032_s1 + $0x20] sm:$0xff]  ;;  %v1581_v16 = vld [vmem:[%s2032_s1 + $0x58] sm:$0xff]  ;;  %v1580_v25 = vld [vmem:[%s2032_s1 + $0x50] sm:$0xff]  ;;  %s1563_s27 = sshll.u32 %s2037_s16, 6 }
   0xd   : > { %1627 = vmatpush.bf16.msra.mxu3 %v1573_v0  ;;  %295 = vmatpush.bf16.msra.mxu0 %v1573_v0  ;;  %v1569_v18 = vld [vmem:[%s2032_s1 + $0x18] sm:$0xff]  ;;  %v1568_v26 = vld [vmem:[%s2032_s1 + $0x10] sm:$0xff]  ;;  %v1579_v29 = vld [vmem:[%s2032_s1 + $0x48] sm:$0xff]  ;;  %s1982_s30 = scalar_lea.vmem %s2035_s4, %s1563_s27 }
   0xe   : > { %s1704_s26 = scalar_lea.vmem %s2031_s0, %s1637_s21  ;;  %v1589_v22 = vld [vmem:[%s2032_s1 + $0x78] sm:$0xff]  ;;  %v1588_v27 = vld [vmem:[%s2032_s1 + $0x70] sm:$0xff]  ;;  %v1567_v30 = vld [vmem:[%s2032_s1 + $0x8] sm:$0xff] }
   0xf   : > { %v1707_v3 = vld [vmem:[%s1704_s26 + $0x8] sm:$0xff]  ;;  %v1710_v4 = vld [vmem:[%s1704_s26 + $0x10] sm:$0xff]  ;;  %v1713_v5 = vld [vmem:[%s1704_s26 + $0x18] sm:$0xff]  }
  0x10   : > { %1628 = vmatpush.bf16.msra.mxu1 %v1572_v1  ;;  %1629 = vmatpush.bf16.msra.mxu2 %v1572_v1  ;;  %v216_v6 = vld [vmem:[%s1704_s26 + $0x1c] sm:$0x7]  ;;  %v240_v7 = vunpack.c.l.b16 %v1713_v5  ;;  %v1622_v8 = vld [vmem:[%s1704_s26] sm:$0xf0]  ;;  %v1623_v9 = vld [vmem:[%s1704_s26] sm:$0xc]  ;;  %v643_v42 = vunpack.c.h.b16 %v1713_v5 }
  0x11   : > { %1630 = vmatpush.bf16.msra.mxu3 %v1572_v1  ;;  %296 = vmatpush.bf16.msra.mxu0 %v1572_v1  ;;  %v241_v10 = vunpack.c.l.b16 %v216_v6  ;;  %v1624_v11 = vor.u32 %v1623_v9, %v1622_v8  ;;  %v248_v13 = vrot.slane %v1707_v3, 2  ;;  %v250_v14 = vrot.slane %v1710_v4, 2  ;;  %v1595_v24 = vld [vmem:[%s2032_s1 + $0x98] sm:$0xff]  ;;  %v1594_v28 = vld [vmem:[%s2032_s1 + $0x90] sm:$0xff]  ;;  %v1587_v33 = vld [vmem:[%s2032_s1 + $0x68] sm:$0xff] }
  0x12   : > { %v1355_v31 = vld [vmem:[%s1704_s26 + $0x18] sm:$0xc]  ;;  %v1582_v32 = vld [vmem:[%s1704_s26 + $0x18] sm:$0xf0]  ;;  %v1593_v34 = vld [vmem:[%s2032_s1 + $0x88] sm:$0xff] }
  0x13   : > { %v245_v15 = vpack.c.b16 %v241_v10, %v240_v7  ;;  %v247_v17 = vrot.slane %v1624_v11, 2  ;;  %v251_v20 = vsel %vm246_vm0, %v248_v13, %v250_v14  ;;  %v1583_v35 = vld [vmem:[%s1704_s26 + $0x20] sm:$0xff]  ;;  %v1356_v36 = vor.u32 %v1582_v32, %v1355_v31  ;;  %v1605_v40 = vld [vmem:[%s2032_s1 + $0xd8] sm:$0xff]  ;;  %v1604_v54 = vld [vmem:[%s2032_s1 + $0xd0] sm:$0xff] }
  0x14   : > { %1631 = vmatpush.bf16.msra.mxu1 %v1571_v2  ;;  %1632 = vmatpush.bf16.msra.mxu2 %v1571_v2  ;;  %v1773_v37 = vld [vmem:[%s1704_s26 + $0x20] sm:$0xf]  ;;  %v1599_v41 = vld [vmem:[%s2032_s1 + $0xb8] sm:$0xff]  ;;  %v539_v47 = vrot.slane %v1583_v35, 2  ;;  %v1574_v50 = vld [vmem:[%s1704_s26 + $0x4] sm:$0xff] }
  0x15   : > { %1633 = vmatpush.bf16.msra.mxu3 %v1571_v2  ;;  %297 = vmatpush.bf16.msra.mxu0 %v1571_v2  ;;  %v252_v19 = vrot.slane %v245_v15, 2  ;;  %v249_v23 = vsel %vm246_vm0, %v247_v17, %v248_v13  ;;  %v1578_v38 = vld [vmem:[%s2032_s1 + $0x40] sm:$0xff]  ;;  %v644_v43 = vunpack.c.l.b16 %v1773_v37  ;;  %v538_v46 = vrot.slane %v1356_v36, 2  ;;  %v1609_v48 = vld [vmem:[%s2032_s1 + $0xf8] sm:$0xff]  ;;  %v1598_v55 = vld [vmem:[%s2032_s1 + $0xb0] sm:$0xff] }
  0x16   : > { %v1566_v39 = vld [vmem:[%s2032_s1] sm:$0xff]  ;;  %v1617_v49 = vld [vmem:[%s2032_s1 + $0x118] sm:$0xff]  ;;  %v1608_v56 = vld [vmem:[%s2032_s1 + $0xf0] sm:$0xff] }
  0x17   : > { %v253_v21 = vsel %vm246_vm0, %v250_v14, %v252_v19  ;;  %v1586_v44 = vld [vmem:[%s2032_s1 + $0x60] sm:$0xff]  ;;  %v651_v52 = vpack.c.b16 %v644_v43, %v643_v42  ;;  %v540_v53 = vsel %vm246_vm0, %v538_v46, %v539_v47  ;;  %v1616_v57 = vld [vmem:[%s2032_s1 + $0x110] sm:$0xff]  ;;  %v1603_v58 = vld [vmem:[%s2032_s1 + $0xc8] sm:$0xff] }
  0x18   : > { %1634 = vmatpush.bf16.msra.mxu1 %v1570_v12  ;;  %1635 = vmatpush.bf16.msra.mxu2 %v1570_v12  ;;  %v1592_v45 = vld [vmem:[%s2032_s1 + $0x80] sm:$0xff]  ;;  %v1597_v59 = vld [vmem:[%s2032_s1 + $0xa8] sm:$0xff]  ;;  %v1367_v10 = vld [vmem:[%s1704_s26 + $0x30] sm:$0xf] }
  0x19   : > { %1636 = vmatpush.bf16.msra.mxu3 %v1570_v12  ;;  %298 = vmatpush.bf16.msra.mxu0 %v1570_v12  ;;  %v1619_v51 = vld [vmem:[%s1704_s26] sm:$0xff]   ;;  %v1607_v60 = vld [vmem:[%s2032_s1 + $0xe8] sm:$0xff]  ;;  %v1585_v11 = vld [vmem:[%s1704_s26 + $0x30] sm:$0x70] }
  0x1a   : > { %v1615_v61 = vld [vmem:[%s2032_s1 + $0x108] sm:$0xff]  ;;  %v1602_v6 = vld [vmem:[%s2032_s1 + $0xc0] sm:$0xff]  ;;  %v1368_v12 = vor.u32 %v1585_v11, %v1367_v10  ;;  %v1576_v14 = vld [vmem:[%s1704_s26 + $0x14] sm:$0xff] }
  0x1b   : > { %1278 = vmatmul.msk.bf16.vlgmr.msra.gmra.mxu1 %vm278_vm1, %v251_v20  ;;  %1279 = vmatmul.msk.bf16.vlgmr.msra.gmra.mxu2 %vm278_vm1, %v253_v21  ;;  %v1584_v62 = vld [vmem:[%s1704_s26 + $0x28] sm:$0xff]  ;;  %v1606_v8 = vld [vmem:[%s2032_s1 + $0xe0] sm:$0xff]  ;;  %v206_v17 = vld [vmem:[%s1704_s26 + $0x1c] sm:$0x1] }
  0x1c   : > { %468 = vmatpush.bf16.msrb.mxu2 %v1581_v16  ;;  %366 = vmatpush.bf16.msrb.mxu1 %v1569_v18  ;;  %v541_v63 = vrot.slane %v1584_v62, 2  ;;  %v1575_v0 = vld [vmem:[%s1704_s26 + $0xc] sm:$0xff]  ;;  %v1837_v1 = vld [vmem:[%s1704_s26 + $0x24] sm:$0xff]  ;;  %v543_v13 = vrot.slane %v1368_v12, 2  ;;  %v624_v18 = vld [vmem:[%s1704_s26 + $0x34] sm:$0xff]   ;;  %v323_v20 = vunpack.c.l.b16 %v206_v17 }
  0x1d   : > { %1280 = vmatmul.msk.bf16.vlgmr.msra.gmra.mxu3 %vm278_vm1, %v252_v19  ;;  %1277 = vmatmul.msk.bf16.vlgmr.msra.gmra.mxu0 %vm278_vm1, %v249_v23  ;;  %v1614_v9 = vld [vmem:[%s2032_s1 + $0x100] sm:$0xff]  ;;  %v1862_v15 = vld [vmem:[%s1704_s26 + $0x2c] sm:$0xff]  ;;  %v625_v19 = vld [vmem:[%s1704_s26 + $0x38] sm:$0x1]  ;;  %v649_v23 = vunpack.c.l.b16 %v624_v18  ;;  %v746_v35 = vrot.slane %v1837_v1, 2 }
  0x1e   : > { %585 = vmatpush.bf16.msrb.mxu3 %v1589_v22  ;;  %695 = vmatpush.bf16.msrb.mxu0 %v1595_v24  ;;  %v542_v2 = vsel %vm246_vm0, %v539_v47, %v541_v63  ;;  %v544_v16 = vsel %vm246_vm0, %v541_v63, %v543_v13  ;;  %v1323_v21 = vld [vmem:[%s1704_s26 + $0x1c] sm:$0xf]  ;;  %v1577_v22 = vld [vmem:[%s1704_s26 + $0x1c] sm:$0x10]  ;;  %v650_v24 = vunpack.c.l.b16 %v625_v19  ;;  %v832_v62 = vld [vmem:[%s1704_s26 + $0x50] sm:$0x1] }
  0x1f   : > { %v1600_v32 = vld [vmem:[%s1704_s26 + $0x3c] sm:$0xff]  ;;  %v857_v63 = vunpack.c.l.b16 %v832_v62 }
  0x20   : > { %469 = vmatpush.bf16.msrb.mxu2 %v1580_v25  ;;  %367 = vmatpush.bf16.msrb.mxu1 %v1568_v26  ;;  %v1324_v25 = vor.u32 %v1577_v22, %v1323_v21  ;;  %v654_v26 = vpack.c.b16 %v650_v24, %v649_v23  ;;  %v1610_v42 = vld [vmem:[%s1704_s26 + $0x38] sm:$0xff]  ;;  %v1611_v47 = vld [vmem:[%s1704_s26 + $0x40] sm:$0xff] }
  0x22   : > { %586 = vmatpush.bf16.msrb.mxu3 %v1588_v27  ;;  %696 = vmatpush.bf16.msrb.mxu0 %v1594_v28  ;;  %v728_v27 = vld [vmem:[%s1704_s26 + $0x1c] sm:$0xc]  ;;  %v935_v28 = vld [vmem:[%s1704_s26 + $0x34] sm:$0xc] }
  0x23   : > { %v948_v31 = vunpack.c.l.b16 %v935_v28 }
  0x24   : > { %470 = vmatpush.bf16.msrb.mxu2 %v1579_v29  ;;  %368 = vmatpush.bf16.msrb.mxu1 %v1567_v30  ;;  %v741_v29 = vunpack.c.l.b16 %v728_v27  ;;  %v851_v30 = vunpack.c.h.b16 %v624_v18 }
  0x26   : > { %587 = vmatpush.bf16.msrb.mxu3 %v1587_v33  ;;  %697 = vmatpush.bf16.msrb.mxu0 %v1593_v34  ;;  %v743_v5 = vpack.c.b16 %v644_v43, %v741_v29  ;;  %v950_v33 = vpack.c.b16 %v851_v30, %v948_v31  ;;  %v1601_v43 = vld [vmem:[%s1704_s26 + $0x44] sm:$0xff] }
  0x28   : > { %471 = vmatpush.bf16.msrb.mxu2 %v1578_v38  ;;  %369 = vmatpush.bf16.msrb.mxu1 %v1566_v39  ;;  %v745_v36 = vrot.slane %v743_v5, 2  ;;  %v952_v38 = vrot.slane %v950_v33, 2  ;;  %v953_v39 = vrot.slane %v1600_v32, 2 }
  0x2a   : > { %588 = vmatpush.bf16.msrb.mxu3 %v1586_v44  ;;  %698 = vmatpush.bf16.msrb.mxu0 %v1592_v45  ;;  %v954_v37 = vsel %vm246_vm0, %v952_v38, %v953_v39  ;;  %v748_v44 = vrot.slane %v1862_v15, 2  ;;  %v955_v45 = vrot.slane %v1601_v43, 2 }
  0x2b   : > { %1297 = vmatmul.msk.bf16.vlgmr.msrb.gmra.mxu1 %vm278_vm1, %v1619_v51  ;;  %1341 = vmatmul.msk.bf16.vlgmr.msrb.gmra.mxu2 %vm278_vm1, %v1574_v50  ;;  %v831_v50 = vld [vmem:[%s1704_s26 + $0x4c] sm:$0xf]  ;;  %v936_v51 = vld [vmem:[%s1704_s26 + $0x50] sm:$0x7] }
  0x2c   : > { %902 = vmatpush.bf16.msra.mxu2 %v1605_v40  ;;  %792 = vmatpush.bf16.msra.mxu1 %v1599_v41  ;;  %v747_v41 = vsel %vm246_vm0, %v745_v36, %v746_v35  ;;  %v749_v46 = vsel %vm246_vm0, %v746_v35, %v748_v44 }
  0x2d   : > { %1385 = vmatmul.msk.bf16.vlgmr.msrb.gmra.mxu3 %vm278_vm1, %v540_v53  ;;  %1421 = vmatmul.msk.bf16.vlgmr.msrb.gmra.mxu0 %vm278_vm1, %v651_v52  ;;  %v856_v53 = vunpack.c.l.b16 %v831_v50 }
  0x2e   : > { %999 = vmatpush.bf16.msra.mxu3 %v1609_v48  ;;  %1109 = vmatpush.bf16.msra.mxu0 %v1617_v49  ;;  %v956_v48 = vsel %vm246_vm0, %v953_v39, %v955_v45  ;;  %v729_v49 = vld [vmem:[%s1704_s26 + $0x38] sm:$0x7] }
  0x2f   : > { %v742_v52 = vunpack.c.l.b16 %v729_v49 }
  0x30   : > { %903 = vmatpush.bf16.msra.mxu2 %v1604_v54  ;;  %793 = vmatpush.bf16.msra.mxu1 %v1598_v55  ;;  %v949_v54 = vunpack.c.l.b16 %v936_v51 }
  0x31   : > { %v744_v55 = vpack.c.b16 %v742_v52, %v649_v23 }
  0x32   : > { %1000 = vmatpush.bf16.msra.mxu3 %v1608_v56  ;;  %1110 = vmatpush.bf16.msra.mxu0 %v1616_v57  ;;  %v951_v56 = vpack.c.b16 %v949_v54, %v856_v53 }
  0x33   : > { %v750_v57 = vrot.slane %v744_v55, 2 }
  0x34   : > { %904 = vmatpush.bf16.msra.mxu2 %v1603_v58  ;;  %794 = vmatpush.bf16.msra.mxu1 %v1597_v59  ;;  %v957_v58 = vrot.slane %v951_v56, 2 }
  0x35   : > { %v751_v59 = vsel %vm246_vm0, %v748_v44, %v750_v57 }
  0x36   : > { %1001 = vmatpush.bf16.msra.mxu3 %v1607_v60  ;;  %1111 = vmatpush.bf16.msra.mxu0 %v1615_v61  ;;  %v1612_v60 = vld [vmem:[%s1704_s26 + $0x48] sm:$0xff]  ;;  %v958_v61 = vsel %vm246_vm0, %v955_v45, %v957_v58 }
  0x38   : > { %905 = vmatpush.bf16.msra.mxu2 %v1602_v6 }
  0x3a   : > { %1002 = vmatpush.bf16.msra.mxu3 %v1606_v8  ;;  %1112 = vmatpush.bf16.msra.mxu0 %v1614_v9 }
  0x3b   : > { %1298 = vmatmul.msk.bf16.gmra.mxu1 %vm278_vm1, %v1707_v3  ;;  %1342 = vmatmul.msk.bf16.gmra.mxu2 %vm278_vm1, %v1575_v0  ;;  %v1596_v3 = vld [vmem:[%s2032_s1 + $0xa0] sm:$0xff]  ;;  %v1539_v0 = vld [vmem:[%s1704_s26 + $0x50] sm:$0xf] }
  0x3c   : > { %795 = vmatpush.bf16.msra.mxu1 %v1596_v3 }
  0x3d   : > { %1386 = vmatmul.msk.bf16.gmra.mxu3 %vm278_vm1, %v542_v2  ;;  %1422 = vmatmul.msk.bf16.gmra.mxu0 %vm278_vm1, %v1837_v1  ;;  %v1613_v1 = vld [vmem:[%s1704_s26 + $0x50] sm:$0x10]  ;;  %v861_v2 = vpack.c.b16 %v857_v63, %v856_v53 }
  0x3e   : > { %v1540_v8 = vor.u32 %v1613_v1, %v1539_v0  ;;  %v1974_v0 = vld [vmem:[%s2034_s3] ss:$0 sm:$0xff] }
  0x4b   : > { %1299 = vmatmul.msk.bf16.gmra.mxu1 %vm278_vm1, %v1710_v4  ;;  %1343 = vmatmul.msk.bf16.gmra.mxu2 %vm278_vm1, %v1576_v14  ;;  %v325_v4 = vpack.c.b16 %v323_v20, %v240_v7  ;;  %v825_v7 = vld [vmem:[%s1704_s26 + $0x34] sm:$0xf] }
  0x4c   : > { %v850_v34 = vunpack.c.l.b16 %v825_v7 }
  0x4d   : > { %1387 = vmatmul.msk.bf16.gmra.mxu3 %vm278_vm1, %v544_v16  ;;  %1423 = vmatmul.msk.bf16.gmra.mxu0 %vm278_vm1, %v1862_v15 }
  0x4e   : > { %v858_v40 = vpack.c.b16 %v851_v30, %v850_v34 }
  0x5b   : > { %1300 = vmatmul.msk.bf16.gmra.mxu1 %vm278_vm1, %v325_v4  ;;  %1344 = vmatmul.msk.bf16.gmra.mxu2 %vm278_vm1, %v1324_v25 }
  0x5d   : > { %1388 = vmatmul.msk.bf16.gmra.mxu3 %vm278_vm1, %v543_v13  ;;  %1424 = vmatmul.msk.bf16.gmra.mxu0 %vm278_vm1, %v654_v26 }
  0x6b   : > { %1449 = vmatmul.msk.bf16.vlgmr.msra.gmra.mxu1 %vm278_vm1, %v747_v41  ;;  %1485 = vmatmul.msk.bf16.vlgmr.msra.gmra.mxu2 %vm278_vm1, %v858_v40 }
  0x6d   : > { %1513 = vmatmul.msk.bf16.vlgmr.msra.gmra.mxu3 %vm278_vm1, %v954_v37  ;;  %1557 = vmatmul.msk.bf16.vlgmr.msra.gmra.mxu0 %vm278_vm1, %v1610_v42 }
  0x7b   : > { %1450 = vmatmul.msk.bf16.gmra.mxu1 %vm278_vm1, %v749_v46  ;;  %1486 = vmatmul.msk.bf16.gmra.mxu2 %vm278_vm1, %v1600_v32 }
  0x7d   : > { %1514 = vmatmul.msk.bf16.gmra.mxu3 %vm278_vm1, %v956_v48  ;;  %1558 = vmatmul.msk.bf16.gmra.mxu0 %vm278_vm1, %v1611_v47 }
  0x8b   : > { %1451 = vmatmul.msk.bf16.gmra.mxu1 %vm278_vm1, %v751_v59  ;;  %1487 = vmatmul.msk.bf16.gmra.mxu2 %vm278_vm1, %v1601_v43 }
  0x8d   : > { %1515 = vmatmul.msk.bf16.gmra.mxu3 %vm278_vm1, %v958_v61  ;;  %1559 = vmatmul.msk.bf16.gmra.mxu0 %vm278_vm1, %v1612_v60  ;;  %v1969_v60 = vld [vmem:[%s2033_s2] ss:$0 sm:$0xff] }
  0x98   : > { %v305_v6 = vpop.f32.mrf.mxu1 }
  0x9a   : > { %v300_v3 = vpop.f32.mrf.mxu0 }
  0x9b   : > { %1452 = vmatmul.msk.bf16.gmra.mxu1 %vm278_vm1, %v750_v57  ;;  %1488 = vmatmul.msk.bf16.gmra.mxu2 %vm278_vm1, %v861_v2 }
  0x9d   : > { %1516 = vmatmul.msk.bf16.gmra.mxu3 %vm278_vm1, %v957_v58  ;;  %1560 = vmatmul.msk.bf16.gmra.mxu0 %vm278_vm1, %v1540_v8 }
  0x9e   : > { %v1922_v9 = vpop.f32.mrf.mxu2 }
  0xa0   : > { %v1924_v10 = vpop.f32.mrf.mxu3  ;;  %v1926_v11 = vpop.f32.mrf.mxu1 }
  0xa2   : > { %v302_v12 = vpop.f32.mrf.mxu0 }
  0xa6   : > { %v1928_v13 = vpop.f32.mrf.mxu2 }
  0xa8   : > { %v1930_v14 = vpop.f32.mrf.mxu3  ;;  %v371_v15 = vpop.f32.mrf.mxu1 }
  0xa9   : > { %v372_v42 = vadd.f32 %v371_v15, %v300_v3 }
  0xaa   : > { %v700_v16 = vpop.f32.mrf.mxu0 }
  0xae   : > { %v473_v17 = vpop.f32.mrf.mxu2 }
  0xaf   : > { %v493_v43 = vadd.f32 %v473_v17, %v372_v42 }
  0xb0   : > { %v590_v18 = vpop.f32.mrf.mxu3  ;;  %v373_v19 = vpop.f32.mrf.mxu1 }
  0xb1   : > { %v610_v45 = vadd.f32 %v590_v18, %v493_v43  ;;  %v374_v48 = vadd.f32 %v373_v19, %v302_v12 }
  0xb2   : > { %v702_v20 = vpop.f32.mrf.mxu0 }
  0xb3   : > { %v720_v51 = vadd.f32 %v700_v16, %v610_v45 }
  0xb6   : > { %v475_v21 = vpop.f32.mrf.mxu2 }
  0xb7   : > { %v494_v50 = vadd.f32 %v475_v21, %v374_v48 }
  0xb8   : > { %v592_v22 = vpop.f32.mrf.mxu3  ;;  %v376_v23 = vpop.f32.mrf.mxu1 }
  0xb9   : > { %v611_v54 = vadd.f32 %v592_v22, %v494_v50  ;;  %v377_v58 = vadd.f32 %v376_v23, %v305_v6 }
  0xba   : > { %v705_v24 = vpop.f32.mrf.mxu0 }
  0xbb   : > { %v721_v1 = vadd.f32 %v702_v20, %v611_v54 }
  0xbe   : > { %v478_v4 = vpop.f32.mrf.mxu2 }
  0xbf   : > { %v495_v62 = vadd.f32 %v478_v4, %v377_v58 }
  0xc0   : > { %v595_v25 = vpop.f32.mrf.mxu3  ;;  %v378_v26 = vpop.f32.mrf.mxu1 }
  0xc1   : > { %v612_v3 = vadd.f32 %v595_v25, %v495_v62  ;;  %v379_v18 = vadd.f32 %v378_v26, %v1926_v11 }
  0xc2   : > { %v1932_v27 = vpop.f32.mrf.mxu0 }
  0xc3   : > { %v722_v4 = vadd.f32 %v705_v24, %v612_v3 }
  0xc6   : > { %v480_v28 = vpop.f32.mrf.mxu2 }
  0xc7   : > { %v496_v22 = vadd.f32 %v480_v28, %v379_v18 }
  0xc8   : > { %v597_v29 = vpop.f32.mrf.mxu3  ;;  %v1934_v30 = vpop.f32.mrf.mxu1 }
  0xc9   : > { %v613_v45 = vadd.f32 %v597_v29, %v496_v22  ;;  %v382_v11 = vadd.f32 %v1934_v30, %v1922_v9 }
  0xca   : > { %v1936_v31 = vpop.f32.mrf.mxu0 }
  0xce   : > { %v1938_v5 = vpop.f32.mrf.mxu2 }
  0xd0   : > { %v1940_v7 = vpop.f32.mrf.mxu3  ;;  %v1942_v32 = vpop.f32.mrf.mxu1 }
  0xd2   : > { %v1944_v33 = vpop.f32.mrf.mxu0 }
  0xd6   : > { %v1946_v34 = vpop.f32.mrf.mxu2 }
  0xd8   : > { %v1948_v35 = vpop.f32.mrf.mxu3  ;;  %v1950_v36 = vpop.f32.mrf.mxu1 }
  0xda   : > { %v1952_v38 = vpop.f32.mrf.mxu0 }
  0xde   : > { %v1954_v39 = vpop.f32.mrf.mxu2 }
  0xe0   : > { %v1956_v40 = vpop.f32.mrf.mxu3  ;;  %v1958_v41 = vpop.f32.mrf.mxu1 }
  0xe2   : > { %v1960_v37 = vpop.f32.mrf.mxu0 }
  0xe6   : > { %v1962_v44 = vpop.f32.mrf.mxu2 }
  0xe8   : > { %v1964_v46 = vpop.f32.mrf.mxu3  ;;  %v797_v47 = vpop.f32.mrf.mxu1 }
  0xe9   : > { %v817_v52 = vadd.f32 %v797_v47, %v720_v51 }
  0xea   : > { %v1114_v49 = vpop.f32.mrf.mxu0 }
  0xee   : > { %v907_v53 = vpop.f32.mrf.mxu2 }
  0xef   : > { %v927_v55 = vadd.f32 %v907_v53, %v817_v52  ;;  %v497_v52 = vadd.f32 %v1938_v5, %v382_v11  ;;  %v723_v53 = vadd.f32 %v1932_v27, %v613_v45 }
  0xf0   : > { %v1004_v56 = vpop.f32.mrf.mxu3  ;;  %v799_v57 = vpop.f32.mrf.mxu1 }
  0xf1   : > { %v1024_v59 = vadd.f32 %v1004_v56, %v927_v55  ;;  %v818_v8 = vadd.f32 %v799_v57, %v721_v1  ;;  %v614_v56 = vadd.f32 %v1940_v7, %v497_v52 }
  0xf2   : > { %v1116_v61 = vpop.f32.mrf.mxu0 }
  0xf3   : > { %v1134_v63 = vadd.f32 %v1114_v49, %v1024_v59  ;;  %v384_v59 = vadd.f32 %v1942_v32, %v1928_v13 }
  0xf5   : > { %v1146_v2 = vmul.f32 %v1969_v60, %v1134_v63  ;;  %v498_v62 = vadd.f32 %v1946_v34, %v384_v59  ;;  %v724_v63 = vadd.f32 %v1936_v31, %v614_v56  ;;  %v387_v34 = vadd.f32 %v1950_v36, %v1924_v10 }
  0xf6   : > { %v909_v6 = vpop.f32.mrf.mxu2 }
  0xf7   : > { %v1158_v12 = vadd.f32 %v1974_v0, %v1146_v2  ;;  %v928_v15 = vadd.f32 %v909_v6, %v818_v8  ;;  %v615_v6 = vadd.f32 %v1948_v35, %v498_v62 }
  0xf8   : > { %v1006_v16 = vpop.f32.mrf.mxu3  ;;  %v802_v17 = vpop.f32.mrf.mxu1 }
  0xf9   : > { %v1166_v19 = vmax.f32 %v1158_v12, 0.0  ;;  %v1025_v20 = vadd.f32 %v1006_v16, %v928_v15  ;;  %v819_v42 = vadd.f32 %v802_v17, %v722_v4  ;;  %v499_v17 = vadd.f32 %v1954_v39, %v387_v34 }
  0xfa   : > { %v1119_v21 = vpop.f32.mrf.mxu0  ;;  %v725_v18 = vadd.f32 %v1944_v33, %v615_v6  ;;  %v389_v39 = vadd.f32 %v1958_v41, %v1930_v14 }
  0xfb   : > { %1174 = vst [vmem:[%s1982_s30] sm:$0xff] %v1166_v19  ;;  %v1135_v23 = vadd.f32 %v1116_v61, %v1025_v20  ;;  %v616_v22 = vadd.f32 %v1956_v40, %v499_v17 }
  0xfc   : > { %v500_v33 = vadd.f32 %v1962_v44, %v389_v39 }
  0xfd   : > { %v1147_v25 = vmul.f32 %v1969_v60, %v1135_v23  ;;  %v726_v45 = vadd.f32 %v1952_v38, %v616_v22 }
  0xfe   : > { %v912_v43 = vpop.f32.mrf.mxu2 }
  0xff   : > { %v1159_v47 = vadd.f32 %v1974_v0, %v1147_v25  ;;  %v929_v48 = vadd.f32 %v912_v43, %v819_v42 }
 0x100   : > { %v1009_v49 = vpop.f32.mrf.mxu3  ;;  %v804_v50 = vpop.f32.mrf.mxu1 }
 0x101   : > { %v1167_v26 = vmax.f32 %v1159_v47, 0.0  ;;  %v1026_v51 = vadd.f32 %v1009_v49, %v929_v48  ;;  %v820_v54 = vadd.f32 %v804_v50, %v723_v53  ;;  %v617_v49 = vadd.f32 %v1964_v46, %v500_v33 }
 0x102   : > { %v1121_v28 = vpop.f32.mrf.mxu0 }
 0x103   : > { %1175 = vst [vmem:[%s1982_s30 + $0x8] sm:$0xff] %v1167_v26  ;;  %v1136_v24 = vadd.f32 %v1119_v21, %v1026_v51  ;;  %v727_v38 = vadd.f32 %v1960_v37, %v617_v49 }
 0x105   : > { %v1148_v29 = vmul.f32 %v1969_v60, %v1136_v24 }
 0x106   : > { %v914_v55 = vpop.f32.mrf.mxu2 }
 0x107   : > { %v1160_v57 = vadd.f32 %v1974_v0, %v1148_v29  ;;  %v930_v58 = vadd.f32 %v914_v55, %v820_v54 }
 0x108   : > { %v1011_v9 = vpop.f32.mrf.mxu3  ;;  %v807_v30 = vpop.f32.mrf.mxu1 }
 0x109   : > { %v1168_v5 = vmax.f32 %v1160_v57, 0.0  ;;  %v1027_v61 = vadd.f32 %v1011_v9, %v930_v58  ;;  %v821_v2 = vadd.f32 %v807_v30, %v724_v63 }
 0x10a   : > { %v1124_v1 = vpop.f32.mrf.mxu0 }
 0x10b   : > { %1176 = vst [vmem:[%s1982_s30 + $0x10] sm:$0xff] %v1168_v5  ;;  %v1137_v27 = vadd.f32 %v1121_v28, %v1027_v61 }
 0x10d   : > { %v1149_v7 = vmul.f32 %v1969_v60, %v1137_v27 }
 0x10e   : > { %v917_v8 = vpop.f32.mrf.mxu2 }
 0x10f   : > { %v1161_v3 = vadd.f32 %v1974_v0, %v1149_v7  ;;  %v931_v12 = vadd.f32 %v917_v8, %v821_v2 }
 0x110   : > { %v1014_v13 = vpop.f32.mrf.mxu3  ;;  %v809_v32 = vpop.f32.mrf.mxu1 }
 0x111   : > { %v1169_v15 = vmax.f32 %v1161_v3, 0.0  ;;  %v1028_v16 = vadd.f32 %v1014_v13, %v931_v12  ;;  %v822_v35 = vadd.f32 %v809_v32, %v725_v18 }
 0x112   : > { %v1126_v20 = vpop.f32.mrf.mxu0 }
 0x113   : > { %1177 = vst [vmem:[%s1982_s30 + $0x18] sm:$0xff] %v1169_v15  ;;  %v1138_v31 = vadd.f32 %v1124_v1, %v1028_v16 }
 0x115   : > { %v1150_v19 = vmul.f32 %v1969_v60, %v1138_v31 }
 0x116   : > { %v919_v21 = vpop.f32.mrf.mxu2 }
 0x117   : > { %v1162_v23 = vadd.f32 %v1974_v0, %v1150_v19  ;;  %v932_v4 = vadd.f32 %v919_v21, %v822_v35 }
 0x118   : > { %v1016_v10 = vpop.f32.mrf.mxu3  ;;  %v812_v36 = vpop.f32.mrf.mxu1 }
 0x119   : > { %v1170_v25 = vmax.f32 %v1162_v23, 0.0  ;;  %v1029_v42 = vadd.f32 %v1016_v10, %v932_v4  ;;  %v823_v40 = vadd.f32 %v812_v36, %v726_v45 }
 0x11a   : > { %v1129_v14 = vpop.f32.mrf.mxu0 }
 0x11b   : > { %1178 = vst [vmem:[%s1982_s30 + $0x20] sm:$0xff] %v1170_v25  ;;  %v1139_v43 = vadd.f32 %v1126_v20, %v1029_v42 }
 0x11d   : > { %v1151_v47 = vmul.f32 %v1969_v60, %v1139_v43 }
 0x11e   : > { %v922_v48 = vpop.f32.mrf.mxu2 }
 0x11f   : > { %v1163_v50 = vadd.f32 %v1974_v0, %v1151_v47  ;;  %v933_v11 = vadd.f32 %v922_v48, %v823_v40 }
 0x120   : > { %v1019_v26 = vpop.f32.mrf.mxu3  ;;  %v814_v28 = vpop.f32.mrf.mxu1 }
 0x121   : > { %v1171_v41 = vmax.f32 %v1163_v50, 0.0  ;;  %v1030_v51 = vadd.f32 %v1019_v26, %v933_v11  ;;  %v824_v24 = vadd.f32 %v814_v28, %v727_v38 }
 0x122   : > { %v1131_v57 = vpop.f32.mrf.mxu0 }
 0x123   : > { %1179 = vst [vmem:[%s1982_s30 + $0x28] sm:$0xff] %v1171_v41  ;;  %v1140_v44 = vadd.f32 %v1129_v14, %v1030_v51 }
 0x125   : > { %v1152_v52 = vmul.f32 %v1969_v60, %v1140_v44 }
 0x126   : > { %v924_v53 = vpop.f32.mrf.mxu2 }
 0x127   : > { %v1164_v46 = vadd.f32 %v1974_v0, %v1152_v52  ;;  %v934_v29 = vadd.f32 %v924_v53, %v824_v24 }
 0x128   : > { %v1021_v54 = vpop.f32.mrf.mxu3 }
 0x129   : > { %v1172_v55 = vmax.f32 %v1164_v46, 0.0  ;;  %v1031_v56 = vadd.f32 %v1021_v54, %v934_v29 }
 0x12b   : > { %1180 = vst [vmem:[%s1982_s30 + $0x30] sm:$0xff] %v1172_v55  ;;  %v1141_v58 = vadd.f32 %v1131_v57, %v1031_v56 }
 0x12d   : > { %v1153_v9 = vmul.f32 %v1969_v60, %v1141_v58 }
 0x12f   : > { %v1165_v30 = vadd.f32 %v1974_v0, %v1153_v9 }
 0x131   : > { %v1173_v59 = vmax.f32 %v1165_v30, 0.0 }
 0x133   : > { %1181 = vst [vmem:[%s1982_s30 + $0x38] sm:$0x1] %v1173_v59 }
 0x134 PF: > { %s14_s15 = sadd.s32 1, %s1654_s15  }
 0x135   : > { %p11_p4 = scmp.ge.s32.totalorder %s14_s15, 4  }
 0x137   :  { %13 = sbr.rel (!%p11_p4) target bundleno = 1 (0x1), region = 74 }

// kernel: squeeze.8
= control target key start
LH: loop header
LB: loop body
LE: loop exit
PB: predicated region body
PF: predicated region fallthrough
CT: control target
= control target key end

     0   :  { %vm3_vm0 = vcmask 261120   ;;  %s197_s0 = inlined_call_operand.vmem [shape: f32[1,72,32], index: 0, kind: input, shape index: {}]   ;;  %s198_s1 = inlined_call_operand.vmem [shape: f32[2,6,6,32], index: 1, kind: output, shape index: {}]  }
   0x1   :  { %v2_v0 = vld [vmem:[%s197_s0] sm:$0xff]   ;;  %v64_v1 = vld [vmem:[%s197_s0 + $0x8] sm:$0xff]   ;;  %v67_v2 = vld [vmem:[%s197_s0 + $0x10] sm:$0xff]  }
   0x2   :  { %4 = vst.msk [vmem:[%s198_s1] sm:$0x3f] %vm3_vm0, %v2_v0   ;;  %v70_v3 = vld [vmem:[%s197_s0 + $0x18] sm:$0xff]   ;;  %v73_v4 = vld [vmem:[%s197_s0 + $0x20] sm:$0xff]   ;;  %v76_v5 = vld [vmem:[%s197_s0 + $0x28] sm:$0xff]  }
   0x3   :  { %63 = vst.msk [vmem:[%s198_s1 + $0x2] sm:$0xc0] %vm3_vm0, %v2_v0   ;;  %v79_v6 = vld [vmem:[%s197_s0 + $0x30] sm:$0xff]   ;;  %v82_v7 = vld [vmem:[%s197_s0 + $0x38] sm:$0xff]   ;;  %v85_v8 = vld [vmem:[%s197_s0 + $0x40] sm:$0xff]  }
   0x4   :  { %65 = vst.msk [vmem:[%s198_s1 + $0xa] sm:$0xf] %vm3_vm0, %v64_v1  }
   0x5   :  { %66 = vst.msk [vmem:[%s198_s1 + $0xc] sm:$0xf0] %vm3_vm0, %v64_v1  }
   0x6   :  { %68 = vst.msk [vmem:[%s198_s1 + $0x14] sm:$0x3] %vm3_vm0, %v67_v2  }
   0x7   :  { %69 = vst.msk [vmem:[%s198_s1 + $0x16] sm:$0xfc] %vm3_vm0, %v67_v2  }
   0x8   :  { %71 = vst.msk [vmem:[%s198_s1 + $0x20] sm:$0x3f] %vm3_vm0, %v70_v3  }
   0x9   :  { %72 = vst.msk [vmem:[%s198_s1 + $0x22] sm:$0xc0] %vm3_vm0, %v70_v3  }
   0xa   :  { %74 = vst.msk [vmem:[%s198_s1 + $0x2a] sm:$0xf] %vm3_vm0, %v73_v4  }
   0xb   :  { %75 = vst.msk [vmem:[%s198_s1 + $0x2c] sm:$0xf0] %vm3_vm0, %v73_v4  }
   0xc   :  { %77 = vst.msk [vmem:[%s198_s1 + $0x34] sm:$0x3] %vm3_vm0, %v76_v5  }
   0xd   :  { %78 = vst.msk [vmem:[%s198_s1 + $0x36] sm:$0xfc] %vm3_vm0, %v76_v5  }
   0xe   :  { %80 = vst.msk [vmem:[%s198_s1 + $0x40] sm:$0x3f] %vm3_vm0, %v79_v6  }
   0xf   :  { %81 = vst.msk [vmem:[%s198_s1 + $0x42] sm:$0xc0] %vm3_vm0, %v79_v6  }
  0x10   :  { %83 = vst.msk [vmem:[%s198_s1 + $0x4a] sm:$0xf] %vm3_vm0, %v82_v7  }
  0x11   :  { %84 = vst.msk [vmem:[%s198_s1 + $0x4c] sm:$0xf0] %vm3_vm0, %v82_v7  }
  0x12   :  { %86 = vst.msk [vmem:[%s198_s1 + $0x54] sm:$0x3] %vm3_vm0, %v85_v8  }
  0x13   :  { %87 = vst.msk [vmem:[%s198_s1 + $0x56] sm:$0xfc] %vm3_vm0, %v85_v8  }

// kernel: squeeze.7
= control target key start
LH: loop header
LB: loop body
LE: loop exit
PB: predicated region body
PF: predicated region fallthrough
CT: control target
= control target key end

     0   :  { %vm3_vm0 = vcmask 261120   ;;  %s105_s0 = inlined_call_operand.vmem [shape: f32[1,18,32], index: 0, kind: input, shape index: {}]   ;;  %s106_s1 = inlined_call_operand.vmem [shape: f32[2,3,3,32], index: 1, kind: output, shape index: {}]  }
   0x1   :  { %v2_v0 = vld [vmem:[%s105_s0] sm:$0xff]   ;;  %v61_v1 = vld [vmem:[%s105_s0 + $0x8] sm:$0xff]   ;;  %v62_v2 = vld [vmem:[%s105_s0 + $0x10] sm:$0x3]  }
   0x2   :  { %4 = vst.msk [vmem:[#allocation0] sm:$0x7] %vm3_vm0, %v2_v0  }
   0x3   :  { %6 = vst.msk [vmem:[#allocation0 + $0x5] sm:$0x38] %vm3_vm0, %v2_v0  }
   0x4   :  { %8 = vst.msk [vmem:[#allocation0 + $0xa] sm:$0xc0] %vm3_vm0, %v2_v0  }
   0x5   :  { %13 = vst.msk [vmem:[#allocation0 + $0x12] ss:$6 sm:$0x3] %vm3_vm0, %v61_v1  }
   0x6   :  { %15 = vst.msk [vmem:[#allocation0 + $0x17] sm:$0xc] %vm3_vm0, %v61_v1  }
   0x7   :  { %17 = vst.msk [vmem:[#allocation0 + $0x1c] sm:$0x70] %vm3_vm0, %v61_v1  }
   0x8   :  { %19 = vst.msk [vmem:[#allocation0 + $0x21] sm:$0x80] %vm3_vm0, %v61_v1  }
   0x9   :  { %24 = vst.msk [vmem:[#allocation0 + $0x29] sm:$0x3] %vm3_vm0, %v62_v2   ;;  %v27_v3 = vld [vmem:[#allocation0] sm:$0xf] }
   0xa   :  { %30 = vst [vmem:[%s106_s1] sm:$0xf] %v27_v3  ;;  %v32_v4 = vld [vmem:[#allocation0 + $0x8] sm:$0xf] }
   0xb   :  { %63 = vst [vmem:[%s106_s1 + $0x4] sm:$0xf] %v32_v4 }
   0xc   :  { %v38_v5 = vld [vmem:[#allocation0 + $0x10] sm:$0xf] }
   0xd   :  { %64 = vst [vmem:[%s106_s1 + $0x8] sm:$0xf] %v38_v5  ;;  %v44_v6 = vld [vmem:[#allocation0 + $0x18] sm:$0xf] }
   0xe   :  { %65 = vst [vmem:[%s106_s1 + $0xc] sm:$0xf] %v44_v6  ;;  %v50_v7 = vld [vmem:[#allocation0 + $0x20] sm:$0xf] }
   0xf   :  { %66 = vst [vmem:[%s106_s1 + $0x10] sm:$0xf] %v50_v7 }
  0x10   :  { %v56_v8 = vld [vmem:[#allocation0 + $0x28] sm:$0xf] }
  0x11   :  { %67 = vst [vmem:[%s106_s1 + $0x14] sm:$0xf] %v56_v8 }

// kernel: _lambda_.8
= control target key start
LH: loop header
LB: loop body
LE: loop exit
PB: predicated region body
PF: predicated region fallthrough
CT: control target
= control target key end

     0   :  { %s651_s15 = smov 0   ;;  %s724_s0 = inlined_call_operand.vmem [shape: bf16[4,72,128], index: 0, kind: input, shape index: {}]   ;;  %s725_s1 = inlined_call_operand.vmem [shape: bf16[4,128,32], index: 1, kind: input, shape index: {}]   ;;  %s726_s2 = inlined_call_operand.vmem [shape: f32[4,1,32], index: 2, kind: input, shape index: {}]   ;;  %s727_s3 = inlined_call_operand.vmem [shape: f32[4,1,32], index: 3, kind: input, shape index: {}]   ;;  %s728_s4 = inlined_call_operand.vmem [shape: f32[4,72,32], index: 4, kind: output, shape index: {}]  }
   0x1 LB: > { %s510_s16 = sadd.s32 4294967295, %s624_s15   ;;  %p514_p0 = scmp.ge.s32.totalorder %s624_s15, 1  ;;  %s624_s15 = sphi %s651_s15, %s14_s15  }
   0x2   : > { %p188_p1 = scmp.lt.s32.totalorder %s624_s15, 5 }
   0x4   : > { %p189_p2 = pnand %p514_p0, %p188_p1 }
   0x5   : > { %p225_p3 = scmp.lt.s32.totalorder (!%p189_p2), %s510_s16, 3 }
   0x6   : > { %192 = sbr.rel (%p189_p2) target bundleno = 202 (0xca), region = 36 }
   0xb   : > { %s730_s16 = smov (!%p225_p3, %s510_s16), 3  ;;  %vm415_vm0 = vcmask 261120  }
   0xc   : > { %s569_s17 = sshll.u32 %s730_s16, 6  ;;  %s237_s23 = scalar_lea.vmem %s726_s2, %s730_s16 }
   0xd   : > { %s665_s20 = scalar_lea.vmem %s725_s1, %s569_s17  ;;  %s240_s26 = scalar_lea.vmem %s727_s3, %s730_s16  ;;  %v616_v15 = vld [vmem:[%s237_s23] ss:$0 sm:$0xff] }
   0xe   : > { %v581_v0 = vld [vmem:[%s665_s20 + $0x38] sm:$0xff]  ;;  %v580_v1 = vld [vmem:[%s665_s20 + $0x30] sm:$0xff]  ;;  %v579_v2 = vld [vmem:[%s665_s20 + $0x28] sm:$0xff]  ;;  %s606_s27 = smul.u32 36, %s730_s16 }
   0xf   : > { %584 = vmatpush.bf16.msra.mxu3 %v581_v0  ;;  %583 = vmatpush.bf16.msra.mxu2 %v581_v0  ;;  %v578_v3 = vld [vmem:[%s665_s20 + $0x20] sm:$0xff]  ;;  %v577_v4 = vld [vmem:[%s665_s20 + $0x18] sm:$0xff]  ;;  %v576_v5 = vld [vmem:[%s665_s20 + $0x10] sm:$0xff]  ;;  %s607_s9 = smul.u32 72, %s730_s16 }
  0x10   : > { %347 = vmatpush.bf16.msra.mxu0 %v581_v0  ;;  %582 = vmatpush.bf16.msra.mxu1 %v581_v0  ;;  %v575_v6 = vld [vmem:[%s665_s20 + $0x8] sm:$0xff]  ;;  %v574_v7 = vld [vmem:[%s665_s20] sm:$0xff]  ;;  %s229_s30 = scalar_lea.vmem %s724_s0, %s606_s27 }
  0x11   : > { %v573_v8 = vld [vmem:[%s229_s30 + $0x18] sm:$0xff]  ;;  %v572_v9 = vld [vmem:[%s229_s30 + $0x10] sm:$0xff]  ;;  %v570_v10 = vld [vmem:[%s229_s30] sm:$0xff]  ;;  %s701_s12 = scalar_lea.vmem %s728_s4, %s607_s9 }
  0x12   : > { %v571_v11 = vld [vmem:[%s229_s30 + $0x8] sm:$0xff]  ;;  %v254_v12 = vld [vmem:[%s229_s30 + $0x20] sm:$0xf] }
  0x13   : > { %587 = vmatpush.bf16.msra.mxu3 %v580_v1  ;;  %586 = vmatpush.bf16.msra.mxu2 %v580_v1  ;;  %v288_v13 = vunpack.c.l.b16 %v254_v12  ;;  %v617_v18 = vld [vmem:[%s240_s26] ss:$0 sm:$0xff] }
  0x14   : > { %348 = vmatpush.bf16.msra.mxu0 %v580_v1  ;;  %585 = vmatpush.bf16.msra.mxu1 %v580_v1 }
  0x15   : > { %v293_v14 = vpack.c.b16 %v288_v13, %v288_v13 }
  0x17   : > { %590 = vmatpush.bf16.msra.mxu3 %v579_v2  ;;  %589 = vmatpush.bf16.msra.mxu2 %v579_v2 }
  0x18   : > { %349 = vmatpush.bf16.msra.mxu0 %v579_v2  ;;  %588 = vmatpush.bf16.msra.mxu1 %v579_v2 }
  0x1b   : > { %593 = vmatpush.bf16.msra.mxu3 %v578_v3  ;;  %592 = vmatpush.bf16.msra.mxu2 %v578_v3 }
  0x1c   : > { %350 = vmatpush.bf16.msra.mxu0 %v578_v3  ;;  %591 = vmatpush.bf16.msra.mxu1 %v578_v3 }
  0x1f   : > { %596 = vmatpush.bf16.msra.mxu3 %v577_v4  ;;  %595 = vmatpush.bf16.msra.mxu2 %v577_v4 }
  0x20   : > { %351 = vmatpush.bf16.msra.mxu0 %v577_v4  ;;  %594 = vmatpush.bf16.msra.mxu1 %v577_v4 }
  0x23   : > { %599 = vmatpush.bf16.msra.mxu3 %v576_v5  ;;  %598 = vmatpush.bf16.msra.mxu2 %v576_v5 }
  0x24   : > { %352 = vmatpush.bf16.msra.mxu0 %v576_v5  ;;  %597 = vmatpush.bf16.msra.mxu1 %v576_v5 }
  0x27   : > { %602 = vmatpush.bf16.msra.mxu3 %v575_v6  ;;  %601 = vmatpush.bf16.msra.mxu2 %v575_v6 }
  0x28   : > { %353 = vmatpush.bf16.msra.mxu0 %v575_v6  ;;  %600 = vmatpush.bf16.msra.mxu1 %v575_v6 }
  0x2b   : > { %605 = vmatpush.bf16.msra.mxu3 %v574_v7  ;;  %604 = vmatpush.bf16.msra.mxu2 %v574_v7 }
  0x2c   : > { %354 = vmatpush.bf16.msra.mxu0 %v574_v7  ;;  %603 = vmatpush.bf16.msra.mxu1 %v574_v7 }
  0x2e   : > { %370 = vmatmul.bf16.vlgmr.msra.gmra.mxu3 %v573_v8  ;;  %365 = vmatmul.bf16.vlgmr.msra.gmra.mxu2 %v572_v9 }
  0x2f   : > { %355 = vmatmul.bf16.vlgmr.msra.gmra.mxu0 %v570_v10  ;;  %360 = vmatmul.bf16.vlgmr.msra.gmra.mxu1 %v571_v11 }
  0x3e   : > { %375 = vmatmul.bf16.gmra.mxu3 %v293_v14 }
  0xac   : > { %v356_v16 = vpop.f32.mrf.mxu0  ;;  %v361_v17 = vpop.f32.mrf.mxu1 }
  0xad   : > { %v384_v19 = vmul.f32 %v616_v15, %v356_v16  ;;  %v386_v20 = vmul.f32 %v616_v15, %v361_v17 }
  0xaf   : > { %v397_v21 = vadd.f32 %v617_v18, %v384_v19  ;;  %v399_v22 = vadd.f32 %v617_v18, %v386_v20 }
  0xb1   : > { %v371_v23 = vpop.f32.mrf.mxu3  ;;  %v406_v24 = vmax.f32 %v397_v21, 0.0  ;;  %v408_v25 = vmax.f32 %v399_v22, 0.0  ;;  %v366_v26 = vpop.f32.mrf.mxu2 }
  0xb2   : > { %v390_v27 = vmul.f32 %v616_v15, %v371_v23  ;;  %v388_v28 = vmul.f32 %v616_v15, %v366_v26 }
  0xb3   : > { %416 = vst.msk [vmem:[%s701_s12] sm:$0xff] %vm415_vm0, %v406_v24 }
  0xb4   : > { %v403_v29 = vadd.f32 %v617_v18, %v390_v27  ;;  %418 = vst.msk [vmem:[%s701_s12 + $0x10] sm:$0xff] %vm415_vm0, %v408_v25  ;;  %v401_v30 = vadd.f32 %v617_v18, %v388_v28  ;;  %v358_v31 = vpop.f32.mrf.mxu0  ;;  %v363_v32 = vpop.f32.mrf.mxu1 }
  0xb5   : > { %v385_v33 = vmul.f32 %v616_v15, %v358_v31  ;;  %v387_v34 = vmul.f32 %v616_v15, %v363_v32 }
  0xb6   : > { %v412_v35 = vmax.f32 %v403_v29, 0.0  ;;  %v410_v36 = vmax.f32 %v401_v30, 0.0 }
  0xb7   : > { %v398_v37 = vadd.f32 %v617_v18, %v385_v33  ;;  %v400_v38 = vadd.f32 %v617_v18, %v387_v34 }
  0xb8   : > { %422 = vst.msk [vmem:[%s701_s12 + $0x30] sm:$0xff] %vm415_vm0, %v412_v35 }
  0xb9   : > { %420 = vst.msk [vmem:[%s701_s12 + $0x20] sm:$0xff] %vm415_vm0, %v410_v36  ;;  %v373_v39 = vpop.f32.mrf.mxu3  ;;  %v407_v40 = vmax.f32 %v398_v37, 0.0  ;;  %v409_v41 = vmax.f32 %v400_v38, 0.0  ;;  %v368_v42 = vpop.f32.mrf.mxu2 }
  0xba   : > { %v391_v43 = vmul.f32 %v616_v15, %v373_v39  ;;  %v389_v44 = vmul.f32 %v616_v15, %v368_v42 }
  0xbb   : > { %417 = vst.msk [vmem:[%s701_s12 + $0x8] sm:$0xff] %vm415_vm0, %v407_v40 }
  0xbc   : > { %v404_v45 = vadd.f32 %v617_v18, %v391_v43  ;;  %419 = vst.msk [vmem:[%s701_s12 + $0x18] sm:$0xff] %vm415_vm0, %v409_v41  ;;  %v402_v46 = vadd.f32 %v617_v18, %v389_v44 }
  0xbe   : > { %v413_v47 = vmax.f32 %v404_v45, 0.0  ;;  %v411_v48 = vmax.f32 %v402_v46, 0.0 }
  0xc0   : > { %423 = vst.msk [vmem:[%s701_s12 + $0x38] sm:$0xff] %vm415_vm0, %v413_v47 }
  0xc1   : > { %421 = vst.msk [vmem:[%s701_s12 + $0x28] sm:$0xff] %vm415_vm0, %v411_v48  ;;  %v376_v49 = vpop.f32.mrf.mxu3 }
  0xc2   : > { %v392_v50 = vmul.f32 %v616_v15, %v376_v49 }
  0xc4   : > { %v405_v51 = vadd.f32 %v617_v18, %v392_v50 }
  0xc6   : > { %v414_v52 = vmax.f32 %v405_v51, 0.0 }
  0xc8   : > { %424 = vst.msk [vmem:[%s701_s12 + $0x40] sm:$0xff] %vm415_vm0, %v414_v52 }
  0xc9   : > { %v378_v53 = vpop.f32.mrf.mxu3 }
  0xca PF: > { %s14_s15 = sadd.s32 1, %s624_s15  }
  0xcb   : > { %p11_p4 = scmp.ge.s32.totalorder %s14_s15, 6  }
  0xcd   :  { %13 = sbr.rel (!%p11_p4) target bundleno = 1 (0x1), region = 75 }

// kernel: _lambda_.11
= control target key start
LH: loop header
LB: loop body
LE: loop exit
PB: predicated region body
PF: predicated region fallthrough
CT: control target
= control target key end

     0   :  { %s501_s12 = smov 0   ;;  %s566_s0 = inlined_call_operand.vmem [shape: f32[2,25,128], index: 0, kind: input, shape index: {}]   ;;  %s567_s1 = inlined_call_operand.vmem [shape: f32[4,128], index: 1, kind: input, shape index: {}]   ;;  %s568_s2 = inlined_call_operand.vmem [shape: f32[4,128], index: 2, kind: input, shape index: {}]   ;;  %s569_s3 = inlined_call_operand.vmem [shape: f32[2,4,25], index: 3, kind: output, shape index: {}]  }
   0x1 LB: > { %s430_s13 = sadd.s32 4294967295, %s477_s12   ;;  %p434_p0 = scmp.ge.s32.totalorder %s477_s12, 1  ;;  %s477_s12 = sphi %s501_s12, %s13_s12  }
   0x2   : > { %p137_p1 = scmp.lt.s32.totalorder %s477_s12, 3 }
   0x4   : > { %p138_p2 = pnand %p434_p0, %p137_p1 }
   0x5   : > { %p160_p3 = scmp.lt.s32.totalorder (!%p138_p2), %s430_s13, 1 }
   0x6   : > { %141 = sbr.rel (%p138_p2) target bundleno = 1246 (0x4de), region = 32 }
   0xb   : > { %v512_v0 = vld [vmem:[%s567_s1] sm:$0xf]  ;;  %vm239_vm0 = vcmask 1043456   ;;  %s571_s13 = smov (!%p160_p3, %s430_s13), 1  ;;  %vm186_vm1 = vcmask 1040384  }
   0xc   : > { %v238_v1 = vmul.f32 %v512_v0, %v512_v0  ;;  %s442_s16 = sshll.u32 %s571_s13, 5  ;;  %s437_s22 = sshll.u32 %s571_s13, 2 }
   0xd   : > { %s164_s19 = scalar_lea.vmem %s566_s0, %s442_s16  ;;  %s168_s25 = scalar_lea.vmem %s569_s3, %s437_s22 }
   0xe   : > { %v240_v2 = vsel %vm239_vm0, %v238_v1, 0.0  ;;  %v523_v3 = vld [vmem:[%s164_s19 + $0x10] sm:$0xff]  ;;  %v525_v4 = vld [vmem:[%s164_s19] sm:$0xff]  ;;  %v531_v7 = vld [vmem:[%s164_s19 + $0x18] sm:$0x1] }
   0xf   : > { %241 = vadd.xlane.f32.xlu2 %v240_v2  ;;  %v178_v5 = vmul.f32 %v523_v3, %v523_v3  ;;  %v176_v6 = vmul.f32 %v525_v4, %v525_v4  ;;  %v179_v8 = vmul.f32 %v531_v7, %v531_v7  ;;  %v535_v9 = vld [vmem:[%s164_s19 + $0x8] sm:$0xff] }
  0x10   : > { %v177_v10 = vmul.f32 %v535_v9, %v535_v9 }
  0x11   : > { %184 = vadd.xlane.f32.xlu0 %v178_v5  ;;  %180 = vadd.xlane.f32.xlu1 %v176_v6  ;;  %v187_v11 = vsel %vm186_vm1, %v179_v8, 0.0 }
  0x19   : > { %188 = vadd.xlane.f32.xlu0 %v187_v11  ;;  %182 = vadd.xlane.f32.xlu1 %v177_v10 }
  0x82   : > { %v242_v16 = vpop.xlane.xlu2 %241 }
  0x83   : > { %v243_v17 = vmax.f32 %v242_v16, 1e-24  ;;  %v479_v16 = vmov 65535  }
  0x84   : > { %v185_v12 = vpop.xlane.xlu0 %184  ;;  %v181_v13 = vpop.xlane.xlu1 %180 }
  0x85   : > { %v192_v14 = vmax.f32 %v185_v12, 1e-24  ;;  %v190_v15 = vmax.f32 %v181_v13, 1e-24  ;;  %vm250_vm14 = vweird.f32 %v243_v17 }
  0x87   : > { %453 = vrsqrt.f32 %v192_v14  ;;  %vm220_vm3 = vweird.f32 %v192_v14  ;;  %vm200_vm10 = vweird.f32 %v190_v15 }
  0x88   : > { %455 = vrsqrt.f32 %v190_v15 }
  0x89   : > { %457 = vrsqrt.f32 %v243_v17 }
  0x8c   : > { %v189_v18 = vpop.xlane.xlu0 %188  ;;  %v183_v19 = vpop.xlane.xlu1 %182 }
  0x8d   : > { %v454_v20 = vpop.eup %453  ;;  %v193_v21 = vmax.f32 %v189_v18, 1e-24  ;;  %v191_v22 = vmax.f32 %v183_v19, 1e-24 }
  0x8e   : > { %v215_v23 = vmul.f32 %v454_v20, %v192_v14  ;;  %v456_v24 = vpop.eup %455  ;;  %vm221_vm2 = vweird.f32 %v454_v20 }
  0x8f   : > { %459 = vrsqrt.f32 %v193_v21  ;;  %v195_v27 = vmul.f32 %v456_v24, %v190_v15  ;;  %v458_v28 = vpop.eup %457  ;;  %vm222_vm5 = vmor %vm220_vm3, %vm221_vm2  ;;  %vm230_vm6 = vweird.f32 %v193_v21  ;;  %vm210_vm8 = vweird.f32 %v191_v22 }
  0x90   : > { %v216_v25 = vmul.f32 %v454_v20, %v215_v23  ;;  %461 = vrsqrt.f32 %v191_v22  ;;  %v245_v34 = vmul.f32 %v458_v28, %v243_v17  ;;  %vm201_vm11 = vweird.f32 %v456_v24 }
  0x91   : > { %v196_v32 = vmul.f32 %v456_v24, %v195_v27  ;;  %vm202_vm13 = vmor %vm200_vm10, %vm201_vm11  ;;  %vm251_vm15 = vweird.f32 %v458_v28  ;;  %vm272_vm2 = vcmask 199680   ;;  %v286_v15 = vpack.c.bf16 %v531_v7, %v523_v3 }
  0x92   : > { %v217_v26 = vmul.f32 0.5, %v216_v25  ;;  %v246_v41 = vmul.f32 %v458_v28, %v245_v34  ;;  %vm252_vm1 = vmor %vm250_vm14, %vm251_vm15  ;;  %vm291_vm3 = vcmask 1044480   ;;  %v292_v17 = vsel %vm239_vm0, 4294967295, %v479_v16 }
  0x93   : > { %v197_v38 = vmul.f32 0.5, %v196_v32  ;;  %v293_v18 = vsel %vm291_vm3, %v292_v17, 0 }
  0x94   : > { %v218_v31 = vsub.f32 1.5, %v217_v26  ;;  %v247_v48 = vmul.f32 0.5, %v246_v41  ;;  %v295_v19 = vand.u32 %v293_v18, %v286_v15 }
  0x95   : > { %v460_v29 = vpop.eup %459  ;;  %v198_v45 = vsub.f32 1.5, %v197_v38  ;;  %v480_v38 = vmov 0.0  }
  0x96   : > { %v462_v30 = vpop.eup %461  ;;  %v225_v33 = vmul.f32 %v460_v29, %v193_v21  ;;  %v219_v40 = vmul.f32 %v454_v20, %v218_v31  ;;  %vm231_vm4 = vweird.f32 %v460_v29  ;;  %v248_v54 = vsub.f32 1.5, %v247_v48  ;;  %303 = vmatpush.bf16.msra.mxu1 %v295_v19 }
  0x97   : > { %v205_v35 = vmul.f32 %v462_v30, %v191_v22  ;;  %vm232_vm7 = vmor %vm230_vm6, %vm231_vm4  ;;  %vm211_vm9 = vweird.f32 %v462_v30  ;;  %v199_v53 = vmul.f32 %v456_v24, %v198_v45  ;;  %vm287_vm4 = vcmask 203776  }
  0x98   : > { %v226_v36 = vmul.f32 %v460_v29, %v225_v33  ;;  %v223_v46 = vsel %vm222_vm5, %v454_v20, %v219_v40  ;;  %vm212_vm12 = vmor %vm210_vm8, %vm211_vm9  ;;  %v249_v59 = vmul.f32 %v458_v28, %v248_v54  ;;  %v285_v20 = vpack.c.bf16 %v535_v9, %v525_v4 }
  0x99   : > { %v206_v37 = vmul.f32 %v462_v30, %v205_v35  ;;  %v236_v51 = vmul.f32 %v223_v46, %v523_v3  ;;  %v203_v57 = vsel %vm202_vm13, %v456_v24, %v199_v53  ;;  %v338_v40 = vlaneseq  ;;  %v175_v46 = vld [vmem:[%s568_s2] sm:$0xf] }
  0x9a   : > { %v227_v39 = vmul.f32 0.5, %v226_v36  ;;  %v234_v60 = vmul.f32 %v203_v57, %v525_v4  ;;  %v253_v62 = vsel %vm252_vm1, %v458_v28, %v249_v59  ;;  %304 = vmatpush.bf16.msra.mxu1 %v285_v20 }
  0x9b   : > { %v207_v42 = vmul.f32 0.5, %v206_v37  ;;  %v254_v63 = vmul.f32 %v253_v62, %v512_v0 }
  0x9c   : > { %v228_v43 = vsub.f32 1.5, %v227_v39 }
  0x9d   : > { %v208_v44 = vsub.f32 1.5, %v207_v42  ;;  %v257_v1 = vpack.c.bf16 %v254_v63, %v254_v63 }
  0x9e   : > { %v229_v47 = vmul.f32 %v460_v29, %v228_v43  ;;  %v339_v43 = vshrl.u32 %v338_v40, 7 }
  0x9f   : > { %v209_v50 = vmul.f32 %v462_v30, %v208_v44 }
  0xa0   : > { %v233_v49 = vsel %vm232_vm7, %v460_v29, %v229_v47  ;;  %vm340_vm9 = vcmp.lt.s32.totalorder %v339_v43, 2 }
  0xa1   : > { %v237_v52 = vmul.f32 %v233_v49, %v531_v7  ;;  %v213_v56 = vsel %vm212_vm12, %v462_v30, %v209_v50 }
  0xa2   : > { %v235_v58 = vmul.f32 %v213_v56, %v535_v9 }
  0xa3   : > { %v256_v55 = vpack.c.bf16 %v237_v52, %v236_v51 }
  0xa4   : > { %v255_v61 = vpack.c.bf16 %v235_v58, %v234_v60 }
  0xa5   : > { %264 = vmatpush.bf16.xpose.msra.mxu0 %v256_v55  ;;  %368 = vmatpush.bf16.xpose.msra.mxu2 %v256_v55 }
  0xad   : > { %265 = vmatpush.bf16.xpose.msra.mxu0 %v255_v61  ;;  %369 = vmatpush.bf16.xpose.msra.mxu2 %v255_v61 }
  0xb4   : > { %266 = vmatmul.bf16.vlgmr.msra.gmra.mxu0 %v257_v1 }
 0x131   : > { %v267_v2 = vpop.f32.mrf.mxu0 }
 0x132   : > { %v271_v5 = vmul.f32 10.0, %v267_v2 }
 0x134   : > { %v273_v6 = vsel %vm272_vm2, %v271_v5, -inf }
 0x135   : > { %274 = vmax.xlane.f32.xlu2 %v273_v6 }
 0x139   : > { %v269_v8 = vpop.f32.mrf.mxu0 }
 0x1a8   : > { %v275_v10 = vpop.xlane.xlu2 %274 }
 0x1a9   : > { %v276_v11 = vsub.f32 %v271_v5, %v275_v10 }
 0x1ab   : > { %v277_v12 = vmul.f32 1.442695, %v276_v11 }
 0x1ad   : > { %463 = vpow2.f32 %v277_v12 }
 0x1b3   : > { %v464_v13 = vpop.eup %463 }
 0x1b4   : > { %v279_v14 = vsel %vm272_vm2, %v464_v13, 0.0 }
 0x1b5   : > { %280 = vadd.xlane.f32.xlu0 %v279_v14 }
 0x228   : > { %v281_v21 = vpop.xlane.xlu0 %280 }
 0x229   : > { %465 = vrcp.f32 %v281_v21 }
 0x22f   : > { %v466_v22 = vpop.eup %465 }
 0x230   : > { %v283_v23 = vmul.f32 %v466_v22, %v464_v13 }
 0x232   : > { %v284_v24 = vpack.c.bf16 %v283_v23, %v283_v23 }
 0x234   : > { %438 = vmatmul.msk.bf16.vlgmr.msra.gmra.mxu1 %vm287_vm4, %v284_v24 }
 0x2b1   : > { %v306_v25 = vpop.f32.mrf.mxu1 }
 0x2b2   : > { %v310_v3 = vmul.f32 %v306_v25, %v306_v25 }
 0x2b4   : > { %v311_v7 = vsel %vm239_vm0, %v310_v3, 0.0 }
 0x2b5   : > { %312 = vadd.xlane.f32.xlu1 %v311_v7 }
 0x2b9   : > { %v308_v26 = vpop.f32.mrf.mxu1 }
 0x328   : > { %v313_v27 = vpop.xlane.xlu1 %312 }
 0x329   : > { %v314_v28 = vmax.f32 %v313_v27, 1e-24 }
 0x32b   : > { %467 = vrsqrt.f32 %v314_v28  ;;  %vm321_vm6 = vweird.f32 %v314_v28 }
 0x331   : > { %v468_v29 = vpop.eup %467 }
 0x332   : > { %v316_v30 = vmul.f32 %v468_v29, %v314_v28  ;;  %vm322_vm5 = vweird.f32 %v468_v29 }
 0x333   : > { %vm323_vm7 = vmor %vm321_vm6, %vm322_vm5 }
 0x334   : > { %v317_v4 = vmul.f32 %v468_v29, %v316_v30 }
 0x336   : > { %v318_v9 = vmul.f32 0.5, %v317_v4 }
 0x338   : > { %v319_v31 = vsub.f32 1.5, %v318_v9 }
 0x33a   : > { %v320_v32 = vmul.f32 %v468_v29, %v319_v31 }
 0x33c   : > { %v324_v33 = vsel %vm323_vm7, %v468_v29, %v320_v32 }
 0x33d   : > { %v325_v34 = vmul.f32 %v324_v33, %v306_v25 }
 0x33f   : > { %v326_v35 = vmul.f32 %v325_v34, %v254_v63 }
 0x341   : > { %v327_v36 = vsel %vm239_vm0, %v326_v35, 0.0 }
 0x342   : > { %328 = vadd.xlane.f32.xlu2 %v327_v36 }
 0x3b5   : > { %v329_v37 = vpop.xlane.xlu2 %328 }
 0x3b6   : > { %vm330_vm8 = vcmp.gt.f32.partialorder %v329_v37, 0.0 }
 0x3b7   : > { %v439_v39 = vsel %vm330_vm8, 1.0, %v480_v38 }
 0x3b8   : > { %v333_v41 = vmul.f32 %v439_v39, %v329_v37 }
 0x3ba   : > { %v335_v42 = vsub.f32 1.0, %v333_v41  ;;  %v334_v44 = vmul.f32 %v333_v41, %v306_v25 }
 0x3bc   : > { %v336_v45 = vmul.f32 %v335_v42, %v512_v0 }
 0x3be   : > { %v337_v47 = vadd.f32 %v336_v45, %v334_v44 }
 0x3c0   : > { %v341_v48 = vadd.f32 %v337_v47, %v175_v46 }
 0x3c2   : > { %v344_v49 = vsel %vm340_vm9, %v341_v48, %v175_v46 }
 0x3c3   : > { %v345_v50 = vmul.f32 %v344_v49, %v344_v49 }
 0x3c5   : > { %v346_v51 = vsel %vm239_vm0, %v345_v50, 0.0 }
 0x3c6   : > { %347 = vadd.xlane.f32.xlu0 %v346_v51 }
 0x439   : > { %v348_v52 = vpop.xlane.xlu0 %347 }
 0x43a   : > { %v349_v53 = vmax.f32 %v348_v52, 1e-24 }
 0x43c   : > { %469 = vrsqrt.f32 %v349_v53  ;;  %vm356_vm11 = vweird.f32 %v349_v53 }
 0x442   : > { %v470_v54 = vpop.eup %469 }
 0x443   : > { %v351_v55 = vmul.f32 %v470_v54, %v349_v53  ;;  %vm357_vm10 = vweird.f32 %v470_v54 }
 0x444   : > { %vm358_vm12 = vmor %vm356_vm11, %vm357_vm10 }
 0x445   : > { %v352_v56 = vmul.f32 %v470_v54, %v351_v55 }
 0x447   : > { %v353_v0 = vmul.f32 0.5, %v352_v56 }
 0x449   : > { %v354_v57 = vsub.f32 1.5, %v353_v0 }
 0x44b   : > { %v355_v58 = vmul.f32 %v470_v54, %v354_v57 }
 0x44d   : > { %v359_v59 = vsel %vm358_vm12, %v470_v54, %v355_v58 }
 0x44e   : > { %v360_v60 = vmul.f32 %v359_v59, %v344_v49 }
 0x450   : > { %v361_v61 = vpack.c.bf16 %v360_v60, %v360_v60 }
 0x452   : > { %370 = vmatmul.bf16.vlgmr.msra.gmra.mxu2 %v361_v61 }
 0x4d5   : > { %v371_v62 = vpop.f32.mrf.mxu2 }
 0x4d6   : > { %v375_v63 = vmul.f32 10.0, %v371_v62 }
 0x4d8   : > { %376 = vst.msk [vmem:[%s168_s25] sm:$0xf] %vm272_vm2, %v375_v63 }
 0x4dd   : > { %v373_v1 = vpop.f32.mrf.mxu2 }
 0x4de PF: > { %s13_s12 = sadd.s32 1, %s477_s12  }
 0x4df   : > { %p10_p4 = scmp.ge.s32.totalorder %s13_s12, 4  }
 0x4e1   :  { %12 = sbr.rel (!%p10_p4) target bundleno = 1 (0x1), region = 62 }

// kernel: _lambda_.10
= control target key start
LH: loop header
LB: loop body
LE: loop exit
PB: predicated region body
PF: predicated region fallthrough
CT: control target
= control target key end

     0   :  { %s382_s1 = inlined_call_operand.vmem [shape: bf16[128,128], index: 1, kind: input, shape index: {}]   ;;  %s383_s2 = inlined_call_operand.vmem [shape: f32[1,128], index: 2, kind: input, shape index: {}]   ;;  %s384_s3 = inlined_call_operand.vmem [shape: f32[1,128], index: 3, kind: input, shape index: {}]   ;;  %s385_s0 = inlined_call_operand.vmem [shape: bf16[56,128], index: 0, kind: input, shape index: {}]   ;;  %s386_s4 = inlined_call_operand.vmem [shape: f32[56,128], index: 4, kind: output, shape index: {}]  }
   0x1   :  { %v267_v0 = vld [vmem:[%s382_s1 + $0x38] sm:$0xff]  ;;  %v266_v1 = vld [vmem:[%s382_s1 + $0x30] sm:$0xff]  ;;  %v265_v2 = vld [vmem:[%s382_s1 + $0x28] sm:$0xff] }
   0x2   :  { %128 = vmatpush.bf16.msra.mxu0 %v267_v0  ;;  %268 = vmatpush.bf16.msra.mxu1 %v267_v0  ;;  %v264_v3 = vld [vmem:[%s382_s1 + $0x20] sm:$0xff]  ;;  %v263_v4 = vld [vmem:[%s382_s1 + $0x18] sm:$0xff]  ;;  %v262_v5 = vld [vmem:[%s382_s1 + $0x10] sm:$0xff] }
   0x3   :  { %269 = vmatpush.bf16.msra.mxu2 %v267_v0  ;;  %270 = vmatpush.bf16.msra.mxu3 %v267_v0  ;;  %v261_v6 = vld [vmem:[%s382_s1 + $0x8] sm:$0xff]  ;;  %v41_v7 = vld [vmem:[%s385_s0 + $0x18] sm:$0xf]  ;;  %v260_v8 = vld [vmem:[%s382_s1] sm:$0xff] }
   0x4   :  { %v71_v9 = vunpack.c.l.b16 %v41_v7  ;;  %v257_v10 = vld [vmem:[%s385_s0] sm:$0xff]  ;;  %v258_v11 = vld [vmem:[%s385_s0 + $0x8] sm:$0xff]  ;;  %v259_v12 = vld [vmem:[%s385_s0 + $0x10] sm:$0xff] }
   0x5   :  { %v292_v14 = vld [vmem:[%s383_s2] ss:$0 sm:$0xff] }
   0x6   :  { %129 = vmatpush.bf16.msra.mxu0 %v266_v1  ;;  %271 = vmatpush.bf16.msra.mxu1 %v266_v1  ;;  %v75_v13 = vpack.c.b16 %v71_v9, %v71_v9  ;;  %v293_v15 = vld [vmem:[%s384_s3] ss:$0 sm:$0xff] }
   0x7   :  { %272 = vmatpush.bf16.msra.mxu2 %v266_v1  ;;  %273 = vmatpush.bf16.msra.mxu3 %v266_v1 }
   0xa   :  { %130 = vmatpush.bf16.msra.mxu0 %v265_v2  ;;  %274 = vmatpush.bf16.msra.mxu1 %v265_v2 }
   0xb   :  { %275 = vmatpush.bf16.msra.mxu2 %v265_v2  ;;  %276 = vmatpush.bf16.msra.mxu3 %v265_v2 }
   0xe   :  { %131 = vmatpush.bf16.msra.mxu0 %v264_v3  ;;  %277 = vmatpush.bf16.msra.mxu1 %v264_v3 }
   0xf   :  { %278 = vmatpush.bf16.msra.mxu2 %v264_v3  ;;  %279 = vmatpush.bf16.msra.mxu3 %v264_v3 }
  0x12   :  { %132 = vmatpush.bf16.msra.mxu0 %v263_v4  ;;  %280 = vmatpush.bf16.msra.mxu1 %v263_v4 }
  0x13   :  { %281 = vmatpush.bf16.msra.mxu2 %v263_v4  ;;  %282 = vmatpush.bf16.msra.mxu3 %v263_v4 }
  0x16   :  { %133 = vmatpush.bf16.msra.mxu0 %v262_v5  ;;  %283 = vmatpush.bf16.msra.mxu1 %v262_v5 }
  0x17   :  { %284 = vmatpush.bf16.msra.mxu2 %v262_v5  ;;  %285 = vmatpush.bf16.msra.mxu3 %v262_v5 }
  0x1a   :  { %134 = vmatpush.bf16.msra.mxu0 %v261_v6  ;;  %286 = vmatpush.bf16.msra.mxu1 %v261_v6 }
  0x1b   :  { %287 = vmatpush.bf16.msra.mxu2 %v261_v6  ;;  %288 = vmatpush.bf16.msra.mxu3 %v261_v6 }
  0x1e   :  { %135 = vmatpush.bf16.msra.mxu0 %v260_v8  ;;  %289 = vmatpush.bf16.msra.mxu1 %v260_v8 }
  0x1f   :  { %290 = vmatpush.bf16.msra.mxu2 %v260_v8  ;;  %291 = vmatpush.bf16.msra.mxu3 %v260_v8 }
  0x21   :  { %136 = vmatmul.bf16.vlgmr.msra.gmra.mxu0 %v257_v10  ;;  %141 = vmatmul.bf16.vlgmr.msra.gmra.mxu1 %v258_v11 }
  0x22   :  { %146 = vmatmul.bf16.vlgmr.msra.gmra.mxu2 %v259_v12  ;;  %151 = vmatmul.bf16.vlgmr.msra.gmra.mxu3 %v75_v13 }
  0x9e   :  { %v137_v16 = vpop.f32.mrf.mxu0  ;;  %v142_v17 = vpop.f32.mrf.mxu1 }
  0x9f   :  { %v184_v18 = vmul.f32 %v292_v14, %v137_v16  ;;  %v186_v19 = vmul.f32 %v292_v14, %v142_v17 }
  0xa1   :  { %v195_v20 = vadd.f32 %v293_v15, %v184_v18  ;;  %v197_v21 = vadd.f32 %v293_v15, %v186_v19 }
  0xa3   :  { %202 = vst [vmem:[%s386_s4] sm:$0xff] %v195_v20 }
  0xa4   :  { %204 = vst [vmem:[%s386_s4 + $0x10] sm:$0xff] %v197_v21 }
  0xa5   :  { %v147_v22 = vpop.f32.mrf.mxu2  ;;  %v152_v23 = vpop.f32.mrf.mxu3 }
  0xa6   :  { %v188_v24 = vmul.f32 %v292_v14, %v147_v22  ;;  %v190_v25 = vmul.f32 %v292_v14, %v152_v23  ;;  %v139_v26 = vpop.f32.mrf.mxu0  ;;  %v144_v27 = vpop.f32.mrf.mxu1 }
  0xa7   :  { %v185_v28 = vmul.f32 %v292_v14, %v139_v26  ;;  %v187_v29 = vmul.f32 %v292_v14, %v144_v27 }
  0xa8   :  { %v199_v30 = vadd.f32 %v293_v15, %v188_v24  ;;  %v201_v31 = vadd.f32 %v293_v15, %v190_v25 }
  0xa9   :  { %v196_v32 = vadd.f32 %v293_v15, %v185_v28  ;;  %v198_v33 = vadd.f32 %v293_v15, %v187_v29 }
  0xaa   :  { %206 = vst [vmem:[%s386_s4 + $0x20] sm:$0xff] %v199_v30 }
  0xab   :  { %208 = vst [vmem:[%s386_s4 + $0x30] sm:$0xff] %v201_v31 }
  0xac   :  { %203 = vst [vmem:[%s386_s4 + $0x8] sm:$0xff] %v196_v32 }
  0xad   :  { %205 = vst [vmem:[%s386_s4 + $0x18] sm:$0xff] %v198_v33  ;;  %v149_v34 = vpop.f32.mrf.mxu2  ;;  %v154_v35 = vpop.f32.mrf.mxu3 }
  0xae   :  { %v189_v36 = vmul.f32 %v292_v14, %v149_v34 }
  0xb0   :  { %v200_v37 = vadd.f32 %v293_v15, %v189_v36 }
  0xb2   :  { %207 = vst [vmem:[%s386_s4 + $0x28] sm:$0xff] %v200_v37 }

// kernel: _lambda_.9
= control target key start
LH: loop header
LB: loop body
LE: loop exit
PB: predicated region body
PF: predicated region fallthrough
CT: control target
= control target key end

     0   :  { %s3340_s15 = smov 0   ;;  %s4092_s0 = inlined_call_operand.vmem [shape: bf16[2,49,256], index: 0, kind: input, shape index: {}]   ;;  %s4093_s1 = inlined_call_operand.vmem [shape: bf16[9,256,128], index: 1, kind: input, shape index: {}]   ;;  %s4094_s2 = inlined_call_operand.vmem [shape: f32[1,128], index: 2, kind: input, shape index: {}]   ;;  %s4095_s3 = inlined_call_operand.vmem [shape: f32[1,128], index: 3, kind: input, shape index: {}]   ;;  %s4096_s4 = inlined_call_operand.vmem [shape: f32[2,33,128], index: 4, kind: output, shape index: {}]  }
   0x1 LB: > { %s2254_s16 = sadd.s32 4294967295, %s3313_s15   ;;  %p2258_p0 = scmp.ge.s32.totalorder %s3313_s15, 1  ;;  %s3313_s15 = sphi %s3340_s15, %s14_s15  }
   0x2   : > { %p162_p1 = scmp.lt.s32.totalorder %s3313_s15, 3 }
   0x4   : > { %p163_p2 = pnand %p2258_p0, %p162_p1 }
   0x5   : > { %p188_p3 = scmp.lt.s32.totalorder (!%p163_p2), %s2254_s16, 1 }
   0x6   : > { %166 = sbr.rel (%p163_p2) target bundleno = 397 (0x18d), region = 36 }
   0xb   : > { %v3152_v0 = vld [vmem:[%s4093_s1 + $0xb8] sm:$0xff]  ;;  %v3151_v2 = vld [vmem:[%s4093_s1 + $0xb0] sm:$0xff]  ;;  %s4098_s16 = smov (!%p188_p3, %s2254_s16), 1  ;;  %v3150_v4 = vld [vmem:[%s4093_s1 + $0xa8] sm:$0xff]  ;;  %vm289_vm0 = vsmask.f32 7424 }
   0xc   : > { %v3160_v1 = vld [vmem:[%s4093_s1 + $0xf8] sm:$0xff]  ;;  %436 = vmatpush.bf16.msra.mxu0 %v3152_v0  ;;  %3279 = vmatpush.bf16.msra.mxu2 %v3152_v0  ;;  %v3159_v3 = vld [vmem:[%s4093_s1 + $0xf0] sm:$0xff]  ;;  %s3295_s25 = smul.u32 56, %s4098_s16  ;;  %v3158_v5 = vld [vmem:[%s4093_s1 + $0xe8] sm:$0xff]  ;;  %vm675_vm1 = vcmask 1046528   ;;  %vm1567_vm3 = vcmask 1044480  }
   0xd   : > { %459 = vmatpush.bf16.msra.mxu1 %v3160_v1  ;;  %3287 = vmatpush.bf16.msra.mxu3 %v3160_v1  ;;  %v3149_v8 = vld [vmem:[%s4093_s1 + $0xa0] sm:$0xff]  ;;  %v3148_v14 = vld [vmem:[%s4093_s1 + $0x98] sm:$0xff]  ;;  %v3147_v22 = vld [vmem:[%s4093_s1 + $0x90] sm:$0xff]  ;;  %vm884_vm2 = vsmask.f32 4352  ;;  %s3296_s10 = smul.u32 40, %s4098_s16 }
   0xe   : > { %s3369_s30 = scalar_lea.vmem %s4092_s0, %s3295_s25  ;;  %v3157_v11 = vld [vmem:[%s4093_s1 + $0xe0] sm:$0xff]  ;;  %v3156_v15 = vld [vmem:[%s4093_s1 + $0xd8] sm:$0xff]  ;;  %v3155_v25 = vld [vmem:[%s4093_s1 + $0xd0] sm:$0xff] }
   0xf   : > { %v198_v6 = vld [vmem:[%s3369_s30] sm:$0xff]  ;;  %v199_v7 = vld [vmem:[%s3369_s30 + $0x8] sm:$0xff]  ;;  %v2295_v17 = vld [vmem:[%s3369_s30 + $0x10] sm:$0xf]  ;;  %s4067_s13 = scalar_lea.vmem %s4096_s4, %s3296_s10 }
  0x10   : > { %437 = vmatpush.bf16.msra.mxu0 %v3151_v2  ;;  %3280 = vmatpush.bf16.msra.mxu2 %v3151_v2  ;;  %v273_v9 = vunpack.c.l.b16 %v198_v6  ;;  %v3379_v10 = vunpack.c.l.b16 %v199_v7  ;;  %v274_v12 = vunpack.c.h.b16 %v198_v6  ;;  %v3384_v13 = vunpack.c.h.b16 %v199_v7  ;;  %v3128_v18 = vld [vmem:[%s3369_s30 + $0x14] sm:$0xf0]  ;;  %v3127_v20 = vld [vmem:[%s3369_s30 + $0x14] sm:$0xf]  ;;  %v2297_v21 = vld [vmem:[%s3369_s30 + $0x18] sm:$0xf0] }
  0x11   : > { %460 = vmatpush.bf16.msra.mxu1 %v3159_v3  ;;  %3288 = vmatpush.bf16.msra.mxu3 %v3159_v3  ;;  %v3405_v23 = vor.u32 %v3128_v18, %v2295_v17  ;;  %v3411_v26 = vor.u32 %v3127_v20, %v2297_v21  ;;  %v202_v28 = vld [vmem:[%s3369_s30 + $0x20] sm:$0x11]  ;;  %v3146_v29 = vld [vmem:[%s4093_s1 + $0x88] sm:$0xff]  ;;  %v3136_v47 = vld [vmem:[%s4093_s1 + $0x38] sm:$0xff] }
  0x12   : > { %v3393_v16 = vpack.c.b16 %v3379_v10, %v273_v9  ;;  %v3398_v19 = vpack.c.b16 %v3384_v13, %v274_v12  ;;  %v281_v33 = vunpack.c.l.b16 %v202_v28  ;;  %v3154_v34 = vld [vmem:[%s4093_s1 + $0xc8] sm:$0xff]  ;;  %v282_v38 = vunpack.c.h.b16 %v202_v28  ;;  %v3145_v39 = vld [vmem:[%s4093_s1 + $0x80] sm:$0xff]  ;;  %v3144_v48 = vld [vmem:[%s4093_s1 + $0x78] sm:$0xff] }
  0x13   : > { %v298_v32 = vshll.u32 %v3405_v23, 16  ;;  %v310_v37 = vshll.u32 %v3411_v26, 16  ;;  %v3153_v42 = vld [vmem:[%s4093_s1 + $0xc0] sm:$0xff]  ;;  %v3176_v49 = vld [vmem:[%s4093_s1 + $0x178] sm:$0xff]  ;;  %v3135_v55 = vld [vmem:[%s4093_s1 + $0x30] sm:$0xff]  ;;  %v314_v63 = vshrl.u32 %v3405_v23, 16 }
  0x14   : > { %438 = vmatpush.bf16.msra.mxu0 %v3150_v4  ;;  %3281 = vmatpush.bf16.msra.mxu2 %v3150_v4  ;;  %v293_v24 = vshll.u32 %v3393_v16, 16  ;;  %v305_v27 = vshll.u32 %v3398_v19, 16  ;;  %v291_v30 = vshrl.u32 %v3393_v16, 16  ;;  %v303_v35 = vshrl.u32 %v3398_v19, 16  ;;  %v3168_v51 = vld [vmem:[%s4093_s1 + $0x138] sm:$0xff]  ;;  %v3143_v56 = vld [vmem:[%s4093_s1 + $0x70] sm:$0xff] }
  0x15   : > { %461 = vmatpush.bf16.msra.mxu1 %v3158_v5  ;;  %3289 = vmatpush.bf16.msra.mxu3 %v3158_v5  ;;  %v300_v41 = vrot.slane %v298_v32, 1  ;;  %v312_v44 = vrot.slane %v310_v37, 1  ;;  %v3435_v45 = vpack.c.b16 %v281_v33, %v281_v33  ;;  %v3437_v46 = vpack.c.b16 %v282_v38, %v282_v38  ;;  %v3175_v57 = vld [vmem:[%s4093_s1 + $0x170] sm:$0xff]  ;;  %v3134_v59 = vld [vmem:[%s4093_s1 + $0x28] sm:$0xff]  ;;  %v3133_v3 = vld [vmem:[%s4093_s1 + $0x20] sm:$0xff] }
  0x16   : > { %v295_v31 = vrot.slane %v293_v24, 1  ;;  %v307_v36 = vrot.slane %v305_v27, 1  ;;  %v3167_v58 = vld [vmem:[%s4093_s1 + $0x130] sm:$0xff]  ;;  %v3142_v60 = vld [vmem:[%s4093_s1 + $0x68] sm:$0xff]  ;;  %v322_v1 = vshrl.u32 %v3411_v26, 16  ;;  %v3141_v4 = vld [vmem:[%s4093_s1 + $0x60] sm:$0xff] }
  0x17   : > { %v330_v53 = vshrl.u32 %v3435_v45, 16  ;;  %v332_v54 = vshrl.u32 %v3437_v46, 16  ;;  %v3174_v61 = vld [vmem:[%s4093_s1 + $0x168] sm:$0xff]  ;;  %v318_v0 = vshll.u32 %v3435_v45, 16  ;;  %v326_v2 = vshll.u32 %v3437_v46, 16  ;;  %v3173_v5 = vld [vmem:[%s4093_s1 + $0x160] sm:$0xff] }
  0x18   : > { %439 = vmatpush.bf16.msra.mxu0 %v3149_v8  ;;  %3282 = vmatpush.bf16.msra.mxu2 %v3149_v8  ;;  %v296_v40 = vor.u32 %v295_v31, %v291_v30  ;;  %v308_v43 = vor.u32 %v307_v36, %v303_v35  ;;  %v3166_v62 = vld [vmem:[%s4093_s1 + $0x128] sm:$0xff]  ;;  %v3165_v6 = vld [vmem:[%s4093_s1 + $0x120] sm:$0xff]  ;;  %v316_v7 = vor.u32 %v314_v63, %v300_v41  ;;  %v3132_v12 = vld [vmem:[%s4093_s1 + $0x18] sm:$0xff] }
  0x19   : > { %462 = vmatpush.bf16.msra.mxu1 %v3157_v11  ;;  %3290 = vmatpush.bf16.msra.mxu3 %v3157_v11  ;;  %v320_v8 = vrot.slane %v318_v0, 1  ;;  %v324_v9 = vor.u32 %v322_v1, %v312_v44  ;;  %v328_v11 = vrot.slane %v326_v2, 1  ;;  %v3164_v18 = vld [vmem:[%s4093_s1 + $0x118] sm:$0xff]  ;;  %v630_v21 = vld [vmem:[%s3369_s30] sm:$0xee]  ;;  %v3139_v24 = vld [vmem:[%s4093_s1 + $0x50] sm:$0xff] }
  0x1a   : > { %v301_v50 = vsel %vm289_vm0, %v296_v40, %v300_v41  ;;  %v313_v52 = vsel %vm289_vm0, %v308_v43, %v312_v44  ;;  %v3163_v27 = vld [vmem:[%s4093_s1 + $0x110] sm:$0xff]  ;;  %v667_v28 = vunpack.c.l.b16 %v630_v21  ;;  %v3130_v30 = vld [vmem:[%s4093_s1 + $0x8] sm:$0xff]  ;;  %v3129_v38 = vld [vmem:[%s4093_s1] sm:$0xff] }
  0x1b   : > { %v321_v17 = vsel %vm289_vm0, %v316_v7, %v320_v8  ;;  %v329_v20 = vsel %vm289_vm0, %v324_v9, %v328_v11  ;;  %v3138_v31 = vld [vmem:[%s4093_s1 + $0x48] sm:$0xff]  ;;  %v3169_v40 = vld [vmem:[%s4093_s1 + $0x140] sm:$0xff]  ;;  %v3184_v41 = vld [vmem:[%s4093_s1 + $0x1b8] sm:$0xff] }
  0x1c   : > { %440 = vmatpush.bf16.msra.mxu0 %v3148_v14  ;;  %3283 = vmatpush.bf16.msra.mxu2 %v3148_v14  ;;  %v3140_v14 = vld [vmem:[%s4093_s1 + $0x58] sm:$0xff]  ;;  %v3170_v33 = vld [vmem:[%s4093_s1 + $0x148] sm:$0xff]  ;;  %v671_v35 = vpack.c.b16 %v3379_v10, %v667_v28  ;;  %v3181_v0 = vld [vmem:[%s4093_s1 + $0x1a0] sm:$0xff] }
  0x1d   : > { %463 = vmatpush.bf16.msra.mxu1 %v3156_v15  ;;  %3291 = vmatpush.bf16.msra.mxu3 %v3156_v15  ;;  %v3172_v15 = vld [vmem:[%s4093_s1 + $0x158] sm:$0xff]  ;;  %v3189_v2 = vld [vmem:[%s4093_s1 + $0x1e0] sm:$0xff]  ;;  %v3204_v28 = vld [vmem:[%s4093_s1 + $0x248] sm:$0xff] }
  0x1e   : > { %v3192_v43 = vld [vmem:[%s4093_s1 + $0x1f8] sm:$0xff]  ;;  %v676_v44 = vrot.slane %v671_v35, 1 }
  0x1f   : > { %v3180_v7 = vld [vmem:[%s4093_s1 + $0x198] sm:$0xff] }
  0x20   : > { %441 = vmatpush.bf16.msra.mxu0 %v3147_v22  ;;  %3284 = vmatpush.bf16.msra.mxu2 %v3147_v22  ;;  %v3131_v22 = vld [vmem:[%s4093_s1 + $0x10] sm:$0xff]  ;;  %v3188_v9 = vld [vmem:[%s4093_s1 + $0x1d8] sm:$0xff] }
  0x21   : > { %464 = vmatpush.bf16.msra.mxu1 %v3155_v25  ;;  %3292 = vmatpush.bf16.msra.mxu3 %v3155_v25  ;;  %v3171_v25 = vld [vmem:[%s4093_s1 + $0x150] sm:$0xff] }
  0x24   : > { %442 = vmatpush.bf16.msra.mxu0 %v3146_v29  ;;  %3285 = vmatpush.bf16.msra.mxu2 %v3146_v29  ;;  %v668_v29 = vunpack.c.h.b16 %v630_v21  ;;  %v3197_v21 = vld [vmem:[%s4093_s1 + $0x210] sm:$0xff] }
  0x25   : > { %465 = vmatpush.bf16.msra.mxu1 %v3154_v34  ;;  %3293 = vmatpush.bf16.msra.mxu3 %v3154_v34  ;;  %v3162_v34 = vld [vmem:[%s4093_s1 + $0x108] sm:$0xff] }
  0x26   : > { %v672_v36 = vpack.c.b16 %v3384_v13, %v668_v29  ;;  %v3177_v29 = vld [vmem:[%s4093_s1 + $0x180] sm:$0xff] }
  0x28   : > { %443 = vmatpush.bf16.msra.mxu0 %v3145_v39  ;;  %3286 = vmatpush.bf16.msra.mxu2 %v3145_v39  ;;  %v3137_v39 = vld [vmem:[%s4093_s1 + $0x40] sm:$0xff] }
  0x29   : > { %466 = vmatpush.bf16.msra.mxu1 %v3153_v42  ;;  %3294 = vmatpush.bf16.msra.mxu3 %v3153_v42  ;;  %v3161_v42 = vld [vmem:[%s4093_s1 + $0x100] sm:$0xff] }
  0x2b   : > { %444 = vmatmul.bf16.vlgmr.msra.gmra.mxu0 %v301_v50  ;;  %454 = vmatmul.bf16.vlgmr.msra.gmra.mxu2 %v330_v53  ;;  %v3202_v50 = vld [vmem:[%s4093_s1 + $0x238] sm:$0xff] }
  0x2c   : > { %584 = vmatpush.bf16.msrb.mxu2 %v3136_v47  ;;  %467 = vmatmul.bf16.vlgmr.msra.gmra.mxu1 %v313_v52  ;;  %v677_v47 = vrot.slane %v3405_v23, 1  ;;  %v3183_v52 = vld [vmem:[%s4093_s1 + $0x1b0] sm:$0xff] }
  0x2d   : > { %607 = vmatpush.bf16.msrb.mxu3 %v3144_v48  ;;  %811 = vmatpush.bf16.msrb.mxu1 %v3176_v49  ;;  %v679_v48 = vrot.slane %v672_v36, 1  ;;  %v680_v49 = vrot.slane %v3411_v26, 1 }
  0x2e   : > { %788 = vmatpush.bf16.msrb.mxu0 %v3168_v51  ;;  %477 = vmatmul.bf16.vlgmr.msra.gmra.mxu3 %v332_v54  ;;  %v3210_v51 = vld [vmem:[%s4093_s1 + $0x278] sm:$0xff]  ;;  %v678_v53 = vsel %vm675_vm1, %v676_v44, %v677_v47  ;;  %v3191_v54 = vld [vmem:[%s4093_s1 + $0x1f0] sm:$0xff] }
  0x30   : > { %585 = vmatpush.bf16.msrb.mxu2 %v3135_v55  ;;  %v681_v55 = vsel %vm675_vm1, %v679_v48, %v680_v49  ;;  %v3241_v48 = vld [vmem:[%s4093_s1 + $0x370] sm:$0xff] }
  0x31   : > { %608 = vmatpush.bf16.msrb.mxu3 %v3143_v56  ;;  %812 = vmatpush.bf16.msrb.mxu1 %v3175_v57  ;;  %v631_v56 = vld [vmem:[%s3369_s30 + $0x20] sm:$0x33]  ;;  %v3201_v57 = vld [vmem:[%s4093_s1 + $0x230] sm:$0xff] }
  0x32   : > { %789 = vmatpush.bf16.msrb.mxu0 %v3167_v58  ;;  %v3209_v58 = vld [vmem:[%s4093_s1 + $0x270] sm:$0xff] }
  0x34   : > { %586 = vmatpush.bf16.msrb.mxu2 %v3134_v59  ;;  %v669_v59 = vunpack.c.l.b16 %v631_v56 }
  0x35   : > { %609 = vmatpush.bf16.msrb.mxu3 %v3142_v60  ;;  %813 = vmatpush.bf16.msrb.mxu1 %v3174_v61  ;;  %v670_v60 = vunpack.c.h.b16 %v631_v56  ;;  %v3200_v61 = vld [vmem:[%s4093_s1 + $0x228] sm:$0xff]  ;;  %v894_v56 = vrot.slane %v298_v32, 4  ;;  %v3223_v32 = vld [vmem:[%s4093_s1 + $0x2e0] sm:$0xff] }
  0x36   : > { %790 = vmatpush.bf16.msrb.mxu0 %v3166_v62  ;;  %v3208_v62 = vld [vmem:[%s4093_s1 + $0x268] sm:$0xff] }
  0x38   : > { %587 = vmatpush.bf16.msrb.mxu2 %v3133_v3  ;;  %v3601_v3 = vpack.c.b16 %v669_v59, %v669_v59 }
  0x39   : > { %610 = vmatpush.bf16.msrb.mxu3 %v3141_v4  ;;  %814 = vmatpush.bf16.msrb.mxu1 %v3173_v5  ;;  %v3603_v4 = vpack.c.b16 %v670_v60, %v670_v60  ;;  %v3199_v5 = vld [vmem:[%s4093_s1 + $0x220] sm:$0xff] }
  0x3a   : > { %791 = vmatpush.bf16.msrb.mxu0 %v3165_v6  ;;  %v3207_v6 = vld [vmem:[%s4093_s1 + $0x260] sm:$0xff]  ;;  %v682_v8 = vrot.slane %v3601_v3, 1 }
  0x3b   : > { %449 = vmatmul.bf16.gmra.mxu0 %v321_v17  ;;  %v684_v11 = vrot.slane %v3603_v4, 1 }
  0x3c   : > { %588 = vmatpush.bf16.msrb.mxu2 %v3132_v12  ;;  %472 = vmatmul.bf16.gmra.mxu1 %v329_v20  ;;  %v3198_v12 = vld [vmem:[%s4093_s1 + $0x218] sm:$0xff]  ;;  %v683_v17 = vsel %vm675_vm1, %v677_v47, %v682_v8  ;;  %v3225_v47 = vld [vmem:[%s4093_s1 + $0x2f0] sm:$0xff] }
  0x3d   : > { %611 = vmatpush.bf16.msrb.mxu3 %v3140_v14  ;;  %815 = vmatpush.bf16.msrb.mxu1 %v3172_v15  ;;  %v3206_v14 = vld [vmem:[%s4093_s1 + $0x258] sm:$0xff]  ;;  %v3179_v15 = vld [vmem:[%s4093_s1 + $0x190] sm:$0xff]  ;;  %v685_v20 = vsel %vm675_vm1, %v680_v49, %v684_v11  ;;  %v3216_v49 = vld [vmem:[%s4093_s1 + $0x2a8] sm:$0xff] }
  0x3e   : > { %792 = vmatpush.bf16.msrb.mxu0 %v3164_v18  ;;  %v3187_v18 = vld [vmem:[%s4093_s1 + $0x1d0] sm:$0xff] }
  0x40   : > { %589 = vmatpush.bf16.msrb.mxu2 %v3131_v22  ;;  %v3205_v22 = vld [vmem:[%s4093_s1 + $0x250] sm:$0xff] }
  0x41   : > { %612 = vmatpush.bf16.msrb.mxu3 %v3139_v24  ;;  %816 = vmatpush.bf16.msrb.mxu1 %v3171_v25  ;;  %v3178_v24 = vld [vmem:[%s4093_s1 + $0x188] sm:$0xff] }
  0x42   : > { %793 = vmatpush.bf16.msrb.mxu0 %v3163_v27  ;;  %v3186_v25 = vld [vmem:[%s4093_s1 + $0x1c8] sm:$0xff] }
  0x43   : > { %v3196_v27 = vld [vmem:[%s4093_s1 + $0x208] sm:$0xff] }
  0x44   : > { %590 = vmatpush.bf16.msrb.mxu2 %v3130_v30  ;;  %v839_v30 = vld [vmem:[%s3369_s30] sm:$0x88] }
  0x45   : > { %613 = vmatpush.bf16.msrb.mxu3 %v3138_v31  ;;  %817 = vmatpush.bf16.msrb.mxu1 %v3170_v33  ;;  %v3185_v31 = vld [vmem:[%s4093_s1 + $0x1c0] sm:$0xff]  ;;  %v3218_v33 = vld [vmem:[%s4093_s1 + $0x2b8] sm:$0xff]  ;;  %v876_v35 = vunpack.c.l.b16 %v839_v30  ;;  %v877_v36 = vunpack.c.h.b16 %v839_v30  ;;  %v3229_v30 = vld [vmem:[%s4093_s1 + $0x310] sm:$0xff] }
  0x46   : > { %794 = vmatpush.bf16.msrb.mxu0 %v3162_v34  ;;  %v3226_v34 = vld [vmem:[%s4093_s1 + $0x2f8] sm:$0xff] }
  0x47   : > { %v881_v44 = vpack.c.b16 %v3384_v13, %v877_v36 }
  0x48   : > { %591 = vmatpush.bf16.msrb.mxu2 %v3129_v38  ;;  %v3195_v38 = vld [vmem:[%s4093_s1 + $0x200] sm:$0xff] }
  0x49   : > { %614 = vmatpush.bf16.msrb.mxu3 %v3137_v39  ;;  %818 = vmatpush.bf16.msrb.mxu1 %v3169_v40  ;;  %v3203_v39 = vld [vmem:[%s4093_s1 + $0x240] sm:$0xff]  ;;  %v3234_v40 = vld [vmem:[%s4093_s1 + $0x338] sm:$0xff] }
  0x4a   : > { %795 = vmatpush.bf16.msrb.mxu0 %v3161_v42  ;;  %v3217_v42 = vld [vmem:[%s4093_s1 + $0x2b0] sm:$0xff] }
  0x4b   : > { %592 = vmatmul.bf16.vlgmr.msrb.gmra.mxu2 %v3393_v16  ;;  %v3182_v16 = vld [vmem:[%s4093_s1 + $0x1a8] sm:$0xff] }
  0x4c   : > { %1029 = vmatpush.bf16.msra.mxu2 %v3184_v41  ;;  %615 = vmatmul.bf16.vlgmr.msrb.gmra.mxu3 %v3398_v19  ;;  %v3190_v19 = vld [vmem:[%s4093_s1 + $0x1e8] sm:$0xff]  ;;  %v3242_v41 = vld [vmem:[%s4093_s1 + $0x378] sm:$0xff] }
  0x4d   : > { %1052 = vmatpush.bf16.msra.mxu3 %v3192_v43  ;;  %1264 = vmatpush.bf16.msra.mxu1 %v3210_v51  ;;  %v880_v43 = vpack.c.b16 %v3379_v10, %v876_v35 }
  0x4e   : > { %1241 = vmatpush.bf16.msra.mxu0 %v3202_v50  ;;  %819 = vmatmul.bf16.vlgmr.msrb.gmra.mxu1 %v681_v55  ;;  %v3233_v50 = vld [vmem:[%s4093_s1 + $0x330] sm:$0xff]  ;;  %v3224_v55 = vld [vmem:[%s4093_s1 + $0x2e8] sm:$0xff] }
  0x4f   : > { %796 = vmatmul.bf16.vlgmr.msrb.gmra.mxu0 %v678_v53  ;;  %v886_v51 = vshrl.u32 %v880_v43, 16  ;;  %v898_v53 = vshrl.u32 %v881_v44, 16 }
  0x50   : > { %1030 = vmatpush.bf16.msra.mxu2 %v3183_v52  ;;  %v889_v52 = vshll.u32 %v880_v43, 16 }
  0x51   : > { %1053 = vmatpush.bf16.msra.mxu3 %v3191_v54  ;;  %1265 = vmatpush.bf16.msra.mxu1 %v3209_v58  ;;  %v901_v54 = vshll.u32 %v881_v44, 16  ;;  %v893_v58 = vrot.slane %v314_v63, 3  ;;  %v888_v59 = vrot.slane %v886_v51, 3  ;;  %v3214_v63 = vld [vmem:[%s4093_s1 + $0x298] sm:$0xff] }
  0x52   : > { %1242 = vmatpush.bf16.msra.mxu0 %v3201_v57  ;;  %v906_v57 = vrot.slane %v310_v37, 4  ;;  %v891_v60 = vrot.slane %v889_v52, 4  ;;  %v840_v37 = vld [vmem:[%s3369_s30 + $0x20] sm:$0xff]  ;;  %v2655_v44 = vld [vmem:[%s3369_s30 + $0x18] sm:$0xf] }
  0x54   : > { %1031 = vmatpush.bf16.msra.mxu2 %v3182_v16  ;;  %v905_v16 = vrot.slane %v322_v1, 3  ;;  %v3738_v1 = vor.u32 %v894_v56, %v893_v58  ;;  %v892_v3 = vor.u32 %v891_v60, %v888_v59  ;;  %v3249_v56 = vld [vmem:[%s4093_s1 + $0x3b0] sm:$0xff]  ;;  %v1084_v58 = vld [vmem:[%s3369_s30 + $0x28] sm:$0x11] }
  0x55   : > { %1054 = vmatpush.bf16.msra.mxu3 %v3190_v19  ;;  %1266 = vmatpush.bf16.msra.mxu1 %v3208_v62  ;;  %v3232_v19 = vld [vmem:[%s4093_s1 + $0x328] sm:$0xff]  ;;  %v903_v62 = vrot.slane %v901_v54, 4  ;;  %v3235_v54 = vld [vmem:[%s4093_s1 + $0x340] sm:$0xff]  ;;  %v1131_v60 = vunpack.c.l.b16 %v1084_v58 }
  0x56   : > { %1243 = vmatpush.bf16.msra.mxu0 %v3200_v61  ;;  %v900_v61 = vrot.slane %v898_v53, 3  ;;  %v3227_v53 = vld [vmem:[%s4093_s1 + $0x300] sm:$0xff]  ;;  %v3248_v59 = vld [vmem:[%s4093_s1 + $0x3a8] sm:$0xff] }
  0x58   : > { %1032 = vmatpush.bf16.msra.mxu2 %v3181_v0  ;;  %v3740_v0 = vor.u32 %v906_v57, %v905_v16  ;;  %v904_v4 = vor.u32 %v903_v62, %v900_v61  ;;  %v3257_v57 = vld [vmem:[%s4093_s1 + $0x3f0] sm:$0xff]  ;;  %v3270_v16 = vld [vmem:[%s4093_s1 + $0x438] sm:$0xff]  ;;  %v3256_v61 = vld [vmem:[%s4093_s1 + $0x3e8] sm:$0xff]  ;;  %v1132_v62 = vunpack.c.h.b16 %v1084_v58 }
  0x59   : > { %1055 = vmatpush.bf16.msra.mxu3 %v3189_v2  ;;  %1267 = vmatpush.bf16.msra.mxu1 %v3207_v6  ;;  %v3231_v2 = vld [vmem:[%s4093_s1 + $0x320] sm:$0xff]  ;;  %v879_v6 = vunpack.c.h.b16 %v840_v37 }
  0x5a   : > { %1244 = vmatpush.bf16.msra.mxu0 %v3199_v5  ;;  %v878_v5 = vunpack.c.l.b16 %v840_v37  ;;  %v3277_v37 = vld [vmem:[%s4093_s1 + $0x470] sm:$0xff] }
  0x5b   : > { %597 = vmatmul.bf16.gmra.mxu2 %v3405_v23  ;;  %v3239_v23 = vld [vmem:[%s4093_s1 + $0x360] sm:$0xff] }
  0x5c   : > { %1033 = vmatpush.bf16.msra.mxu2 %v3180_v7  ;;  %620 = vmatmul.bf16.gmra.mxu3 %v3411_v26  ;;  %v3733_v26 = vld [vmem:[%s3369_s30 + $0x10] sm:$0xff]  ;;  %v3222_v7 = vld [vmem:[%s4093_s1 + $0x2d8] sm:$0xff] }
  0x5d   : > { %1056 = vmatpush.bf16.msra.mxu3 %v3188_v9  ;;  %1268 = vmatpush.bf16.msra.mxu1 %v3206_v14  ;;  %v1126_v9 = vunpack.c.h.b16 %v3733_v26  ;;  %v908_v14 = vsel %vm884_vm2, %v904_v4, %v3740_v0  ;;  %v3255_v4 = vld [vmem:[%s4093_s1 + $0x3e0] sm:$0xff] }
  0x5e   : > { %1245 = vmatpush.bf16.msra.mxu0 %v3198_v12  ;;  %824 = vmatmul.bf16.gmra.mxu1 %v685_v20  ;;  %v896_v12 = vsel %vm884_vm2, %v892_v3, %v3738_v1  ;;  %v3247_v3 = vld [vmem:[%s4093_s1 + $0x3a0] sm:$0xff] }
  0x5f   : > { %801 = vmatmul.bf16.gmra.mxu0 %v683_v17  ;;  %v883_v17 = vpack.c.b16 %v879_v6, %v879_v6  ;;  %v3268_v6 = vld [vmem:[%s4093_s1 + $0x428] sm:$0xff] }
  0x60   : > { %1034 = vmatpush.bf16.msra.mxu2 %v3179_v15  ;;  %v882_v15 = vpack.c.b16 %v878_v5, %v878_v5 }
  0x61   : > { %1057 = vmatpush.bf16.msra.mxu3 %v3187_v18  ;;  %1269 = vmatpush.bf16.msra.mxu1 %v3205_v22  ;;  %v3221_v18 = vld [vmem:[%s4093_s1 + $0x2d0] sm:$0xff]  ;;  %v3230_v22 = vld [vmem:[%s4093_s1 + $0x318] sm:$0xff] }
  0x62   : > { %1246 = vmatpush.bf16.msra.mxu0 %v3197_v21  ;;  %v3768_v21 = vpack.c.b16 %v1126_v9, %v3384_v13  ;;  %v3212_v13 = vld [vmem:[%s4093_s1 + $0x288] sm:$0xff] }
  0x64   : > { %1035 = vmatpush.bf16.msra.mxu2 %v3178_v24  ;;  %v3238_v24 = vld [vmem:[%s4093_s1 + $0x358] sm:$0xff] }
  0x65   : > { %1058 = vmatpush.bf16.msra.mxu3 %v3186_v25  ;;  %1270 = vmatpush.bf16.msra.mxu1 %v3204_v28  ;;  %v910_v25 = vshrl.u32 %v882_v15, 16  ;;  %v922_v28 = vshll.u32 %v883_v17, 16 }
  0x66   : > { %1247 = vmatpush.bf16.msra.mxu0 %v3196_v27  ;;  %v913_v27 = vshll.u32 %v882_v15, 16 }
  0x67   : > { %v924_v36 = vrot.slane %v922_v28, 4  ;;  %v3246_v28 = vld [vmem:[%s4093_s1 + $0x398] sm:$0xff] }
  0x68   : > { %1036 = vmatpush.bf16.msra.mxu2 %v3177_v29  ;;  %v3220_v29 = vld [vmem:[%s4093_s1 + $0x2c8] sm:$0xff] }
  0x69   : > { %1059 = vmatpush.bf16.msra.mxu3 %v3185_v31  ;;  %1271 = vmatpush.bf16.msra.mxu1 %v3203_v39  ;;  %v3237_v31 = vld [vmem:[%s4093_s1 + $0x350] sm:$0xff]  ;;  %v3219_v39 = vld [vmem:[%s4093_s1 + $0x2c0] sm:$0xff] }
  0x6a   : > { %1248 = vmatpush.bf16.msra.mxu0 %v3195_v38  ;;  %v3211_v38 = vld [vmem:[%s4093_s1 + $0x280] sm:$0xff] }
  0x6b   : > { %602 = vmatmul.bf16.gmra.mxu2 %v3435_v45  ;;  %v3215_v45 = vld [vmem:[%s4093_s1 + $0x2a0] sm:$0xff] }
  0x6c   : > { %1471 = vmatpush.bf16.msrb.mxu2 %v3218_v33  ;;  %625 = vmatmul.bf16.gmra.mxu3 %v3437_v46  ;;  %v3240_v46 = vld [vmem:[%s4093_s1 + $0x368] sm:$0xff]  ;;  %v912_v33 = vrot.slane %v910_v25, 3 }
  0x6d   : > { %1494 = vmatpush.bf16.msrb.mxu3 %v3226_v34  ;;  %1703 = vmatpush.bf16.msrb.mxu1 %v3242_v41  ;;  %v915_v34 = vrot.slane %v913_v27, 4  ;;  %v3228_v41 = vld [vmem:[%s4093_s1 + $0x308] sm:$0xff] }
  0x6e   : > { %1680 = vmatpush.bf16.msrb.mxu0 %v3234_v40  ;;  %829 = vmatmul.bf16.gmra.mxu1 %v684_v11  ;;  %v3213_v11 = vld [vmem:[%s4093_s1 + $0x290] sm:$0xff]  ;;  %v3236_v40 = vld [vmem:[%s4093_s1 + $0x348] sm:$0xff] }
  0x6f   : > { %806 = vmatmul.bf16.gmra.mxu0 %v682_v8  ;;  %v1125_v8 = vunpack.c.l.b16 %v3733_v26  ;;  %v3267_v26 = vld [vmem:[%s4093_s1 + $0x420] sm:$0xff] }
  0x70   : > { %1472 = vmatpush.bf16.msrb.mxu2 %v3217_v42  ;;  %v916_v42 = vor.u32 %v915_v34, %v912_v33 }
  0x71   : > { %1495 = vmatpush.bf16.msrb.mxu3 %v3225_v47  ;;  %1704 = vmatpush.bf16.msrb.mxu1 %v3241_v48  ;;  %v3763_v20 = vpack.c.b16 %v1125_v8, %v3379_v10  ;;  %v919_v10 = vshrl.u32 %v883_v17, 16  ;;  %v3194_v47 = vld [vmem:[%s3369_s30 + $0x1c] sm:$0xf0]  ;;  %v3193_v48 = vld [vmem:[%s3369_s30 + $0x1c] sm:$0xf]  ;;  %v1338_v17 = vshrl.u32 %v3768_v21, 16 }
  0x72   : > { %1681 = vmatpush.bf16.msrb.mxu0 %v3233_v50  ;;  %v917_v50 = vsel %vm884_vm2, %v3738_v1, %v916_v42  ;;  %v3810_v52 = vor.u32 %v3194_v47, %v2655_v44  ;;  %v1522_v1 = vld [vmem:[%s3369_s30 + $0x8] sm:$0x88]  ;;  %v3266_v44 = vld [vmem:[%s4093_s1 + $0x418] sm:$0xff] }
  0x73   : > { %v921_v35 = vrot.slane %v919_v10, 3  ;;  %v1559_v5 = vunpack.c.l.b16 %v1522_v1  ;;  %v1523_v42 = vld [vmem:[%s3369_s30 + $0x28] sm:$0xff]  ;;  %v3274_v47 = vld [vmem:[%s4093_s1 + $0x458] sm:$0xff] }
  0x74   : > { %1473 = vmatpush.bf16.msrb.mxu2 %v3216_v49  ;;  %v2657_v49 = vld [vmem:[%s3369_s30 + $0x20] sm:$0xf0]  ;;  %v1333_v15 = vshll.u32 %v3810_v52, 16 }
  0x75   : > { %1496 = vmatpush.bf16.msrb.mxu3 %v3224_v55  ;;  %1705 = vmatpush.bf16.msrb.mxu1 %v3240_v46  ;;  %v925_v43 = vor.u32 %v924_v36, %v921_v35  ;;  %v3818_v55 = vor.u32 %v3193_v48, %v2657_v49  ;;  %v3258_v46 = vld [vmem:[%s4093_s1 + $0x3f8] sm:$0xff]  ;;  %v1561_v48 = vunpack.c.l.b16 %v1523_v42  ;;  %v1349_v49 = vshrl.u32 %v3810_v52, 16 }
  0x76   : > { %1682 = vmatpush.bf16.msrb.mxu0 %v3232_v19  ;;  %v3278_v19 = vld [vmem:[%s4093_s1 + $0x478] sm:$0xff]  ;;  %v1335_v27 = vrot.slane %v1333_v15, 1 }
  0x77   : > { %v926_v51 = vsel %vm884_vm2, %v3740_v0, %v925_v43  ;;  %v1328_v0 = vshll.u32 %v3763_v20, 16  ;;  %v1572_v34 = vrot.slane %v3818_v55, 3  ;;  %v3939_v58 = vpack.c.b16 %v1561_v48, %v1561_v48 }
  0x78   : > { %1474 = vmatpush.bf16.msrb.mxu2 %v3215_v45  ;;  %v3250_v45 = vld [vmem:[%s4093_s1 + $0x3b8] sm:$0xff] }
  0x79   : > { %1497 = vmatpush.bf16.msrb.mxu3 %v3223_v32  ;;  %1706 = vmatpush.bf16.msrb.mxu1 %v3239_v23  ;;  %v3269_v32 = vld [vmem:[%s4093_s1 + $0x430] sm:$0xff]  ;;  %v3853_v23 = vpack.c.b16 %v1131_v60, %v1131_v60 }
  0x7a   : > { %1683 = vmatpush.bf16.msrb.mxu0 %v3231_v2  ;;  %v1340_v2 = vshll.u32 %v3768_v21, 16 }
  0x7b   : > { %1037 = vmatmul.bf16.vlgmr.msra.gmra.mxu2 %v896_v12  ;;  %v1326_v12 = vshrl.u32 %v3763_v20, 16 }
  0x7c   : > { %1475 = vmatpush.bf16.msrb.mxu2 %v3214_v63  ;;  %1060 = vmatmul.bf16.vlgmr.msra.gmra.mxu3 %v908_v14  ;;  %v3855_v63 = vpack.c.b16 %v1132_v62, %v1132_v62  ;;  %v1330_v14 = vrot.slane %v1328_v0, 1 }
  0x7d   : > { %1498 = vmatpush.bf16.msrb.mxu3 %v3222_v7  ;;  %1707 = vmatpush.bf16.msrb.mxu1 %v3238_v24  ;;  %v3276_v7 = vld [vmem:[%s4093_s1 + $0x468] sm:$0xff]  ;;  %v3880_v24 = vpack.c.b16 %v1125_v8, %v1559_v5  ;;  %v3254_v8 = vld [vmem:[%s4093_s1 + $0x3d8] sm:$0xff] }
  0x7e   : > { %1272 = vmatmul.bf16.vlgmr.msra.gmra.mxu1 %v3768_v21  ;;  %1684 = vmatpush.bf16.msrb.mxu0 %v3230_v22  ;;  %v1345_v22 = vshll.u32 %v3818_v55, 16  ;;  %v3264_v5 = vld [vmem:[%s4093_s1 + $0x408] sm:$0xff] }
  0x7f   : > { %1249 = vmatmul.bf16.vlgmr.msra.gmra.mxu0 %v3763_v20  ;;  %v1331_v20 = vor.u32 %v1330_v14, %v1326_v12 }
  0x80   : > { %1476 = vmatpush.bf16.msrb.mxu2 %v3213_v11  ;;  %v1560_v11 = vunpack.c.h.b16 %v1522_v1  ;;  %v1347_v21 = vrot.slane %v1345_v22, 1 }
  0x81   : > { %1499 = vmatpush.bf16.msrb.mxu3 %v3221_v18  ;;  %1708 = vmatpush.bf16.msrb.mxu1 %v3237_v31  ;;  %v1342_v18 = vrot.slane %v1340_v2, 1  ;;  %v3253_v31 = vld [vmem:[%s4093_s1 + $0x3d0] sm:$0xff] }
  0x82   : > { %1685 = vmatpush.bf16.msrb.mxu0 %v3229_v30  ;;  %v3884_v25 = vpack.c.b16 %v1126_v9, %v1560_v11  ;;  %v3275_v9 = vld [vmem:[%s4093_s1 + $0x460] sm:$0xff]  ;;  %v3245_v30 = vld [vmem:[%s4093_s1 + $0x390] sm:$0xff] }
  0x83   : > { %v1343_v10 = vor.u32 %v1342_v18, %v1338_v17  ;;  %v3263_v17 = vld [vmem:[%s4093_s1 + $0x400] sm:$0xff] }
  0x84   : > { %1477 = vmatpush.bf16.msrb.mxu2 %v3212_v13  ;;  %v1568_v13 = vrot.slane %v3880_v24, 3  ;;  %v3271_v18 = vld [vmem:[%s4093_s1 + $0x440] sm:$0xff] }
  0x85   : > { %1500 = vmatpush.bf16.msrb.mxu3 %v3220_v29  ;;  %1709 = vmatpush.bf16.msrb.mxu1 %v3236_v40  ;;  %v1569_v29 = vrot.slane %v3810_v52, 3  ;;  %v1348_v36 = vsel %vm289_vm0, %v1343_v10, %v1347_v21 }
  0x86   : > { %1686 = vmatpush.bf16.msrb.mxu0 %v3228_v41 }
  0x88   : > { %1478 = vmatpush.bf16.msrb.mxu2 %v3211_v38 }
  0x89   : > { %1501 = vmatpush.bf16.msrb.mxu3 %v3219_v39  ;;  %1710 = vmatpush.bf16.msrb.mxu1 %v3235_v54  ;;  %v1570_v39 = vsel %vm1567_vm3, %v1568_v13, %v1569_v29  ;;  %v1361_v54 = vshll.u32 %v3855_v63, 16 }
  0x8a   : > { %1687 = vmatpush.bf16.msrb.mxu0 %v3227_v53  ;;  %v1357_v53 = vshrl.u32 %v3818_v55, 16 }
  0x8b   : > { %1042 = vmatmul.bf16.gmra.mxu2 %v917_v50  ;;  %v1353_v50 = vshll.u32 %v3853_v23, 16  ;;  %v1363_v2 = vrot.slane %v1361_v54, 1 }
  0x8c   : > { %1065 = vmatmul.bf16.gmra.mxu3 %v926_v51  ;;  %1908 = vmatpush.bf16.msra.mxu2 %v3250_v45  ;;  %v1562_v51 = vunpack.c.h.b16 %v1523_v42  ;;  %v3265_v45 = vld [vmem:[%s4093_s1 + $0x410] sm:$0xff]  ;;  %v1359_v0 = vor.u32 %v1357_v53, %v1347_v21 }
  0x8d   : > { %1931 = vmatpush.bf16.msra.mxu3 %v3258_v46  ;;  %2143 = vmatpush.bf16.msra.mxu1 %v3278_v19  ;;  %v3273_v46 = vld [vmem:[%s4093_s1 + $0x450] sm:$0xff]  ;;  %v3252_v19 = vld [vmem:[%s4093_s1 + $0x3c8] sm:$0xff]  ;;  %v1355_v62 = vrot.slane %v1353_v50, 1 }
  0x8e   : > { %1277 = vmatmul.bf16.gmra.mxu1 %v3818_v55  ;;  %2120 = vmatpush.bf16.msra.mxu0 %v3270_v16  ;;  %v3244_v16 = vld [vmem:[%s4093_s1 + $0x388] sm:$0xff]  ;;  %v1364_v14 = vsel %vm289_vm0, %v1359_v0, %v1363_v2  ;;  %v3259_v55 = vld [vmem:[%s3369_s30 + $0x14] sm:$0xf] }
  0x8f   : > { %1254 = vmatmul.bf16.gmra.mxu0 %v3810_v52 }
  0x90   : > { %1909 = vmatpush.bf16.msra.mxu2 %v3249_v56 }
  0x91   : > { %1932 = vmatpush.bf16.msra.mxu3 %v3257_v57  ;;  %2144 = vmatpush.bf16.msra.mxu1 %v3277_v37 }
  0x92   : > { %2121 = vmatpush.bf16.msra.mxu0 %v3269_v32  ;;  %v3949_v32 = vpack.c.b16 %v1562_v51, %v1562_v51 }
  0x94   : > { %1910 = vmatpush.bf16.msra.mxu2 %v3248_v59  ;;  %v1576_v11 = vrot.slane %v3949_v32, 3 }
  0x95   : > { %1933 = vmatpush.bf16.msra.mxu3 %v3256_v61  ;;  %2145 = vmatpush.bf16.msra.mxu1 %v3276_v7  ;;  %v1351_v61 = vor.u32 %v1349_v49, %v1335_v27  ;;  %v1574_v7 = vrot.slane %v3939_v58, 3 }
  0x96   : > { %2122 = vmatpush.bf16.msra.mxu0 %v3268_v6  ;;  %v3272_v6 = vld [vmem:[%s4093_s1 + $0x448] sm:$0xff] }
  0x97   : > { %v1356_v12 = vsel %vm289_vm0, %v1351_v61, %v1355_v62  ;;  %v1575_v10 = vsel %vm1567_vm3, %v1569_v29, %v1574_v7  ;;  %v1365_v29 = vshrl.u32 %v3853_v23, 16  ;;  %v3049_v61 = vld [vmem:[%s3369_s30 + $0x18] sm:$0xf0] }
  0x98   : > { %1911 = vmatpush.bf16.msra.mxu2 %v3247_v3  ;;  %v3243_v3 = vld [vmem:[%s4093_s1 + $0x380] sm:$0xff] }
  0x99   : > { %1934 = vmatpush.bf16.msra.mxu3 %v3255_v4  ;;  %2146 = vmatpush.bf16.msra.mxu1 %v3275_v9  ;;  %v3251_v4 = vld [vmem:[%s4093_s1 + $0x3c0] sm:$0xff] }
  0x9a   : > { %2123 = vmatpush.bf16.msra.mxu0 %v3267_v26 }
  0x9b   : > { %1047 = vmatmul.bf16.gmra.mxu2 %v912_v33  ;;  %v1571_v33 = vrot.slane %v3884_v25, 3 }
  0x9c   : > { %1070 = vmatmul.bf16.gmra.mxu3 %v921_v35  ;;  %1912 = vmatpush.bf16.msra.mxu2 %v3246_v28  ;;  %v1336_v35 = vsel %vm289_vm0, %v1331_v20, %v1335_v27 }
  0x9d   : > { %1935 = vmatpush.bf16.msra.mxu3 %v3254_v8  ;;  %v1573_v41 = vsel %vm1567_vm3, %v1571_v33, %v1572_v34  ;;  %2147 = vmatpush.bf16.msra.mxu1 %v3274_v47  ;;  %v1577_v8 = vsel %vm1567_vm3, %v1572_v34, %v1576_v11  ;;  %v1765_v34 = vshrl.u32 %v3880_v24, 16 }
  0x9e   : > { %1282 = vmatmul.bf16.gmra.mxu1 %v3855_v63  ;;  %2124 = vmatpush.bf16.msra.mxu0 %v3266_v44 }
  0x9f   : > { %1259 = vmatmul.bf16.gmra.mxu0 %v3853_v23  ;;  %v1767_v47 = vrot.slane %v1765_v34, 3  ;;  %v3055_v34 = vld [vmem:[%s3369_s30 + $0x20] sm:$0xf] }
  0xa0   : > { %1913 = vmatpush.bf16.msra.mxu2 %v3245_v30 }
  0xa1   : > { %1936 = vmatpush.bf16.msra.mxu3 %v3253_v31  ;;  %2148 = vmatpush.bf16.msra.mxu1 %v3273_v46  ;;  %v1367_v31 = vshrl.u32 %v3855_v63, 16  ;;  %v1784_v63 = vrot.slane %v1357_v53, 3 }
  0xa2   : > { %2125 = vmatpush.bf16.msra.mxu0 %v3265_v45 }
  0xa4   : > { %1914 = vmatpush.bf16.msra.mxu2 %v3244_v16 }
  0xa5   : > { %1937 = vmatpush.bf16.msra.mxu3 %v3252_v19  ;;  %2149 = vmatpush.bf16.msra.mxu1 %v3272_v6  ;;  %v3047_v19 = vld [vmem:[%s3369_s30 + $0x10] sm:$0xf] }
  0xa6   : > { %2126 = vmatpush.bf16.msra.mxu0 %v3264_v5 }
  0xa8   : > { %v445_v38 = vpop.f32.mrf.mxu0  ;;  %1915 = vmatpush.bf16.msra.mxu2 %v3243_v3 }
  0xa9   : > { %v468_v40 = vpop.f32.mrf.mxu1  ;;  %1938 = vmatpush.bf16.msra.mxu3 %v3251_v4  ;;  %2150 = vmatpush.bf16.msra.mxu1 %v3271_v18  ;;  %v3052_v4 = vor.u32 %v3259_v55, %v3049_v61 }
  0xaa   : > { %v3921_v43 = vadd.f32 %v468_v40, %v445_v38  ;;  %2127 = vmatpush.bf16.msra.mxu0 %v3263_v17  ;;  %v1780_v40 = vshll.u32 %v3884_v25, 16 }
  0xab   : > { %1479 = vmatmul.bf16.vlgmr.msrb.gmra.mxu2 %v1336_v35 }
  0xac   : > { %1502 = vmatmul.bf16.vlgmr.msrb.gmra.mxu3 %v1348_v36  ;;  %v1768_v36 = vshll.u32 %v3880_v24, 16  ;;  %v1773_v24 = vrot.slane %v1333_v15, 4  ;;  %v1782_v50 = vrot.slane %v1780_v40, 4 }
  0xae   : > { %1711 = vmatmul.bf16.vlgmr.msrb.gmra.mxu1 %v1573_v41  ;;  %v455_v57 = vpop.f32.mrf.mxu2  ;;  %v1772_v41 = vrot.slane %v1349_v49, 3  ;;  %v1770_v48 = vrot.slane %v1768_v36, 4  ;;  %v1785_v49 = vrot.slane %v1345_v22, 4  ;;  %v3262_v36 = vld [vmem:[%s3369_s30 + $0x24] sm:$0xf0] }
  0xaf   : > { %1688 = vmatmul.bf16.vlgmr.msrb.gmra.mxu0 %v1570_v39  ;;  %v1777_v39 = vshrl.u32 %v3884_v25, 16 }
  0xb0   : > { %v447_v56 = vpop.f32.mrf.mxu0  ;;  %v1786_v52 = vor.u32 %v1785_v49, %v1784_v63 }
  0xb1   : > { %v470_v59 = vpop.f32.mrf.mxu1  ;;  %v478_v60 = vpop.f32.mrf.mxu3  ;;  %v1779_v25 = vrot.slane %v1777_v39, 3  ;;  %v3057_v39 = vld [vmem:[%s3369_s30 + $0x28] sm:$0xf0] }
  0xb2   : > { %v3951_v37 = vadd.f32 %v470_v59, %v447_v56  ;;  %v3953_v1 = vadd.f32 %v478_v60, %v455_v57  ;;  %v1774_v56 = vor.u32 %v1773_v24, %v1772_v41  ;;  %v3260_v59 = vld [vmem:[%s3369_s30 + $0x14] sm:$0xf0] }
  0xb3   : > { %v1783_v57 = vor.u32 %v1782_v50, %v1779_v25  ;;  %v3048_v2 = vor.u32 %v3260_v59, %v3047_v19 }
  0xb5   : > { %v1787_v62 = vsel %vm884_vm2, %v1783_v57, %v1786_v52 }
  0xb6   : > { %v457_v27 = vpop.f32.mrf.mxu2 }
  0xb8   : > { %v450_v20 = vpop.f32.mrf.mxu0 }
  0xb9   : > { %v473_v21 = vpop.f32.mrf.mxu1  ;;  %v480_v28 = vpop.f32.mrf.mxu3 }
  0xba   : > { %v3985_v26 = vadd.f32 %v473_v21, %v450_v20 }
  0xbb   : > { %1484 = vmatmul.bf16.gmra.mxu2 %v1356_v12  ;;  %v1798_v12 = vshrl.u32 %v3949_v32, 16 }
  0xbc   : > { %1507 = vmatmul.bf16.gmra.mxu3 %v1364_v14  ;;  %v1801_v14 = vshll.u32 %v3949_v32, 16 }
  0xbd   : > { %v1800_v21 = vrot.slane %v1798_v12, 3 }
  0xbe   : > { %1716 = vmatmul.bf16.gmra.mxu1 %v1577_v8  ;;  %v1803_v28 = vrot.slane %v1801_v14, 4 }
  0xbf   : > { %1693 = vmatmul.bf16.gmra.mxu0 %v1575_v10 }
  0xc0   : > { %v452_v9 = vpop.f32.mrf.mxu0 }
  0xc1   : > { %v475_v13 = vpop.f32.mrf.mxu1 }
  0xc2   : > { %v3987_v30 = vadd.f32 %v475_v13, %v452_v9 }
  0xcb   : > { %v820_v35 = vpop.f32.mrf.mxu1  ;;  %1489 = vmatmul.bf16.gmra.mxu2 %v1365_v29 }
  0xcc   : > { %v797_v33 = vpop.f32.mrf.mxu0  ;;  %1512 = vmatmul.bf16.gmra.mxu3 %v1367_v31  ;;  %v1804_v31 = vor.u32 %v1803_v28, %v1800_v21 }
  0xcd   : > { %v821_v38 = vadd.f32 %v820_v35, %v797_v33 }
  0xce   : > { %v593_v23 = vpop.f32.mrf.mxu2  ;;  %1721 = vmatmul.bf16.gmra.mxu1 %v1576_v11  ;;  %v1805_v41 = vsel %vm884_vm2, %v1786_v52, %v1804_v31 }
  0xcf   : > { %1698 = vmatmul.bf16.gmra.mxu0 %v1574_v7  ;;  %v616_v42 = vpop.f32.mrf.mxu3  ;;  %v594_v44 = vadd.f32 %v593_v23, %v3921_v43  ;;  %v1771_v43 = vor.u32 %v1770_v48, %v1767_v47  ;;  %v1789_v7 = vshrl.u32 %v3939_v58, 16 }
  0xd1   : > { %v617_v51 = vadd.f32 %v616_v42, %v594_v44  ;;  %v1775_v22 = vsel %vm884_vm2, %v1771_v43, %v1774_v56  ;;  %v1791_v27 = vrot.slane %v1789_v7, 3  ;;  %v3056_v42 = vor.u32 %v3262_v36, %v3055_v34 }
  0xd3   : > { %v4004_v45 = vadd.f32 %v821_v38, %v617_v51  ;;  %v822_v53 = vpop.f32.mrf.mxu1  ;;  %v3261_v38 = vld [vmem:[%s3369_s30 + $0x24] sm:$0xf] }
  0xd4   : > { %v799_v54 = vpop.f32.mrf.mxu0  ;;  %v3060_v44 = vor.u32 %v3261_v38, %v3057_v39 }
  0xd5   : > { %v823_v46 = vadd.f32 %v822_v53, %v799_v54  ;;  %v1963_v54 = vld [vmem:[%s3369_s30 + $0x30] sm:$0x11] }
  0xd6   : > { %v595_v16 = vpop.f32.mrf.mxu2  ;;  %v2011_v52 = vunpack.c.h.b16 %v1963_v54 }
  0xd7   : > { %v618_v15 = vpop.f32.mrf.mxu3  ;;  %v596_v60 = vadd.f32 %v595_v16, %v3951_v37  ;;  %v1792_v37 = vshll.u32 %v3939_v58, 16 }
  0xd8   : > { %v2017_v19 = vpack.c.b16 %v2011_v52, %v2011_v52 }
  0xd9   : > { %v619_v0 = vadd.f32 %v618_v15, %v596_v60  ;;  %v1794_v10 = vrot.slane %v1792_v37, 4 }
  0xdb   : > { %v4013_v5 = vadd.f32 %v823_v46, %v619_v0  ;;  %v825_v6 = vpop.f32.mrf.mxu1  ;;  %1916 = vmatmul.bf16.vlgmr.msra.gmra.mxu2 %v1775_v22  ;;  %v1795_v29 = vor.u32 %v1794_v10, %v1791_v27  ;;  %v2010_v46 = vunpack.c.l.b16 %v1963_v54 }
  0xdc   : > { %v802_v3 = vpop.f32.mrf.mxu0  ;;  %1939 = vmatmul.bf16.vlgmr.msra.gmra.mxu3 %v1787_v62 }
  0xdd   : > { %v826_v11 = vadd.f32 %v825_v6, %v802_v3  ;;  %v1796_v40 = vsel %vm884_vm2, %v1774_v56, %v1795_v29  ;;  %v2016_v16 = vpack.c.b16 %v2010_v46, %v2010_v46 }
  0xde   : > { %v598_v17 = vpop.f32.mrf.mxu2  ;;  %2151 = vmatmul.bf16.vlgmr.msra.gmra.mxu1 %v3052_v4 }
  0xdf   : > { %2128 = vmatmul.bf16.vlgmr.msra.gmra.mxu0 %v3048_v2  ;;  %v621_v18 = vpop.f32.mrf.mxu3  ;;  %v599_v20 = vadd.f32 %v598_v17, %v3985_v26 }
  0xe1   : > { %v622_v8 = vadd.f32 %v621_v18, %v599_v20 }
  0xe3   : > { %v4020_v9 = vadd.f32 %v826_v11, %v622_v8  ;;  %v827_v13 = vpop.f32.mrf.mxu1 }
  0xe4   : > { %v804_v58 = vpop.f32.mrf.mxu0 }
  0xe5   : > { %v828_v32 = vadd.f32 %v827_v13, %v804_v58 }
  0xe6   : > { %v600_v33 = vpop.f32.mrf.mxu2 }
  0xe7   : > { %v623_v35 = vpop.f32.mrf.mxu3  ;;  %v601_v26 = vadd.f32 %v600_v33, %v3987_v30 }
  0xe9   : > { %v624_v23 = vadd.f32 %v623_v35, %v601_v26 }
  0xeb   : > { %v837_v47 = vadd.f32 %v828_v32, %v624_v23  ;;  %v830_v48 = vpop.f32.mrf.mxu1  ;;  %1921 = vmatmul.bf16.gmra.mxu2 %v1796_v40 }
  0xec   : > { %v807_v63 = vpop.f32.mrf.mxu0  ;;  %1944 = vmatmul.bf16.gmra.mxu3 %v1805_v41 }
  0xed   : > { %v831_v24 = vadd.f32 %v830_v48, %v807_v63 }
  0xee   : > { %v603_v25 = vpop.f32.mrf.mxu2  ;;  %2156 = vmatmul.bf16.gmra.mxu1 %v3060_v44 }
  0xef   : > { %2133 = vmatmul.bf16.gmra.mxu0 %v3056_v42  ;;  %v626_v50 = vpop.f32.mrf.mxu3  ;;  %v604_v30 = vadd.f32 %v603_v25, %v3953_v1 }
  0xf1   : > { %v627_v49 = vadd.f32 %v626_v50, %v604_v30 }
  0xf3   : > { %v838_v53 = vadd.f32 %v831_v24, %v627_v49  ;;  %v832_v43 = vpop.f32.mrf.mxu1 }
  0xf4   : > { %v809_v51 = vpop.f32.mrf.mxu0 }
  0xf6   : > { %v605_v56 = vpop.f32.mrf.mxu2 }
  0xf7   : > { %v628_v57 = vpop.f32.mrf.mxu3 }
  0xfb   : > { %v1273_v59 = vpop.f32.mrf.mxu1  ;;  %1926 = vmatmul.bf16.gmra.mxu2 %v1791_v27 }
  0xfc   : > { %v1250_v15 = vpop.f32.mrf.mxu0  ;;  %1949 = vmatmul.bf16.gmra.mxu3 %v1800_v21 }
  0xfd   : > { %v1274_v60 = vadd.f32 %v1273_v59, %v1250_v15 }
  0xfe   : > { %v1038_v55 = vpop.f32.mrf.mxu2  ;;  %2161 = vmatmul.bf16.gmra.mxu1 %v2017_v19 }
  0xff   : > { %2138 = vmatmul.bf16.gmra.mxu0 %v2016_v16  ;;  %v1061_v61 = vpop.f32.mrf.mxu3 }
 0x100   : > { %v1062_v1 = vadd.f32 %v1061_v61, %v1038_v55 }
 0x102   : > { %v1075_v22 = vadd.f32 %v1062_v1, %v4004_v45 }
 0x103   : > { %v1275_v0 = vpop.f32.mrf.mxu1 }
 0x104   : > { %v1252_v62 = vpop.f32.mrf.mxu0  ;;  %v1287_v2 = vadd.f32 %v1274_v60, %v1075_v22 }
 0x105   : > { %v1276_v3 = vadd.f32 %v1275_v0, %v1252_v62 }
 0x106   : > { %v1040_v4 = vpop.f32.mrf.mxu2 }
 0x107   : > { %v1063_v6 = vpop.f32.mrf.mxu3 }
 0x108   : > { %v1064_v7 = vadd.f32 %v1063_v6, %v1040_v4 }
 0x10a   : > { %v1076_v11 = vadd.f32 %v1064_v7, %v4013_v5 }
 0x10b   : > { %v1278_v12 = vpop.f32.mrf.mxu1 }
 0x10c   : > { %v1255_v37 = vpop.f32.mrf.mxu0  ;;  %v4033_v14 = vadd.f32 %v1276_v3, %v1076_v11 }
 0x10d   : > { %v1279_v17 = vadd.f32 %v1278_v12, %v1255_v37 }
 0x10e   : > { %v1043_v18 = vpop.f32.mrf.mxu2 }
 0x10f   : > { %v1066_v20 = vpop.f32.mrf.mxu3 }
 0x110   : > { %v1067_v27 = vadd.f32 %v1066_v20, %v1043_v18 }
 0x112   : > { %v1077_v10 = vadd.f32 %v1067_v27, %v4020_v9 }
 0x113   : > { %v1280_v21 = vpop.f32.mrf.mxu1 }
 0x114   : > { %v1257_v45 = vpop.f32.mrf.mxu0  ;;  %v4036_v28 = vadd.f32 %v1279_v17, %v1077_v10  ;;  %v4053_v17 = vld [vmem:[%s4094_s2] ss:$0 sm:$0xff] }
 0x115   : > { %v1281_v8 = vadd.f32 %v1280_v21, %v1257_v45 }
 0x116   : > { %v1045_v58 = vpop.f32.mrf.mxu2 }
 0x117   : > { %v1068_v13 = vpop.f32.mrf.mxu3 }
 0x118   : > { %v1069_v32 = vadd.f32 %v1068_v13, %v1045_v58 }
 0x11a   : > { %v1078_v29 = vadd.f32 %v1069_v32, %v837_v47 }
 0x11b   : > { %v1283_v31 = vpop.f32.mrf.mxu1 }
 0x11c   : > { %v1260_v5 = vpop.f32.mrf.mxu0  ;;  %v4038_v33 = vadd.f32 %v1281_v8, %v1078_v29 }
 0x11d   : > { %v1284_v35 = vadd.f32 %v1283_v31, %v1260_v5 }
 0x11e   : > { %v1048_v34 = vpop.f32.mrf.mxu2 }
 0x11f   : > { %v1071_v36 = vpop.f32.mrf.mxu3 }
 0x120   : > { %v1072_v26 = vadd.f32 %v1071_v36, %v1048_v34 }
 0x122   : > { %v1079_v38 = vadd.f32 %v1072_v26, %v838_v53 }
 0x123   : > { %v1285_v9 = vpop.f32.mrf.mxu1 }
 0x124   : > { %v1262_v39 = vpop.f32.mrf.mxu0  ;;  %v4040_v40 = vadd.f32 %v1284_v35, %v1079_v38 }
 0x126   : > { %v1050_v41 = vpop.f32.mrf.mxu2 }
 0x127   : > { %v1073_v23 = vpop.f32.mrf.mxu3 }
 0x12b   : > { %v1712_v63 = vpop.f32.mrf.mxu1 }
 0x12c   : > { %v1689_v42 = vpop.f32.mrf.mxu0 }
 0x12d   : > { %v1713_v22 = vadd.f32 %v1712_v63, %v1689_v42 }
 0x12e   : > { %v1480_v44 = vpop.f32.mrf.mxu2 }
 0x12f   : > { %v1503_v48 = vpop.f32.mrf.mxu3 }
 0x130   : > { %v1504_v61 = vadd.f32 %v1503_v48, %v1480_v44 }
 0x132   : > { %v1517_v62 = vadd.f32 %v1504_v61, %v1287_v2  ;;  %v4059_v2 = vld [vmem:[%s4095_s3] ss:$0 sm:$0xff] }
 0x133   : > { %v1714_v24 = vpop.f32.mrf.mxu1 }
 0x134   : > { %v1691_v47 = vpop.f32.mrf.mxu0  ;;  %v1726_v11 = vadd.f32 %v1713_v22, %v1517_v62 }
 0x135   : > { %v1715_v45 = vadd.f32 %v1714_v24, %v1691_v47 }
 0x136   : > { %v1482_v25 = vpop.f32.mrf.mxu2 }
 0x137   : > { %v1505_v50 = vpop.f32.mrf.mxu3 }
 0x138   : > { %v1506_v6 = vadd.f32 %v1505_v50, %v1482_v25 }
 0x13a   : > { %v1518_v20 = vadd.f32 %v1506_v6, %v4033_v14 }
 0x13b   : > { %v1717_v49 = vpop.f32.mrf.mxu1 }
 0x13c   : > { %v1694_v30 = vpop.f32.mrf.mxu0  ;;  %v1727_v29 = vadd.f32 %v1715_v45, %v1518_v20 }
 0x13d   : > { %v1718_v34 = vadd.f32 %v1717_v49, %v1694_v30 }
 0x13e   : > { %v1485_v51 = vpop.f32.mrf.mxu2 }
 0x13f   : > { %v1508_v54 = vpop.f32.mrf.mxu3 }
 0x140   : > { %v1509_v8 = vadd.f32 %v1508_v54, %v1485_v51 }
 0x142   : > { %v1519_v36 = vadd.f32 %v1509_v8, %v4036_v28 }
 0x143   : > { %v4044_v53 = vpop.f32.mrf.mxu1 }
 0x144   : > { %v4042_v43 = vpop.f32.mrf.mxu0  ;;  %v1728_v23 = vadd.f32 %v1718_v34, %v1519_v36 }
 0x145   : > { %v1720_v51 = vadd.f32 %v4044_v53, %v4042_v43 }
 0x146   : > { %v1487_v46 = vpop.f32.mrf.mxu2 }
 0x147   : > { %v1510_v56 = vpop.f32.mrf.mxu3 }
 0x148   : > { %v1511_v63 = vadd.f32 %v1510_v56, %v1487_v46 }
 0x14a   : > { %v1520_v28 = vadd.f32 %v1511_v63, %v4038_v33 }
 0x14b   : > { %v4048_v52 = vpop.f32.mrf.mxu1 }
 0x14c   : > { %v4046_v57 = vpop.f32.mrf.mxu0 }
 0x14d   : > { %v1723_v62 = vadd.f32 %v4048_v52, %v4046_v57 }
 0x14e   : > { %v1490_v16 = vpop.f32.mrf.mxu2 }
 0x14f   : > { %v1513_v15 = vpop.f32.mrf.mxu3 }
 0x150   : > { %v1514_v56 = vadd.f32 %v1513_v15, %v1490_v16 }
 0x153   : > { %v1724_v59 = vpop.f32.mrf.mxu1 }
 0x154   : > { %v1701_v19 = vpop.f32.mrf.mxu0 }
 0x156   : > { %v1492_v60 = vpop.f32.mrf.mxu2 }
 0x157   : > { %v1515_v55 = vpop.f32.mrf.mxu3  ;;  %v1729_v60 = vadd.f32 %v1720_v51, %v1520_v28 }
 0x15b   : > { %v2152_v0 = vpop.f32.mrf.mxu1 }
 0x15c   : > { %v2129_v1 = vpop.f32.mrf.mxu0 }
 0x15d   : > { %v2153_v7 = vadd.f32 %v2152_v0, %v2129_v1  ;;  %v1521_v0 = vadd.f32 %v1514_v56, %v4040_v40 }
 0x15e   : > { %v1917_v3 = vpop.f32.mrf.mxu2 }
 0x15f   : > { %v1940_v4 = vpop.f32.mrf.mxu3 }
 0x160   : > { %v1941_v37 = vadd.f32 %v1940_v4, %v1917_v3 }
 0x162   : > { %v1954_v12 = vadd.f32 %v1941_v37, %v1726_v11 }
 0x163   : > { %v2154_v10 = vpop.f32.mrf.mxu1 }
 0x164   : > { %v2131_v18 = vpop.f32.mrf.mxu0  ;;  %v2166_v27 = vadd.f32 %v2153_v7, %v1954_v12  ;;  %v1730_v7 = vadd.f32 %v1723_v62, %v1521_v0 }
 0x165   : > { %v2155_v31 = vadd.f32 %v2154_v10, %v2131_v18 }
 0x166   : > { %v2175_v21 = vmul.f32 %v4053_v17, %v2166_v27  ;;  %v1919_v58 = vpop.f32.mrf.mxu2 }
 0x167   : > { %v1942_v13 = vpop.f32.mrf.mxu3 }
 0x168   : > { %v2184_v32 = vadd.f32 %v4059_v2, %v2175_v21  ;;  %v1943_v5 = vadd.f32 %v1942_v13, %v1919_v58 }
 0x16a   : > { %v2189_v14 = vmax.f32 %v2184_v32, 0.0  ;;  %v1955_v35 = vadd.f32 %v1943_v5, %v1727_v29 }
 0x16b   : > { %v2157_v39 = vpop.f32.mrf.mxu1 }
 0x16c   : > { %v2134_v26 = vpop.f32.mrf.mxu0  ;;  %2194 = vst [vmem:[%s4067_s13] sm:$0xff] %v2189_v14  ;;  %v2167_v38 = vadd.f32 %v2155_v31, %v1955_v35 }
 0x16d   : > { %v2158_v48 = vadd.f32 %v2157_v39, %v2134_v26 }
 0x16e   : > { %v2176_v9 = vmul.f32 %v4053_v17, %v2167_v38  ;;  %v1922_v41 = vpop.f32.mrf.mxu2 }
 0x16f   : > { %v1945_v42 = vpop.f32.mrf.mxu3 }
 0x170   : > { %v2185_v44 = vadd.f32 %v4059_v2, %v2176_v9  ;;  %v1946_v47 = vadd.f32 %v1945_v42, %v1922_v41 }
 0x172   : > { %v2190_v24 = vmax.f32 %v2185_v44, 0.0  ;;  %v1956_v25 = vadd.f32 %v1946_v47, %v1728_v23 }
 0x173   : > { %v2159_v49 = vpop.f32.mrf.mxu1 }
 0x174   : > { %v2136_v50 = vpop.f32.mrf.mxu0  ;;  %2195 = vst [vmem:[%s4067_s13 + $0x8] sm:$0xff] %v2190_v24  ;;  %v2168_v30 = vadd.f32 %v2158_v48, %v1956_v25 }
 0x175   : > { %v2160_v1 = vadd.f32 %v2159_v49, %v2136_v50 }
 0x176   : > { %v2177_v54 = vmul.f32 %v4053_v17, %v2168_v30  ;;  %v1924_v19 = vpop.f32.mrf.mxu2 }
 0x177   : > { %v1947_v46 = vpop.f32.mrf.mxu3 }
 0x178   : > { %v2186_v59 = vadd.f32 %v4059_v2, %v2177_v54  ;;  %v1948_v55 = vadd.f32 %v1947_v46, %v1924_v19 }
 0x17a   : > { %v2191_v61 = vmax.f32 %v2186_v59, 0.0  ;;  %v1957_v22 = vadd.f32 %v1948_v55, %v1729_v60 }
 0x17b   : > { %v2162_v53 = vpop.f32.mrf.mxu1 }
 0x17c   : > { %v2139_v33 = vpop.f32.mrf.mxu0  ;;  %2196 = vst [vmem:[%s4067_s13 + $0x10] sm:$0xff] %v2191_v61  ;;  %v2169_v43 = vadd.f32 %v2160_v1, %v1957_v22 }
 0x17d   : > { %v2163_v6 = vadd.f32 %v2162_v53, %v2139_v33 }
 0x17e   : > { %v2178_v3 = vmul.f32 %v4053_v17, %v2169_v43  ;;  %v1927_v16 = vpop.f32.mrf.mxu2 }
 0x17f   : > { %v1950_v15 = vpop.f32.mrf.mxu3 }
 0x180   : > { %v2187_v4 = vadd.f32 %v4059_v2, %v2178_v3  ;;  %v1951_v11 = vadd.f32 %v1950_v15, %v1927_v16 }
 0x182   : > { %v2192_v37 = vmax.f32 %v2187_v4, 0.0  ;;  %v1958_v12 = vadd.f32 %v1951_v11, %v1730_v7 }
 0x183   : > { %v2164_v52 = vpop.f32.mrf.mxu1 }
 0x184   : > { %v2141_v18 = vpop.f32.mrf.mxu0  ;;  %2197 = vst [vmem:[%s4067_s13 + $0x18] sm:$0xff] %v2192_v37  ;;  %v2170_v57 = vadd.f32 %v2163_v6, %v1958_v12 }
 0x186   : > { %v2179_v40 = vmul.f32 %v4053_v17, %v2170_v57  ;;  %v1929_v20 = vpop.f32.mrf.mxu2 }
 0x187   : > { %v1952_v27 = vpop.f32.mrf.mxu3 }
 0x188   : > { %v2188_v10 = vadd.f32 %v4059_v2, %v2179_v40 }
 0x18a   : > { %v2193_v45 = vmax.f32 %v2188_v10, 0.0 }
 0x18c   : > { %2198 = vst [vmem:[%s4067_s13 + $0x20] sm:$0x1] %v2193_v45 }
 0x18d PF: > { %s14_s15 = sadd.s32 1, %s3313_s15  }
 0x18e   : > { %p11_p4 = scmp.ge.s32.totalorder %s14_s15, 4  }
 0x190   :  { %13 = sbr.rel (!%p11_p4) target bundleno = 1 (0x1), region = 74 }

</bundles_post_ra>
